<compile_context>
chip_gen: v7x
topology: tpu7x:2x2x1
jax: 0.10.0
libtpu: 0.0.40
codegen_flags: <defaults>
</compile_context>

<pallas_src>
import jax
import jax.numpy as jnp
from jax import lax
from jax.experimental import pallas as pl
from jax.experimental.pallas import tpu as pltpu

BN_EPS = 0.0                      # nn.BatchNorm2d(F, False): eps = False == 0.0
HIGH = jax.lax.Precision.HIGHEST  # data/weight matmuls stay f32-faithful


# --------------------------------------------------------------------------------------
# fused EEGNet kernel
# --------------------------------------------------------------------------------------
def _make_eegnet_kernel(B, Chans, T, K1, F1, D, F2, K3, pool1, pool2, NC, alpha):
    RC = Chans * B                    # rows of the raw input tile (r = c*B + b)
    F1RC = F1 * RC                    # conv1/BN1 working rows (f*RC + c*B + b)
    DF1 = D * F1
    DB = DF1 * B                      # depthwise/pool1/sepconv rows (j*B + b)
    FB = F2 * B                       # pointwise/BN3/pool2 rows (m*B + b)
    T2 = T // pool1
    T3 = T2 // pool2
    P1L = (K1 - 1) // 2               # PyTorch 'same' padding (extra pad on the right)
    P1R = (K1 - 1) - P1L
    P3L = (K3 - 1) // 2
    P3R = (K3 - 1) - P3L
    TP1 = T + K1 - 1
    TP3 = T2 + K3 - 1

    def bn_elu(y, gr, gc, gb, n, do_elu):
        """Training-mode BatchNorm (biased var, eps=0) over per-group rows, optional ELU.

        Group reduce / broadcast-back use tiny one-hot matmuls so the whole stage stays
        batched (no per-feature-map Python loop).
        """
        inv_n = 1.0 / n
        rs = jnp.sum(y, axis=1, keepdims=True)           # (rows, 1) lane reduction
        rss = jnp.sum(y * y, axis=1, keepdims=True)      # (rows, 1)
        mean = jnp.dot(gr, rs, precision=HIGH,
                       preferred_element_type=jnp.float32) * inv_n       # (G, 1)
        ex2 = jnp.dot(gr, rss, precision=HIGH,
                      preferred_element_type=jnp.float32) * inv_n        # (G, 1)
        var = jnp.maximum(ex2 - mean * mean, 0.0)
        scale = gb[:, 0:1] * lax.rsqrt(var + BN_EPS)                     # gamma / sqrt(var)
        shift = gb[:, 1:2] - mean * scale                                # beta - mean*scale
        scale_r = jnp.dot(gc, scale, precision=HIGH,
                          preferred_element_type=jnp.float32)            # (rows, 1)
        shift_r = jnp.dot(gc, shift, precision=HIGH,
                          preferred_element_type=jnp.float32)            # (rows, 1)
        y = y * scale_r + shift_r
        if do_elu:
            y = jnp.where(y > 0.0, y, alpha * (jnp.exp(jnp.minimum(y, 0.0)) - 1.0))
        return y

    def kernel(x_ref, w1c_ref, w2s_ref, w3c_ref, wpw_ref, p1_ref, p2_ref,
               wd_ref, bd_ref, g1r_ref, g1c_ref, gb1_ref, g2r_ref, g2c_ref,
               gb2_ref, g3r_ref, g3c_ref, gb3_ref,
               out_ref, xr_ref, zp_ref, feat_ref):
        # ---- stage 1: temporal conv1 ('same') + BN1, batched over all F1 filters ------
        # Replicate the raw input into F1 sublane groups of the padded scratch; only the
        # pad columns are zeroed explicitly.
        xin = x_ref[...]
        if P1L > 0:
            xr_ref[:, 0:P1L] = jnp.zeros((F1RC, P1L), jnp.float32)
        if P1R > 0:
            xr_ref[:, P1L + T:TP1] = jnp.zeros((F1RC, P1R), jnp.float32)
        for f in range(F1):
            xr_ref[f * RC:(f + 1) * RC, P1L:P1L + T] = xin

        w1c = w1c_ref[...]                                # (F1RC, K1) per-row weight cols
        y1 = w1c[:, 0:1] * xr_ref[:, 0:T]
        for k in range(1, K1):
            y1 = y1 + w1c[:, k:k + 1] * xr_ref[:, k:k + T]          # K1 vector FMAs
        y1 = bn_elu(y1, g1r_ref[...], g1c_ref[...], gb1_ref[...],
                    float(RC * T), do_elu=False)                     # (F1RC, T)

        # ---- stage 2: depthwise (Chans,1) conv as ONE MXU matmul + BN2 + ELU + pool1 ---
        y2 = jnp.dot(w2s_ref[...], y1, precision=HIGH,
                     preferred_element_type=jnp.float32)             # (DB, T)
        y2 = bn_elu(y2, g2r_ref[...], g2c_ref[...], gb2_ref[...],
                    float(B * T), do_elu=True)
        # pooling matrix holds exact powers of two -> DEFAULT (bf16) MXU precision is fine
        z = jnp.dot(y2, p1_ref[...], preferred_element_type=jnp.float32)   # (DB, T2)
        # TODO(synk): drop2 (nn.Dropout) is stochastic; applied as inference-mode identity.

        # ---- stage 3: separable conv (depthwise temporal 'same' + pointwise) ----------
        if P3L > 0:
            zp_ref[:, 0:P3L] = jnp.zeros((DB, P3L), jnp.float32)
        if P3R > 0:
            zp_ref[:, P3L + T2:TP3] = jnp.zeros((DB, P3R), jnp.float32)
        zp_ref[:, P3L:P3L + T2] = z

        w3c = w3c_ref[...]                                 # (DB, K3) per-row weight cols
        s = w3c[:, 0:1] * zp_ref[:, 0:T2]
        for k in range(1, K3):
            s = s + w3c[:, k:k + 1] * zp_ref[:, k:k + T2]            # K3 vector FMAs

        q = jnp.dot(wpw_ref[...], s, precision=HIGH,
                    preferred_element_type=jnp.float32)              # (FB, T2) pointwise
        q = bn_elu(q, g3r_ref[...], g3c_ref[...], gb3_ref[...],
                   float(B * T2), do_elu=True)
        pooled = jnp.dot(q, p2_ref[...], preferred_element_type=jnp.float32)  # (FB, T3)
        # TODO(synk): drop3 (nn.Dropout) is stochastic; applied as inference-mode identity.

        # ---- head: flatten into a (B, F2*T3) buffer + ONE dense matmul -----------------
        for m in range(F2):
            feat_ref[:, m * T3:(m + 1) * T3] = pooled[m * B:(m + 1) * B, :]
        out_ref[...] = jnp.dot(feat_ref[...], wd_ref[...], precision=HIGH,
                               preferred_element_type=jnp.float32) + bd_ref[...]

    return kernel


# --------------------------------------------------------------------------------------
# wrapper (plain-JAX parameter plumbing + pallas_call)
# --------------------------------------------------------------------------------------
def _scale_norm(w2d, max_norm, eps):
    """Replicates selfeeg scale_norm exactly: a *global* gate (if any row exceeds the
    limit, every row is rescaled by clamp(norm)/(eps+norm)), and the module passes
    eps == max_norm in forward()."""
    if max_norm is None:
        return w2d
    norm = jnp.sqrt(jnp.sum(w2d * w2d, axis=1, keepdims=True))
    desired = jnp.clip(norm, 0.0, max_norm)
    scale = jnp.where(jnp.any(norm > max_norm), desired / (eps + norm), jnp.ones_like(norm))
    return w2d * scale


def _pool_matrix(n, p):
    nq = n // p
    t = jnp.arange(n)[:, None]
    u = jnp.arange(nq)[None, :]
    return ((t // p) == u).astype(jnp.float32) / float(p)


def _group_matrices(n_groups, group_size):
    """One-hot group matrices: Gr (groups, rows) reduces rows->groups, Gc (rows, groups)
    broadcasts group values back to rows."""
    gids = jnp.repeat(jnp.arange(n_groups), group_size)
    gc = (gids[:, None] == jnp.arange(n_groups)[None, :]).astype(jnp.float32)
    return gc.T, gc


def eegnet_forward(x, params, hp):
    """x: (B, Chans, Samples) f32 -> logits (B, nb_classes)."""
    B, Chans, T = x.shape
    K1, F1, D, F2 = hp["kernLength"], hp["F1"], hp["D"], hp["F2"]
    K3, pool1, pool2 = hp["separable_kernel"], hp["pool1"], hp["pool2"]
    alpha = float(hp["ELUalpha"])
    DF1 = D * F1
    RC = Chans * B
    T2 = T // pool1
    T3 = T2 // pool2
    NC = params["w_dense"].shape[0]
    f32 = jnp.float32

    # ---- parameter massaging (trace-time JAX glue, done once, outside the kernel) ----
    w1 = params["w_conv1"][:, 0, 0, :].astype(f32)                       # (F1, K1)
    w1col = jnp.repeat(w1, RC, axis=0)                                   # (F1*RC, K1)

    w2 = _scale_norm(params["w_dw"][:, 0, :, 0].astype(f32),
                     hp["depthwise_max_norm"], hp["depthwise_max_norm"])  # (DF1, Chans)
    eyeB = jnp.eye(B, dtype=f32)
    f_of_j = jnp.arange(DF1) // D                                        # grouped-conv map
    f_onehot = (f_of_j[:, None] == jnp.arange(F1)[None, :]).astype(f32)  # (DF1, F1)
    # W2sel[j*B+b, f(j)*Chans*B + c*B + b] = w2[j, c]  (depthwise conv as one matmul)
    W2sel = jnp.einsum("jc,jf,ab->jafcb", w2, f_onehot, eyeB).reshape(DF1 * B, F1 * RC)

    w3d = params["w_sep_dw"][:, 0, 0, :].astype(f32)                     # (DF1, K3)
    w3dcol = jnp.repeat(w3d, B, axis=0)                                  # (DF1*B, K3)
    w3p = params["w_sep_pw"][:, :, 0, 0].astype(f32)                     # (F2, DF1)
    # Wpw[m*B+a, j*B+b] = w3p[m, j] * (a == b)  (pointwise conv as one matmul)
    Wpw = jnp.einsum("mj,ab->majb", w3p, eyeB).reshape(F2 * B, DF1 * B)

    wd = _scale_norm(params["w_dense"].astype(f32),
                     hp["norm_rate"], hp["norm_rate"])                   # (NC, F2*T3)
    wd_flat = wd.T                                                       # (F2*T3, NC)
    bd = params["b_dense"].reshape(1, NC).astype(f32)

    G1r, G1c = _group_matrices(F1, RC)     # BN1: per-filter groups of Chans*B rows
    G2r, G2c = _group_matrices(DF1, B)     # BN2: per-channel groups of B rows
    G3r, G3c = _group_matrices(F2, B)      # BN3: per-channel groups of B rows
    gb1 = jnp.stack([params["g1"].astype(f32), params["b1"].astype(f32)], axis=1)
    gb2 = jnp.stack([params["g2"].astype(f32), params["b2"].astype(f32)], axis=1)
    gb3 = jnp.stack([params["g3"].astype(f32), params["b3"].astype(f32)], axis=1)

    P1 = _pool_matrix(T, pool1)            # (T, T2)   entries 1/pool1 (bf16-exact)
    P2 = _pool_matrix(T2, pool2)           # (T2, T3)  entries 1/pool2 (bf16-exact)

    # Chans-major row layout (rows r = c*B + b), time on lanes
    x_cb = jnp.transpose(x.astype(f32), (1, 0, 2)).reshape(RC, T)

    kernel = _make_eegnet_kernel(B, Chans, T, K1, F1, D, F2, K3, pool1, pool2, NC, alpha)
    vmem = pl.BlockSpec(memory_space=pltpu.MemorySpace.VMEM)

    # No grid: training-mode BatchNorm couples the whole batch, so the batch axis cannot
    # be split across grid steps / TensorCores without a cross-step statistics exchange.
    # TODO(synk): add a ("parallel",) batch grid for v7x once BN uses running statistics.
    return pl.pallas_call(
        kernel,
        out_shape=jax.ShapeDtypeStruct((B, NC), jnp.float32),
        in_specs=[vmem] * 18,
        out_specs=vmem,
        scratch_shapes=[
            pltpu.VMEM((F1 * RC, T + K1 - 1), jnp.float32),   # replicated 'same'-padded input
            pltpu.VMEM((DF1 * B, T2 + K3 - 1), jnp.float32),  # padded separable-conv input
            pltpu.VMEM((B, F2 * T3), jnp.float32),            # flattened feature buffer
        ],
    )(x_cb, w1col, W2sel, w3dcol, Wpw, P1, P2, wd_flat, bd,
      G1r, G1c, gb1, G2r, G2c, gb2, G3r, G3c, gb3)


# --------------------------------------------------------------------------------------
# pure-JAX reference (PyTorch semantics)
# --------------------------------------------------------------------------------------
def eegnet_reference(x, params, hp):
    B, Chans, T = x.shape
    K1, F1, D, F2 = hp["kernLength"], hp["F1"], hp["D"], hp["F2"]
    K3, pool1, pool2 = hp["separable_kernel"], hp["pool1"], hp["pool2"]
    alpha = float(hp["ELUalpha"])
    DF1 = D * F1
    dn = ("NCHW", "OIHW", "NCHW")

    def bn(y, g, b):
        mean = jnp.mean(y, axis=(0, 2, 3), keepdims=True)
        var = jnp.var(y, axis=(0, 2, 3), keepdims=True)
        return (y - mean) * lax.rsqrt(var + BN_EPS) * g.reshape(1, -1, 1, 1) + b.reshape(1, -1, 1, 1)

    def elu(y):
        return jnp.where(y > 0.0, y, alpha * (jnp.exp(y) - 1.0))

    def avgpool_t(y, p):
        b_, c_, h_, t_ = y.shape
        tq = t_ // p
        return y[..., :tq * p].reshape(b_, c_, h_, tq, p).mean(-1)

    y = x[:, None, :, :]                                               # (B, 1, Chans, T)
    pl_, pr_ = (K1 - 1) // 2, (K1 - 1) - (K1 - 1) // 2
    y = lax.conv_general_dilated(y, params["w_conv1"], (1, 1), ((0, 0), (pl_, pr_)),
                                 dimension_numbers=dn, precision=HIGH)
    y = bn(y, params["g1"], params["b1"])

    w_dw = _scale_norm(params["w_dw"][:, 0, :, 0], hp["depthwise_max_norm"],
                       hp["depthwise_max_norm"])[:, None, :, None]
    y = lax.conv_general_dilated(y, w_dw, (1, 1), ((0, 0), (0, 0)),
                                 dimension_numbers=dn, feature_group_count=F1, precision=HIGH)
    y = bn(y, params["g2"], params["b2"])
    y = elu(y)
    y = avgpool_t(y, pool1)                                            # dropout: identity

    p3l, p3r = (K3 - 1) // 2, (K3 - 1) - (K3 - 1) // 2
    y = lax.conv_general_dilated(y, params["w_sep_dw"], (1, 1), ((0, 0), (p3l, p3r)),
                                 dimension_numbers=dn, feature_group_count=DF1, precision=HIGH)
    y = lax.conv_general_dilated(y, params["w_sep_pw"], (1, 1), ((0, 0), (0, 0)),
                                 dimension_numbers=dn, precision=HIGH)
    y = bn(y, params["g3"], params["b3"])
    y = elu(y)
    y = avgpool_t(y, pool2)                                            # dropout: identity

    feat = y.reshape(B, -1)                                            # nn.Flatten
    wd = _scale_norm(params["w_dense"], hp["norm_rate"], hp["norm_rate"])
    return jnp.dot(feat, wd.T, precision=HIGH) + params["b_dense"][None, :]


# --------------------------------------------------------------------------------------
if __name__ == "__main__":
    # EEGNet(nb_classes=4, Chans=4, Samples=64, kernLength=16, F1=4, D=2, F2=8,
    #        pool1=4, pool2=8, separable_kernel=8) -- small but structurally faithful.
    hp = dict(kernLength=16, F1=4, D=2, F2=8, pool1=4, pool2=8,
              separable_kernel=8, ELUalpha=1.0, depthwise_max_norm=1.0, norm_rate=0.25)
    B, Chans, T, NC = 2, 4, 64, 4
    DF1 = hp["F1"] * hp["D"]
    T3 = (T // hp["pool1"]) // hp["pool2"]
    feat_dim = hp["F2"] * T3

    key = jax.random.PRNGKey(0)
    ks = jax.random.split(key, 13)
    params = {
        "w_conv1":  jax.random.normal(ks[0], (hp["F1"], 1, 1, hp["kernLength"]), jnp.float32) * 0.3,
        "g1":       jax.random.uniform(ks[1], (hp["F1"],), jnp.float32, 0.5, 1.5),
        "b1":       jax.random.normal(ks[2], (hp["F1"],), jnp.float32) * 0.1,
        "w_dw":     jax.random.normal(ks[3], (DF1, 1, Chans, 1), jnp.float32) * 0.4,
        "g2":       jax.random.uniform(ks[4], (DF1,), jnp.float32, 0.5, 1.5),
        "b2":       jax.random.normal(ks[5], (DF1,), jnp.float32) * 0.1,
        "w_sep_dw": jax.random.normal(ks[6], (DF1, 1, 1, hp["separable_kernel"]), jnp.float32) * 0.3,
        "w_sep_pw": jax.random.normal(ks[7], (hp["F2"], DF1, 1, 1), jnp.float32) * 0.3,
        "g3":       jax.random.uniform(ks[8], (hp["F2"],), jnp.float32, 0.5, 1.5),
        "b3":       jax.random.normal(ks[9], (hp["F2"],), jnp.float32) * 0.1,
        "w_dense":  jax.random.normal(ks[10], (NC, feat_dim), jnp.float32) * 0.2,
        "b_dense":  jax.random.normal(ks[11], (NC,), jnp.float32) * 0.1,
    }
    x = jax.random.normal(ks[12], (B, Chans, T), jnp.float32)

    out = jax.block_until_ready(eegnet_forward(x, params, hp))
    ref = jax.block_until_ready(eegnet_reference(x, params, hp))

    assert out.shape == (B, NC), out.shape
    err = float(jnp.max(jnp.abs(out - ref)))
    # Tolerance accounts for the (intentional) single-pass bf16 MXU pooling matmuls;
    # any structural bug (padding / grouping / stats) produces errors orders of
    # magnitude larger than this.
    tol = 4e-3 * (float(jnp.max(jnp.abs(ref))) + 1.0)
    if err > tol:
        raise AssertionError(f"mismatch vs reference: max abs err {err} (tol {tol})")
    print("KERNEL_OK")
</pallas_src>

<mosaic_0001>
module attributes {stable_mosaic.version = 11 : i64} {
  func.func @kernel(%arg0: memref<8x64xf32, #tpu.memory_space<vmem>>, %arg1: memref<32x16xf32, #tpu.memory_space<vmem>>, %arg2: memref<16x32xf32, #tpu.memory_space<vmem>>, %arg3: memref<16x8xf32, #tpu.memory_space<vmem>>, %arg4: memref<16x16xf32, #tpu.memory_space<vmem>>, %arg5: memref<64x16xf32, #tpu.memory_space<vmem>>, %arg6: memref<16x2xf32, #tpu.memory_space<vmem>>, %arg7: memref<16x4xf32, #tpu.memory_space<vmem>>, %arg8: memref<1x4xf32, #tpu.memory_space<vmem>>, %arg9: memref<4x32xf32, #tpu.memory_space<vmem>>, %arg10: memref<32x4xf32, #tpu.memory_space<vmem>>, %arg11: memref<4x2xf32, #tpu.memory_space<vmem>>, %arg12: memref<8x16xf32, #tpu.memory_space<vmem>>, %arg13: memref<16x8xf32, #tpu.memory_space<vmem>>, %arg14: memref<8x2xf32, #tpu.memory_space<vmem>>, %arg15: memref<8x16xf32, #tpu.memory_space<vmem>>, %arg16: memref<16x8xf32, #tpu.memory_space<vmem>>, %arg17: memref<8x2xf32, #tpu.memory_space<vmem>>, %arg18: memref<2x4xf32, #tpu.memory_space<vmem>>, %arg19: memref<32x79xf32, #tpu.memory_space<vmem>>, %arg20: memref<16x23xf32, #tpu.memory_space<vmem>>, %arg21: memref<2x16xf32, #tpu.memory_space<vmem>>) attributes {dimension_semantics = [], scalar_prefetch = 0 : i64, scratch_operands = 3 : i64, tpu.core_type = #tpu.core_type<tc>} {
    %c0 = arith.constant 0 : index
    %c0_0 = arith.constant 0 : index
    %0 = vector.load %arg0[%c0, %c0_0] : memref<8x64xf32, #tpu.memory_space<vmem>>, vector<8x64xf32>
    %cst = arith.constant 0.000000e+00 : f32
    %1 = vector.broadcast %cst : f32 to vector<32x7xf32>
    %c0_1 = arith.constant 0 : index
    %c0_2 = arith.constant 0 : index
    %2 = vector.load %arg19[%c0_1, %c0_2] : memref<32x79xf32, #tpu.memory_space<vmem>>, vector<32x7xf32>
    tpu.vector_store %arg19[%c0_1, %c0_2], %1 {strides = array<i32>} : memref<32x79xf32, #tpu.memory_space<vmem>>, vector<32x7xf32>,
    %cst_3 = arith.constant 0.000000e+00 : f32
    %3 = vector.broadcast %cst_3 : f32 to vector<32x8xf32>
    %c0_4 = arith.constant 0 : index
    %c71 = arith.constant 71 : index
    %4 = vector.load %arg19[%c0_4, %c71] : memref<32x79xf32, #tpu.memory_space<vmem>>, vector<32x8xf32>
    tpu.vector_store %arg19[%c0_4, %c71], %3 {strides = array<i32>} : memref<32x79xf32, #tpu.memory_space<vmem>>, vector<32x8xf32>,
    %c0_5 = arith.constant 0 : index
    %c7 = arith.constant 7 : index
    %5 = vector.load %arg19[%c0_5, %c7] : memref<32x79xf32, #tpu.memory_space<vmem>>, vector<8x64xf32>
    tpu.vector_store %arg19[%c0_5, %c7], %0 {strides = array<i32>} : memref<32x79xf32, #tpu.memory_space<vmem>>, vector<8x64xf32>,
    %c8 = arith.constant 8 : index
    %c7_6 = arith.constant 7 : index
    %6 = vector.load %arg19[%c8, %c7_6] : memref<32x79xf32, #tpu.memory_space<vmem>>, vector<8x64xf32>
    tpu.vector_store %arg19[%c8, %c7_6], %0 {strides = array<i32>} : memref<32x79xf32, #tpu.memory_space<vmem>>, vector<8x64xf32>,
    %c16 = arith.constant 16 : index
    %c7_7 = arith.constant 7 : index
    %7 = vector.load %arg19[%c16, %c7_7] : memref<32x79xf32, #tpu.memory_space<vmem>>, vector<8x64xf32>
    tpu.vector_store %arg19[%c16, %c7_7], %0 {strides = array<i32>} : memref<32x79xf32, #tpu.memory_space<vmem>>, vector<8x64xf32>,
    %c24 = arith.constant 24 : index
    %c7_8 = arith.constant 7 : index
    %8 = vector.load %arg19[%c24, %c7_8] : memref<32x79xf32, #tpu.memory_space<vmem>>, vector<8x64xf32>
    tpu.vector_store %arg19[%c24, %c7_8], %0 {strides = array<i32>} : memref<32x79xf32, #tpu.memory_space<vmem>>, vector<8x64xf32>,
    %c0_9 = arith.constant 0 : index
    %c0_10 = arith.constant 0 : index
    %9 = vector.load %arg1[%c0_9, %c0_10] : memref<32x16xf32, #tpu.memory_space<vmem>>, vector<32x16xf32>
    %10 = vector.extract_strided_slice %9 {offsets = [0, 0], sizes = [32, 1], strides = [1, 1]} : vector<32x16xf32> to vector<32x1xf32>
    %c0_11 = arith.constant 0 : index
    %c0_12 = arith.constant 0 : index
    %11 = vector.load %arg19[%c0_11, %c0_12] : memref<32x79xf32, #tpu.memory_space<vmem>>, vector<32x64xf32>
    %12 = vector.broadcast %10 : vector<32x1xf32> to vector<32x64xf32>
    %13 = arith.mulf %12, %11 : vector<32x64xf32>
    %14 = vector.extract_strided_slice %9 {offsets = [0, 1], sizes = [32, 1], strides = [1, 1]} : vector<32x16xf32> to vector<32x1xf32>
    %c0_13 = arith.constant 0 : index
    %c1 = arith.constant 1 : index
    %15 = vector.load %arg19[%c0_13, %c1] : memref<32x79xf32, #tpu.memory_space<vmem>>, vector<32x64xf32>
    %16 = vector.broadcast %14 : vector<32x1xf32> to vector<32x64xf32>
    %17 = arith.mulf %16, %15 : vector<32x64xf32>
    %18 = arith.addf %13, %17 : vector<32x64xf32>
    %19 = vector.extract_strided_slice %9 {offsets = [0, 2], sizes = [32, 1], strides = [1, 1]} : vector<32x16xf32> to vector<32x1xf32>
    %c0_14 = arith.constant 0 : index
    %c2 = arith.constant 2 : index
    %20 = vector.load %arg19[%c0_14, %c2] : memref<32x79xf32, #tpu.memory_space<vmem>>, vector<32x64xf32>
    %21 = vector.broadcast %19 : vector<32x1xf32> to vector<32x64xf32>
    %22 = arith.mulf %21, %20 : vector<32x64xf32>
    %23 = arith.addf %18, %22 : vector<32x64xf32>
    %24 = vector.extract_strided_slice %9 {offsets = [0, 3], sizes = [32, 1], strides = [1, 1]} : vector<32x16xf32> to vector<32x1xf32>
    %c0_15 = arith.constant 0 : index
    %c3 = arith.constant 3 : index
    %25 = vector.load %arg19[%c0_15, %c3] : memref<32x79xf32, #tpu.memory_space<vmem>>, vector<32x64xf32>
    %26 = vector.broadcast %24 : vector<32x1xf32> to vector<32x64xf32>
    %27 = arith.mulf %26, %25 : vector<32x64xf32>
    %28 = arith.addf %23, %27 : vector<32x64xf32>
    %29 = vector.extract_strided_slice %9 {offsets = [0, 4], sizes = [32, 1], strides = [1, 1]} : vector<32x16xf32> to vector<32x1xf32>
    %c0_16 = arith.constant 0 : index
    %c4 = arith.constant 4 : index
    %30 = vector.load %arg19[%c0_16, %c4] : memref<32x79xf32, #tpu.memory_space<vmem>>, vector<32x64xf32>
    %31 = vector.broadcast %29 : vector<32x1xf32> to vector<32x64xf32>
    %32 = arith.mulf %31, %30 : vector<32x64xf32>
    %33 = arith.addf %28, %32 : vector<32x64xf32>
    %34 = vector.extract_strided_slice %9 {offsets = [0, 5], sizes = [32, 1], strides = [1, 1]} : vector<32x16xf32> to vector<32x1xf32>
    %c0_17 = arith.constant 0 : index
    %c5 = arith.constant 5 : index
    %35 = vector.load %arg19[%c0_17, %c5] : memref<32x79xf32, #tpu.memory_space<vmem>>, vector<32x64xf32>
    %36 = vector.broadcast %34 : vector<32x1xf32> to vector<32x64xf32>
    %37 = arith.mulf %36, %35 : vector<32x64xf32>
    %38 = arith.addf %33, %37 : vector<32x64xf32>
    %39 = vector.extract_strided_slice %9 {offsets = [0, 6], sizes = [32, 1], strides = [1, 1]} : vector<32x16xf32> to vector<32x1xf32>
    %c0_18 = arith.constant 0 : index
    %c6 = arith.constant 6 : index
    %40 = vector.load %arg19[%c0_18, %c6] : memref<32x79xf32, #tpu.memory_space<vmem>>, vector<32x64xf32>
    %41 = vector.broadcast %39 : vector<32x1xf32> to vector<32x64xf32>
    %42 = arith.mulf %41, %40 : vector<32x64xf32>
    %43 = arith.addf %38, %42 : vector<32x64xf32>
    %44 = vector.extract_strided_slice %9 {offsets = [0, 7], sizes = [32, 1], strides = [1, 1]} : vector<32x16xf32> to vector<32x1xf32>
    %c0_19 = arith.constant 0 : index
    %c7_20 = arith.constant 7 : index
    %45 = vector.load %arg19[%c0_19, %c7_20] : memref<32x79xf32, #tpu.memory_space<vmem>>, vector<32x64xf32>
    %46 = vector.broadcast %44 : vector<32x1xf32> to vector<32x64xf32>
    %47 = arith.mulf %46, %45 : vector<32x64xf32>
    %48 = arith.addf %43, %47 : vector<32x64xf32>
    %49 = vector.extract_strided_slice %9 {offsets = [0, 8], sizes = [32, 1], strides = [1, 1]} : vector<32x16xf32> to vector<32x1xf32>
    %c0_21 = arith.constant 0 : index
    %c8_22 = arith.constant 8 : index
    %50 = vector.load %arg19[%c0_21, %c8_22] : memref<32x79xf32, #tpu.memory_space<vmem>>, vector<32x64xf32>
    %51 = vector.broadcast %49 : vector<32x1xf32> to vector<32x64xf32>
    %52 = arith.mulf %51, %50 : vector<32x64xf32>
    %53 = arith.addf %48, %52 : vector<32x64xf32>
    %54 = vector.extract_strided_slice %9 {offsets = [0, 9], sizes = [32, 1], strides = [1, 1]} : vector<32x16xf32> to vector<32x1xf32>
    %c0_23 = arith.constant 0 : index
    %c9 = arith.constant 9 : index
    %55 = vector.load %arg19[%c0_23, %c9] : memref<32x79xf32, #tpu.memory_space<vmem>>, vector<32x64xf32>
    %56 = vector.broadcast %54 : vector<32x1xf32> to vector<32x64xf32>
    %57 = arith.mulf %56, %55 : vector<32x64xf32>
    %58 = arith.addf %53, %57 : vector<32x64xf32>
    %59 = vector.extract_strided_slice %9 {offsets = [0, 10], sizes = [32, 1], strides = [1, 1]} : vector<32x16xf32> to vector<32x1xf32>
    %c0_24 = arith.constant 0 : index
    %c10 = arith.constant 10 : index
    %60 = vector.load %arg19[%c0_24, %c10] : memref<32x79xf32, #tpu.memory_space<vmem>>, vector<32x64xf32>
    %61 = vector.broadcast %59 : vector<32x1xf32> to vector<32x64xf32>
    %62 = arith.mulf %61, %60 : vector<32x64xf32>
    %63 = arith.addf %58, %62 : vector<32x64xf32>
    %64 = vector.extract_strided_slice %9 {offsets = [0, 11], sizes = [32, 1], strides = [1, 1]} : vector<32x16xf32> to vector<32x1xf32>
    %c0_25 = arith.constant 0 : index
    %c11 = arith.constant 11 : index
    %65 = vector.load %arg19[%c0_25, %c11] : memref<32x79xf32, #tpu.memory_space<vmem>>, vector<32x64xf32>
    %66 = vector.broadcast %64 : vector<32x1xf32> to vector<32x64xf32>
    %67 = arith.mulf %66, %65 : vector<32x64xf32>
    %68 = arith.addf %63, %67 : vector<32x64xf32>
    %69 = vector.extract_strided_slice %9 {offsets = [0, 12], sizes = [32, 1], strides = [1, 1]} : vector<32x16xf32> to vector<32x1xf32>
    %c0_26 = arith.constant 0 : index
    %c12 = arith.constant 12 : index
    %70 = vector.load %arg19[%c0_26, %c12] : memref<32x79xf32, #tpu.memory_space<vmem>>, vector<32x64xf32>
    %71 = vector.broadcast %69 : vector<32x1xf32> to vector<32x64xf32>
    %72 = arith.mulf %71, %70 : vector<32x64xf32>
    %73 = arith.addf %68, %72 : vector<32x64xf32>
    %74 = vector.extract_strided_slice %9 {offsets = [0, 13], sizes = [32, 1], strides = [1, 1]} : vector<32x16xf32> to vector<32x1xf32>
    %c0_27 = arith.constant 0 : index
    %c13 = arith.constant 13 : index
    %75 = vector.load %arg19[%c0_27, %c13] : memref<32x79xf32, #tpu.memory_space<vmem>>, vector<32x64xf32>
    %76 = vector.broadcast %74 : vector<32x1xf32> to vector<32x64xf32>
    %77 = arith.mulf %76, %75 : vector<32x64xf32>
    %78 = arith.addf %73, %77 : vector<32x64xf32>
    %79 = vector.extract_strided_slice %9 {offsets = [0, 14], sizes = [32, 1], strides = [1, 1]} : vector<32x16xf32> to vector<32x1xf32>
    %c0_28 = arith.constant 0 : index
    %c14 = arith.constant 14 : index
    %80 = vector.load %arg19[%c0_28, %c14] : memref<32x79xf32, #tpu.memory_space<vmem>>, vector<32x64xf32>
    %81 = vector.broadcast %79 : vector<32x1xf32> to vector<32x64xf32>
    %82 = arith.mulf %81, %80 : vector<32x64xf32>
    %83 = arith.addf %78, %82 : vector<32x64xf32>
    %84 = vector.extract_strided_slice %9 {offsets = [0, 15], sizes = [32, 1], strides = [1, 1]} : vector<32x16xf32> to vector<32x1xf32>
    %c0_29 = arith.constant 0 : index
    %c15 = arith.constant 15 : index
    %85 = vector.load %arg19[%c0_29, %c15] : memref<32x79xf32, #tpu.memory_space<vmem>>, vector<32x64xf32>
    %86 = vector.broadcast %84 : vector<32x1xf32> to vector<32x64xf32>
    %87 = arith.mulf %86, %85 : vector<32x64xf32>
    %88 = arith.addf %83, %87 : vector<32x64xf32>
    %c0_30 = arith.constant 0 : index
    %c0_31 = arith.constant 0 : index
    %89 = vector.load %arg9[%c0_30, %c0_31] : memref<4x32xf32, #tpu.memory_space<vmem>>, vector<4x32xf32>
    %c0_32 = arith.constant 0 : index
    %c0_33 = arith.constant 0 : index
    %90 = vector.load %arg10[%c0_32, %c0_33] : memref<32x4xf32, #tpu.memory_space<vmem>>, vector<32x4xf32>
    %c0_34 = arith.constant 0 : index
    %c0_35 = arith.constant 0 : index
    %91 = vector.load %arg11[%c0_34, %c0_35] : memref<4x2xf32, #tpu.memory_space<vmem>>, vector<4x2xf32>
    %cst_36 = arith.constant dense<0.000000e+00> : vector<32xf32>
    %92 = vector.multi_reduction <add>, %88, %cst_36 [1] : vector<32x64xf32> to vector<32xf32>
    %93 = vector.shape_cast %92 : vector<32xf32> to vector<32x1xf32>
    %94 = arith.mulf %88, %88 : vector<32x64xf32>
    %cst_37 = arith.constant dense<0.000000e+00> : vector<32xf32>
    %95 = vector.multi_reduction <add>, %94, %cst_37 [1] : vector<32x64xf32> to vector<32xf32>
    %96 = vector.shape_cast %95 : vector<32xf32> to vector<32x1xf32>
    %cst_38 = arith.constant dense<0.000000e+00> : vector<4x1xf32>
    %97 = tpu.matmul %89, %93, %cst_38 {dimension_numbers = #tpu.dot_dimension_numbers<[1], [0], [0], [1], [0, 0, 1, 1], [], []>, precision = #tpu.contract_precision<fp32>} : vector<4x32xf32>, vector<32x1xf32>, vector<4x1xf32> -> vector<4x1xf32>
    %cst_39 = arith.constant 0.001953125 : f32
    %98 = vector.broadcast %cst_39 : f32 to vector<4x1xf32>
    %99 = arith.mulf %97, %98 : vector<4x1xf32>
    %cst_40 = arith.constant dense<0.000000e+00> : vector<4x1xf32>
    %100 = tpu.matmul %89, %96, %cst_40 {dimension_numbers = #tpu.dot_dimension_numbers<[1], [0], [0], [1], [0, 0, 1, 1], [], []>, precision = #tpu.contract_precision<fp32>} : vector<4x32xf32>, vector<32x1xf32>, vector<4x1xf32> -> vector<4x1xf32>
    %cst_41 = arith.constant 0.001953125 : f32
    %101 = vector.broadcast %cst_41 : f32 to vector<4x1xf32>
    %102 = arith.mulf %100, %101 : vector<4x1xf32>
    %103 = arith.mulf %99, %99 : vector<4x1xf32>
    %104 = arith.subf %102, %103 : vector<4x1xf32>
    %cst_42 = arith.constant 0.000000e+00 : f32
    %105 = vector.broadcast %cst_42 : f32 to vector<4x1xf32>
    %106 = arith.maximumf %104, %105 : vector<4x1xf32>
    %107 = vector.extract_strided_slice %91 {offsets = [0, 0], sizes = [4, 1], strides = [1, 1]} : vector<4x2xf32> to vector<4x1xf32>
    %cst_43 = arith.constant 0.000000e+00 : f32
    %108 = vector.broadcast %cst_43 : f32 to vector<4x1xf32>
    %109 = arith.addf %106, %108 : vector<4x1xf32>
    %110 = math.rsqrt %109 : vector<4x1xf32>
    %111 = arith.mulf %107, %110 : vector<4x1xf32>
    %112 = vector.extract_strided_slice %91 {offsets = [0, 1], sizes = [4, 1], strides = [1, 1]} : vector<4x2xf32> to vector<4x1xf32>
    %113 = arith.mulf %99, %111 : vector<4x1xf32>
    %114 = arith.subf %112, %113 : vector<4x1xf32>
    %cst_44 = arith.constant dense<0.000000e+00> : vector<32x1xf32>
    %115 = tpu.matmul %90, %111, %cst_44 {dimension_numbers = #tpu.dot_dimension_numbers<[1], [0], [0], [1], [0, 0, 1, 1], [], []>, precision = #tpu.contract_precision<fp32>} : vector<32x4xf32>, vector<4x1xf32>, vector<32x1xf32> -> vector<32x1xf32>
    %cst_45 = arith.constant dense<0.000000e+00> : vector<32x1xf32>
    %116 = tpu.matmul %90, %114, %cst_45 {dimension_numbers = #tpu.dot_dimension_numbers<[1], [0], [0], [1], [0, 0, 1, 1], [], []>, precision = #tpu.contract_precision<fp32>} : vector<32x4xf32>, vector<4x1xf32>, vector<32x1xf32> -> vector<32x1xf32>
    %117 = vector.broadcast %115 : vector<32x1xf32> to vector<32x64xf32>
    %118 = arith.mulf %88, %117 : vector<32x64xf32>
    %119 = vector.broadcast %116 : vector<32x1xf32> to vector<32x64xf32>
    %120 = arith.addf %118, %119 : vector<32x64xf32>
    %c0_46 = arith.constant 0 : index
    %c0_47 = arith.constant 0 : index
    %121 = vector.load %arg2[%c0_46, %c0_47] : memref<16x32xf32, #tpu.memory_space<vmem>>, vector<16x32xf32>
    %cst_48 = arith.constant dense<0.000000e+00> : vector<16x64xf32>
    %122 = tpu.matmul %121, %120, %cst_48 {dimension_numbers = #tpu.dot_dimension_numbers<[1], [0], [0], [1], [0, 0, 1, 1], [], []>, precision = #tpu.contract_precision<fp32>} : vector<16x32xf32>, vector<32x64xf32>, vector<16x64xf32> -> vector<16x64xf32>
    %c0_49 = arith.constant 0 : index
    %c0_50 = arith.constant 0 : index
    %123 = vector.load %arg12[%c0_49, %c0_50] : memref<8x16xf32, #tpu.memory_space<vmem>>, vector<8x16xf32>
    %c0_51 = arith.constant 0 : index
    %c0_52 = arith.constant 0 : index
    %124 = vector.load %arg13[%c0_51, %c0_52] : memref<16x8xf32, #tpu.memory_space<vmem>>, vector<16x8xf32>
    %c0_53 = arith.constant 0 : index
    %c0_54 = arith.constant 0 : index
    %125 = vector.load %arg14[%c0_53, %c0_54] : memref<8x2xf32, #tpu.memory_space<vmem>>, vector<8x2xf32>
    %cst_55 = arith.constant dense<0.000000e+00> : vector<16xf32>
    %126 = vector.multi_reduction <add>, %122, %cst_55 [1] : vector<16x64xf32> to vector<16xf32>
    %127 = vector.shape_cast %126 : vector<16xf32> to vector<16x1xf32>
    %128 = arith.mulf %122, %122 : vector<16x64xf32>
    %cst_56 = arith.constant dense<0.000000e+00> : vector<16xf32>
    %129 = vector.multi_reduction <add>, %128, %cst_56 [1] : vector<16x64xf32> to vector<16xf32>
    %130 = vector.shape_cast %129 : vector<16xf32> to vector<16x1xf32>
    %cst_57 = arith.constant dense<0.000000e+00> : vector<8x1xf32>
    %131 = tpu.matmul %123, %127, %cst_57 {dimension_numbers = #tpu.dot_dimension_numbers<[1], [0], [0], [1], [0, 0, 1, 1], [], []>, precision = #tpu.contract_precision<fp32>} : vector<8x16xf32>, vector<16x1xf32>, vector<8x1xf32> -> vector<8x1xf32>
    %cst_58 = arith.constant 7.812500e-03 : f32
    %132 = vector.broadcast %cst_58 : f32 to vector<8x1xf32>
    %133 = arith.mulf %131, %132 : vector<8x1xf32>
    %cst_59 = arith.constant dense<0.000000e+00> : vector<8x1xf32>
    %134 = tpu.matmul %123, %130, %cst_59 {dimension_numbers = #tpu.dot_dimension_numbers<[1], [0], [0], [1], [0, 0, 1, 1], [], []>, precision = #tpu.contract_precision<fp32>} : vector<8x16xf32>, vector<16x1xf32>, vector<8x1xf32> -> vector<8x1xf32>
    %cst_60 = arith.constant 7.812500e-03 : f32
    %135 = vector.broadcast %cst_60 : f32 to vector<8x1xf32>
    %136 = arith.mulf %134, %135 : vector<8x1xf32>
    %137 = arith.mulf %133, %133 : vector<8x1xf32>
    %138 = arith.subf %136, %137 : vector<8x1xf32>
    %cst_61 = arith.constant 0.000000e+00 : f32
    %139 = vector.broadcast %cst_61 : f32 to vector<8x1xf32>
    %140 = arith.maximumf %138, %139 : vector<8x1xf32>
    %141 = vector.extract_strided_slice %125 {offsets = [0, 0], sizes = [8, 1], strides = [1, 1]} : vector<8x2xf32> to vector<8x1xf32>
    %cst_62 = arith.constant 0.000000e+00 : f32
    %142 = vector.broadcast %cst_62 : f32 to vector<8x1xf32>
    %143 = arith.addf %140, %142 : vector<8x1xf32>
    %144 = math.rsqrt %143 : vector<8x1xf32>
    %145 = arith.mulf %141, %144 : vector<8x1xf32>
    %146 = vector.extract_strided_slice %125 {offsets = [0, 1], sizes = [8, 1], strides = [1, 1]} : vector<8x2xf32> to vector<8x1xf32>
    %147 = arith.mulf %133, %145 : vector<8x1xf32>
    %148 = arith.subf %146, %147 : vector<8x1xf32>
    %cst_63 = arith.constant dense<0.000000e+00> : vector<16x1xf32>
    %149 = tpu.matmul %124, %145, %cst_63 {dimension_numbers = #tpu.dot_dimension_numbers<[1], [0], [0], [1], [0, 0, 1, 1], [], []>, precision = #tpu.contract_precision<fp32>} : vector<16x8xf32>, vector<8x1xf32>, vector<16x1xf32> -> vector<16x1xf32>
    %cst_64 = arith.constant dense<0.000000e+00> : vector<16x1xf32>
    %150 = tpu.matmul %124, %148, %cst_64 {dimension_numbers = #tpu.dot_dimension_numbers<[1], [0], [0], [1], [0, 0, 1, 1], [], []>, precision = #tpu.contract_precision<fp32>} : vector<16x8xf32>, vector<8x1xf32>, vector<16x1xf32> -> vector<16x1xf32>
    %151 = vector.broadcast %149 : vector<16x1xf32> to vector<16x64xf32>
    %152 = arith.mulf %122, %151 : vector<16x64xf32>
    %153 = vector.broadcast %150 : vector<16x1xf32> to vector<16x64xf32>
    %154 = arith.addf %152, %153 : vector<16x64xf32>
    %cst_65 = arith.constant 0.000000e+00 : f32
    %155 = vector.broadcast %cst_65 : f32 to vector<16x64xf32>
    %156 = arith.cmpf ogt, %154, %155 : vector<16x64xf32>
    %cst_66 = arith.constant 0.000000e+00 : f32
    %157 = vector.broadcast %cst_66 : f32 to vector<16x64xf32>
    %158 = arith.minimumf %154, %157 : vector<16x64xf32>
    %159 = math.exp %158 : vector<16x64xf32>
    %cst_67 = arith.constant 1.000000e+00 : f32
    %160 = vector.broadcast %cst_67 : f32 to vector<16x64xf32>
    %161 = arith.subf %159, %160 : vector<16x64xf32>
    %cst_68 = arith.constant 1.000000e+00 : f32
    %162 = vector.broadcast %cst_68 : f32 to vector<16x64xf32>
    %163 = arith.mulf %162, %161 : vector<16x64xf32>
    %164 = arith.select %156, %154, %163 : vector<16x64xi1>, vector<16x64xf32>
    %c0_69 = arith.constant 0 : index
    %c0_70 = arith.constant 0 : index
    %165 = vector.load %arg5[%c0_69, %c0_70] : memref<64x16xf32, #tpu.memory_space<vmem>>, vector<64x16xf32>
    %cst_71 = arith.constant dense<0.000000e+00> : vector<16x16xf32>
    %166 = tpu.matmul %164, %165, %cst_71 {dimension_numbers = #tpu.dot_dimension_numbers<[1], [0], [0], [1], [0, 0, 1, 1], [], []>} : vector<16x64xf32>, vector<64x16xf32>, vector<16x16xf32> -> vector<16x16xf32>
    %cst_72 = arith.constant 0.000000e+00 : f32
    %167 = vector.broadcast %cst_72 : f32 to vector<16x3xf32>
    %c0_73 = arith.constant 0 : index
    %c0_74 = arith.constant 0 : index
    %168 = vector.load %arg20[%c0_73, %c0_74] : memref<16x23xf32, #tpu.memory_space<vmem>>, vector<16x3xf32>
    tpu.vector_store %arg20[%c0_73, %c0_74], %167 {strides = array<i32>} : memref<16x23xf32, #tpu.memory_space<vmem>>, vector<16x3xf32>,
    %cst_75 = arith.constant 0.000000e+00 : f32
    %169 = vector.broadcast %cst_75 : f32 to vector<16x4xf32>
    %c0_76 = arith.constant 0 : index
    %c19 = arith.constant 19 : index
    %170 = vector.load %arg20[%c0_76, %c19] : memref<16x23xf32, #tpu.memory_space<vmem>>, vector<16x4xf32>
    tpu.vector_store %arg20[%c0_76, %c19], %169 {strides = array<i32>} : memref<16x23xf32, #tpu.memory_space<vmem>>, vector<16x4xf32>,
    %c0_77 = arith.constant 0 : index
    %c3_78 = arith.constant 3 : index
    %171 = vector.load %arg20[%c0_77, %c3_78] : memref<16x23xf32, #tpu.memory_space<vmem>>, vector<16x16xf32>
    tpu.vector_store %arg20[%c0_77, %c3_78], %166 {strides = array<i32>} : memref<16x23xf32, #tpu.memory_space<vmem>>, vector<16x16xf32>,
    %c0_79 = arith.constant 0 : index
    %c0_80 = arith.constant 0 : index
    %172 = vector.load %arg3[%c0_79, %c0_80] : memref<16x8xf32, #tpu.memory_space<vmem>>, vector<16x8xf32>
    %173 = vector.extract_strided_slice %172 {offsets = [0, 0], sizes = [16, 1], strides = [1, 1]} : vector<16x8xf32> to vector<16x1xf32>
    %c0_81 = arith.constant 0 : index
    %c0_82 = arith.constant 0 : index
    %174 = vector.load %arg20[%c0_81, %c0_82] : memref<16x23xf32, #tpu.memory_space<vmem>>, vector<16x16xf32>
    %175 = vector.broadcast %173 : vector<16x1xf32> to vector<16x16xf32>
    %176 = arith.mulf %175, %174 : vector<16x16xf32>
    %177 = vector.extract_strided_slice %172 {offsets = [0, 1], sizes = [16, 1], strides = [1, 1]} : vector<16x8xf32> to vector<16x1xf32>
    %c0_83 = arith.constant 0 : index
    %c1_84 = arith.constant 1 : index
    %178 = vector.load %arg20[%c0_83, %c1_84] : memref<16x23xf32, #tpu.memory_space<vmem>>, vector<16x16xf32>
    %179 = vector.broadcast %177 : vector<16x1xf32> to vector<16x16xf32>
    %180 = arith.mulf %179, %178 : vector<16x16xf32>
    %181 = arith.addf %176, %180 : vector<16x16xf32>
    %182 = vector.extract_strided_slice %172 {offsets = [0, 2], sizes = [16, 1], strides = [1, 1]} : vector<16x8xf32> to vector<16x1xf32>
    %c0_85 = arith.constant 0 : index
    %c2_86 = arith.constant 2 : index
    %183 = vector.load %arg20[%c0_85, %c2_86] : memref<16x23xf32, #tpu.memory_space<vmem>>, vector<16x16xf32>
    %184 = vector.broadcast %182 : vector<16x1xf32> to vector<16x16xf32>
    %185 = arith.mulf %184, %183 : vector<16x16xf32>
    %186 = arith.addf %181, %185 : vector<16x16xf32>
    %187 = vector.extract_strided_slice %172 {offsets = [0, 3], sizes = [16, 1], strides = [1, 1]} : vector<16x8xf32> to vector<16x1xf32>
    %c0_87 = arith.constant 0 : index
    %c3_88 = arith.constant 3 : index
    %188 = vector.load %arg20[%c0_87, %c3_88] : memref<16x23xf32, #tpu.memory_space<vmem>>, vector<16x16xf32>
    %189 = vector.broadcast %187 : vector<16x1xf32> to vector<16x16xf32>
    %190 = arith.mulf %189, %188 : vector<16x16xf32>
    %191 = arith.addf %186, %190 : vector<16x16xf32>
    %192 = vector.extract_strided_slice %172 {offsets = [0, 4], sizes = [16, 1], strides = [1, 1]} : vector<16x8xf32> to vector<16x1xf32>
    %c0_89 = arith.constant 0 : index
    %c4_90 = arith.constant 4 : index
    %193 = vector.load %arg20[%c0_89, %c4_90] : memref<16x23xf32, #tpu.memory_space<vmem>>, vector<16x16xf32>
    %194 = vector.broadcast %192 : vector<16x1xf32> to vector<16x16xf32>
    %195 = arith.mulf %194, %193 : vector<16x16xf32>
    %196 = arith.addf %191, %195 : vector<16x16xf32>
    %197 = vector.extract_strided_slice %172 {offsets = [0, 5], sizes = [16, 1], strides = [1, 1]} : vector<16x8xf32> to vector<16x1xf32>
    %c0_91 = arith.constant 0 : index
    %c5_92 = arith.constant 5 : index
    %198 = vector.load %arg20[%c0_91, %c5_92] : memref<16x23xf32, #tpu.memory_space<vmem>>, vector<16x16xf32>
    %199 = vector.broadcast %197 : vector<16x1xf32> to vector<16x16xf32>
    %200 = arith.mulf %199, %198 : vector<16x16xf32>
    %201 = arith.addf %196, %200 : vector<16x16xf32>
    %202 = vector.extract_strided_slice %172 {offsets = [0, 6], sizes = [16, 1], strides = [1, 1]} : vector<16x8xf32> to vector<16x1xf32>
    %c0_93 = arith.constant 0 : index
    %c6_94 = arith.constant 6 : index
    %203 = vector.load %arg20[%c0_93, %c6_94] : memref<16x23xf32, #tpu.memory_space<vmem>>, vector<16x16xf32>
    %204 = vector.broadcast %202 : vector<16x1xf32> to vector<16x16xf32>
    %205 = arith.mulf %204, %203 : vector<16x16xf32>
    %206 = arith.addf %201, %205 : vector<16x16xf32>
    %207 = vector.extract_strided_slice %172 {offsets = [0, 7], sizes = [16, 1], strides = [1, 1]} : vector<16x8xf32> to vector<16x1xf32>
    %c0_95 = arith.constant 0 : index
    %c7_96 = arith.constant 7 : index
    %208 = vector.load %arg20[%c0_95, %c7_96] : memref<16x23xf32, #tpu.memory_space<vmem>>, vector<16x16xf32>
    %209 = vector.broadcast %207 : vector<16x1xf32> to vector<16x16xf32>
    %210 = arith.mulf %209, %208 : vector<16x16xf32>
    %211 = arith.addf %206, %210 : vector<16x16xf32>
    %c0_97 = arith.constant 0 : index
    %c0_98 = arith.constant 0 : index
    %212 = vector.load %arg4[%c0_97, %c0_98] : memref<16x16xf32, #tpu.memory_space<vmem>>, vector<16x16xf32>
    %cst_99 = arith.constant dense<0.000000e+00> : vector<16x16xf32>
    %213 = tpu.matmul %212, %211, %cst_99 {dimension_numbers = #tpu.dot_dimension_numbers<[1], [0], [0], [1], [0, 0, 1, 1], [], []>, precision = #tpu.contract_precision<fp32>} : vector<16x16xf32>, vector<16x16xf32>, vector<16x16xf32> -> vector<16x16xf32>
    %c0_100 = arith.constant 0 : index
    %c0_101 = arith.constant 0 : index
    %214 = vector.load %arg15[%c0_100, %c0_101] : memref<8x16xf32, #tpu.memory_space<vmem>>, vector<8x16xf32>
    %c0_102 = arith.constant 0 : index
    %c0_103 = arith.constant 0 : index
    %215 = vector.load %arg16[%c0_102, %c0_103] : memref<16x8xf32, #tpu.memory_space<vmem>>, vector<16x8xf32>
    %c0_104 = arith.constant 0 : index
    %c0_105 = arith.constant 0 : index
    %216 = vector.load %arg17[%c0_104, %c0_105] : memref<8x2xf32, #tpu.memory_space<vmem>>, vector<8x2xf32>
    %cst_106 = arith.constant dense<0.000000e+00> : vector<16xf32>
    %217 = vector.multi_reduction <add>, %213, %cst_106 [1] : vector<16x16xf32> to vector<16xf32>
    %218 = vector.shape_cast %217 : vector<16xf32> to vector<16x1xf32>
    %219 = arith.mulf %213, %213 : vector<16x16xf32>
    %cst_107 = arith.constant dense<0.000000e+00> : vector<16xf32>
    %220 = vector.multi_reduction <add>, %219, %cst_107 [1] : vector<16x16xf32> to vector<16xf32>
    %221 = vector.shape_cast %220 : vector<16xf32> to vector<16x1xf32>
    %cst_108 = arith.constant dense<0.000000e+00> : vector<8x1xf32>
    %222 = tpu.matmul %214, %218, %cst_108 {dimension_numbers = #tpu.dot_dimension_numbers<[1], [0], [0], [1], [0, 0, 1, 1], [], []>, precision = #tpu.contract_precision<fp32>} : vector<8x16xf32>, vector<16x1xf32>, vector<8x1xf32> -> vector<8x1xf32>
    %cst_109 = arith.constant 3.125000e-02 : f32
    %223 = vector.broadcast %cst_109 : f32 to vector<8x1xf32>
    %224 = arith.mulf %222, %223 : vector<8x1xf32>
    %cst_110 = arith.constant dense<0.000000e+00> : vector<8x1xf32>
    %225 = tpu.matmul %214, %221, %cst_110 {dimension_numbers = #tpu.dot_dimension_numbers<[1], [0], [0], [1], [0, 0, 1, 1], [], []>, precision = #tpu.contract_precision<fp32>} : vector<8x16xf32>, vector<16x1xf32>, vector<8x1xf32> -> vector<8x1xf32>
    %cst_111 = arith.constant 3.125000e-02 : f32
    %226 = vector.broadcast %cst_111 : f32 to vector<8x1xf32>
    %227 = arith.mulf %225, %226 : vector<8x1xf32>
    %228 = arith.mulf %224, %224 : vector<8x1xf32>
    %229 = arith.subf %227, %228 : vector<8x1xf32>
    %cst_112 = arith.constant 0.000000e+00 : f32
    %230 = vector.broadcast %cst_112 : f32 to vector<8x1xf32>
    %231 = arith.maximumf %229, %230 : vector<8x1xf32>
    %232 = vector.extract_strided_slice %216 {offsets = [0, 0], sizes = [8, 1], strides = [1, 1]} : vector<8x2xf32> to vector<8x1xf32>
    %cst_113 = arith.constant 0.000000e+00 : f32
    %233 = vector.broadcast %cst_113 : f32 to vector<8x1xf32>
    %234 = arith.addf %231, %233 : vector<8x1xf32>
    %235 = math.rsqrt %234 : vector<8x1xf32>
    %236 = arith.mulf %232, %235 : vector<8x1xf32>
    %237 = vector.extract_strided_slice %216 {offsets = [0, 1], sizes = [8, 1], strides = [1, 1]} : vector<8x2xf32> to vector<8x1xf32>
    %238 = arith.mulf %224, %236 : vector<8x1xf32>
    %239 = arith.subf %237, %238 : vector<8x1xf32>
    %cst_114 = arith.constant dense<0.000000e+00> : vector<16x1xf32>
    %240 = tpu.matmul %215, %236, %cst_114 {dimension_numbers = #tpu.dot_dimension_numbers<[1], [0], [0], [1], [0, 0, 1, 1], [], []>, precision = #tpu.contract_precision<fp32>} : vector<16x8xf32>, vector<8x1xf32>, vector<16x1xf32> -> vector<16x1xf32>
    %cst_115 = arith.constant dense<0.000000e+00> : vector<16x1xf32>
    %241 = tpu.matmul %215, %239, %cst_115 {dimension_numbers = #tpu.dot_dimension_numbers<[1], [0], [0], [1], [0, 0, 1, 1], [], []>, precision = #tpu.contract_precision<fp32>} : vector<16x8xf32>, vector<8x1xf32>, vector<16x1xf32> -> vector<16x1xf32>
    %242 = vector.broadcast %240 : vector<16x1xf32> to vector<16x16xf32>
    %243 = arith.mulf %213, %242 : vector<16x16xf32>
    %244 = vector.broadcast %241 : vector<16x1xf32> to vector<16x16xf32>
    %245 = arith.addf %243, %244 : vector<16x16xf32>
    %cst_116 = arith.constant 0.000000e+00 : f32
    %246 = vector.broadcast %cst_116 : f32 to vector<16x16xf32>
    %247 = arith.cmpf ogt, %245, %246 : vector<16x16xf32>
    %cst_117 = arith.constant 0.000000e+00 : f32
    %248 = vector.broadcast %cst_117 : f32 to vector<16x16xf32>
    %249 = arith.minimumf %245, %248 : vector<16x16xf32>
    %250 = math.exp %249 : vector<16x16xf32>
    %cst_118 = arith.constant 1.000000e+00 : f32
    %251 = vector.broadcast %cst_118 : f32 to vector<16x16xf32>
    %252 = arith.subf %250, %251 : vector<16x16xf32>
    %cst_119 = arith.constant 1.000000e+00 : f32
    %253 = vector.broadcast %cst_119 : f32 to vector<16x16xf32>
    %254 = arith.mulf %253, %252 : vector<16x16xf32>
    %255 = arith.select %247, %245, %254 : vector<16x16xi1>, vector<16x16xf32>
    %c0_120 = arith.constant 0 : index
    %c0_121 = arith.constant 0 : index
    %256 = vector.load %arg6[%c0_120, %c0_121] : memref<16x2xf32, #tpu.memory_space<vmem>>, vector<16x2xf32>
    %cst_122 = arith.constant dense<0.000000e+00> : vector<16x2xf32>
    %257 = tpu.matmul %255, %256, %cst_122 {dimension_numbers = #tpu.dot_dimension_numbers<[1], [0], [0], [1], [0, 0, 1, 1], [], []>} : vector<16x16xf32>, vector<16x2xf32>, vector<16x2xf32> -> vector<16x2xf32>
    %258 = vector.extract_strided_slice %257 {offsets = [0, 0], sizes = [2, 2], strides = [1, 1]} : vector<16x2xf32> to vector<2x2xf32>
    %c0_123 = arith.constant 0 : index
    %c0_124 = arith.constant 0 : index
    %259 = vector.load %arg21[%c0_123, %c0_124] : memref<2x16xf32, #tpu.memory_space<vmem>>, vector<2x2xf32>
    tpu.vector_store %arg21[%c0_123, %c0_124], %258 {strides = array<i32>} : memref<2x16xf32, #tpu.memory_space<vmem>>, vector<2x2xf32>,
    %260 = vector.extract_strided_slice %257 {offsets = [2, 0], sizes = [2, 2], strides = [1, 1]} : vector<16x2xf32> to vector<2x2xf32>
    %c0_125 = arith.constant 0 : index
    %c2_126 = arith.constant 2 : index
    %261 = vector.load %arg21[%c0_125, %c2_126] : memref<2x16xf32, #tpu.memory_space<vmem>>, vector<2x2xf32>
    tpu.vector_store %arg21[%c0_125, %c2_126], %260 {strides = array<i32>} : memref<2x16xf32, #tpu.memory_space<vmem>>, vector<2x2xf32>,
    %262 = vector.extract_strided_slice %257 {offsets = [4, 0], sizes = [2, 2], strides = [1, 1]} : vector<16x2xf32> to vector<2x2xf32>
    %c0_127 = arith.constant 0 : index
    %c4_128 = arith.constant 4 : index
    %263 = vector.load %arg21[%c0_127, %c4_128] : memref<2x16xf32, #tpu.memory_space<vmem>>, vector<2x2xf32>
    tpu.vector_store %arg21[%c0_127, %c4_128], %262 {strides = array<i32>} : memref<2x16xf32, #tpu.memory_space<vmem>>, vector<2x2xf32>,
    %264 = vector.extract_strided_slice %257 {offsets = [6, 0], sizes = [2, 2], strides = [1, 1]} : vector<16x2xf32> to vector<2x2xf32>
    %c0_129 = arith.constant 0 : index
    %c6_130 = arith.constant 6 : index
    %265 = vector.load %arg21[%c0_129, %c6_130] : memref<2x16xf32, #tpu.memory_space<vmem>>, vector<2x2xf32>
    tpu.vector_store %arg21[%c0_129, %c6_130], %264 {strides = array<i32>} : memref<2x16xf32, #tpu.memory_space<vmem>>, vector<2x2xf32>,
    %266 = vector.extract_strided_slice %257 {offsets = [8, 0], sizes = [2, 2], strides = [1, 1]} : vector<16x2xf32> to vector<2x2xf32>
    %c0_131 = arith.constant 0 : index
    %c8_132 = arith.constant 8 : index
    %267 = vector.load %arg21[%c0_131, %c8_132] : memref<2x16xf32, #tpu.memory_space<vmem>>, vector<2x2xf32>
    tpu.vector_store %arg21[%c0_131, %c8_132], %266 {strides = array<i32>} : memref<2x16xf32, #tpu.memory_space<vmem>>, vector<2x2xf32>,
    %268 = vector.extract_strided_slice %257 {offsets = [10, 0], sizes = [2, 2], strides = [1, 1]} : vector<16x2xf32> to vector<2x2xf32>
    %c0_133 = arith.constant 0 : index
    %c10_134 = arith.constant 10 : index
    %269 = vector.load %arg21[%c0_133, %c10_134] : memref<2x16xf32, #tpu.memory_space<vmem>>, vector<2x2xf32>
    tpu.vector_store %arg21[%c0_133, %c10_134], %268 {strides = array<i32>} : memref<2x16xf32, #tpu.memory_space<vmem>>, vector<2x2xf32>,
    %270 = vector.extract_strided_slice %257 {offsets = [12, 0], sizes = [2, 2], strides = [1, 1]} : vector<16x2xf32> to vector<2x2xf32>
    %c0_135 = arith.constant 0 : index
    %c12_136 = arith.constant 12 : index
    %271 = vector.load %arg21[%c0_135, %c12_136] : memref<2x16xf32, #tpu.memory_space<vmem>>, vector<2x2xf32>
    tpu.vector_store %arg21[%c0_135, %c12_136], %270 {strides = array<i32>} : memref<2x16xf32, #tpu.memory_space<vmem>>, vector<2x2xf32>,
    %272 = vector.extract_strided_slice %257 {offsets = [14, 0], sizes = [2, 2], strides = [1, 1]} : vector<16x2xf32> to vector<2x2xf32>
    %c0_137 = arith.constant 0 : index
    %c14_138 = arith.constant 14 : index
    %273 = vector.load %arg21[%c0_137, %c14_138] : memref<2x16xf32, #tpu.memory_space<vmem>>, vector<2x2xf32>
    tpu.vector_store %arg21[%c0_137, %c14_138], %272 {strides = array<i32>} : memref<2x16xf32, #tpu.memory_space<vmem>>, vector<2x2xf32>,
    %c0_139 = arith.constant 0 : index
    %c0_140 = arith.constant 0 : index
    %274 = vector.load %arg21[%c0_139, %c0_140] : memref<2x16xf32, #tpu.memory_space<vmem>>, vector<2x16xf32>
    %c0_141 = arith.constant 0 : index
    %c0_142 = arith.constant 0 : index
    %275 = vector.load %arg7[%c0_141, %c0_142] : memref<16x4xf32, #tpu.memory_space<vmem>>, vector<16x4xf32>
    %cst_143 = arith.constant dense<0.000000e+00> : vector<2x4xf32>
    %276 = tpu.matmul %274, %275, %cst_143 {dimension_numbers = #tpu.dot_dimension_numbers<[1], [0], [0], [1], [0, 0, 1, 1], [], []>, precision = #tpu.contract_precision<fp32>} : vector<2x16xf32>, vector<16x4xf32>, vector<2x4xf32> -> vector<2x4xf32>
    %c0_144 = arith.constant 0 : index
    %c0_145 = arith.constant 0 : index
    %277 = vector.load %arg8[%c0_144, %c0_145] : memref<1x4xf32, #tpu.memory_space<vmem>>, vector<1x4xf32>
    %278 = vector.broadcast %277 : vector<1x4xf32> to vector<2x4xf32>
    %279 = arith.addf %276, %278 : vector<2x4xf32>
    %c0_146 = arith.constant 0 : index
    %c0_147 = arith.constant 0 : index
    %280 = vector.load %arg18[%c0_146, %c0_147] : memref<2x4xf32, #tpu.memory_space<vmem>>, vector<2x4xf32>
    tpu.vector_store %arg18[%c0_146, %c0_147], %279 {strides = array<i32>} : memref<2x4xf32, #tpu.memory_space<vmem>>, vector<2x4xf32>,
    return
  }
}

</mosaic_0001>

<bundles_post_ra>
// kernel: tpu_custom_call.1
= control target key start
LH: loop header
LB: loop body
LE: loop exit
PB: predicated region body
PF: predicated region fallthrough
CT: control target
= control target key end

     0   :  { %s11670_s0 = inlined_call_operand.vmem [shape: f32[8,64], index: 0, kind: input, shape index: {}]   ;;  %s11671_s1 = inlined_call_operand.vmem [shape: f32[32,16], index: 1, kind: input, shape index: {}]   ;;  %s11672_s2 = inlined_call_operand.vmem [shape: f32[16,32], index: 2, kind: input, shape index: {}]   ;;  %s11673_s3 = inlined_call_operand.vmem [shape: f32[16,8], index: 3, kind: input, shape index: {}]   ;;  %s11674_s4 = inlined_call_operand.vmem [shape: f32[16,16], index: 4, kind: input, shape index: {}]   ;;  %s11675_s5 = inlined_call_operand.vmem [shape: f32[64,16], index: 5, kind: input, shape index: {}]   ;;  %s11676_s6 = inlined_call_operand.vmem [shape: f32[16,2], index: 6, kind: input, shape index: {}]   ;;  %s11677_s7 = inlined_call_operand.vmem [shape: f32[16,4], index: 7, kind: input, shape index: {}]   ;;  %s11678_s8 = inlined_call_operand.vmem [shape: f32[1,4], index: 8, kind: input, shape index: {}]   ;;  %s11679_s9 = inlined_call_operand.vmem [shape: f32[4,32], index: 9, kind: input, shape index: {}]   ;;  %s11680_s10 = inlined_call_operand.vmem [shape: f32[32,4], index: 10, kind: input, shape index: {}]   ;;  %s11681_s11 = inlined_call_operand.vmem [shape: f32[4,2], index: 11, kind: input, shape index: {}]   ;;  %s11682_s12 = inlined_call_operand.vmem [shape: f32[8,16], index: 12, kind: input, shape index: {}]   ;;  %s11683_s13 = inlined_call_operand.vmem [shape: f32[16,8], index: 13, kind: input, shape index: {}]   ;;  %s11684_s14 = inlined_call_operand.vmem [shape: f32[8,2], index: 14, kind: input, shape index: {}]   ;;  %s11685_s15 = inlined_call_operand.vmem [shape: f32[8,16], index: 15, kind: input, shape index: {}]   ;;  %s11686_s16 = inlined_call_operand.vmem [shape: f32[16,8], index: 16, kind: input, shape index: {}]   ;;  %s11687_s17 = inlined_call_operand.vmem [shape: f32[8,2], index: 17, kind: input, shape index: {}]   ;;  %s11688_s18 = inlined_call_operand.hbm [shape: f32[2,4], index: 18, kind: output, shape index: {}]  }
   0x1   :  { %11698 = sst [smem:[#allocation8_spill]] %s11670_s0 }
   0x2   :  { %11699 = sst [smem:[#allocation9_spill]] %s11671_s1 }
   0x3   :  { %11700 = sst [smem:[#allocation10_spill]] %s11672_s2 }
   0x4   :  { %11701 = sst [smem:[#allocation11_spill]] %s11678_s8 }
   0x5   :  { %s11702_s29 = sld [smem:[#allocation8_spill]]  ;;  %s11703_s8 = sld [smem:[#allocation9_spill]]  ;;  %v10450_v2 = vmov 1  }
   0x6   :  { %10356 = vset.pattern.permute.xlu1 %v10450_v2  ;;  %s10451_s19 = smov 7   ;;  %10355 = vset.pattern.permute.xlu0 %v10450_v2 }
   0xb   :  { %v60_v0 = vld [vmem:[%s11702_s29] sm:$0xff]  ;;  %v10596_v1 = vld [vmem:[%s11703_s8 + $0x8] sm:$0xff] }
   0xc   :  { %72 = vrot.lane.b32.xlu0 %v60_v0, %s10451_s19  ;;  %117 = vperm.xlu1 %10356, %v10596_v1   ;;  %v10604_v3 = vld [vmem:[%s11703_s8] sm:$0xff] }
   0xd   :  { %23 = vsyncpa [#allocation6], 0  ;;  %vm61_vm0 = vcmask 56320   ;;  %vm66_vm1 = vcmask 646712   ;;  %v10452_v4 = vmov 0.0   ;;  %v10453_v5 = vmov 2  }
   0xe   :  { %62 = vst.msk [vmem:[#allocation2] sm:$0xff] %vm61_vm0, %v10452_v4  ;;  %63 = vst.msk [vmem:[#allocation2 + $0x8] sm:$0xff] %vm61_vm0, %v10452_v4  ;;  %v10615_v6 = vld [vmem:[%s11703_s8 + $0x10] sm:$0xff]  ;;  %v10627_v7 = vld [vmem:[%s11703_s8 + $0x18] sm:$0xff]  ;;  %v10454_v8 = vmov 3   ;;  %v11697_v9 = vmov 5  }
   0xf   :  { %64 = vst.msk [vmem:[#allocation2 + $0x10] sm:$0xff] %vm61_vm0, %v10452_v4  ;;  %65 = vst.msk [vmem:[#allocation2 + $0x18] sm:$0xff] %vm61_vm0, %v10452_v4  ;;  %v10456_v10 = vmov 4   ;;  %v11695_v11 = vmov 6   ;;  %v10458_v12 = vmov 8   ;;  %v10459_v13 = vmov 9  }
  0x10   :  { %113 = vperm.xlu0 %10355, %v10604_v3   ;;  %10357 = vset.pattern.permute.xlu1 %v10453_v5  ;;  %67 = vst.msk [vmem:[#allocation2] sm:$0xff] %vm66_vm1, %v10452_v4  ;;  %68 = vst.msk [vmem:[#allocation2 + $0x8] sm:$0xff] %vm66_vm1, %v10452_v4  ;;  %v10460_v14 = vmov 11   ;;  %v11693_v15 = vmov 7   ;;  %v10462_v16 = vmov 12   ;;  %v10463_v17 = vmov 15  }
  0x11   :  { %69 = vst.msk [vmem:[#allocation2 + $0x10] sm:$0xff] %vm66_vm1, %v10452_v4  ;;  %70 = vst.msk [vmem:[#allocation2 + $0x18] sm:$0xff] %vm66_vm1, %v10452_v4  ;;  %153 = vperm.xlu1 %10357, %v10604_v3   ;;  %v10464_v18 = vmov 14   ;;  %v11691_v19 = vmov 0   ;;  %v10466_v20 = vmov 10   ;;  %vm75_vm2 = vcmask 580664  }
  0x12   :  { %s10467_s8 = smov 127   ;;  %s10468_s24 = smov 126   ;;  %v10469_v32 = vmov 13   ;;  %vm718_vm3 = vcmask 523264   ;;  %vm10484_vm4 = vmmov 0   ;;  %vm747_vm5 = vcmask 261120  }
  0x13   :  { %s10470_s25 = smov 125   ;;  %s10471_s26 = smov 124   ;;  %9202 = vmatprep.mubr.msk.f32.mxu1 %vm10484_vm4, %v10452_v4  ;;  %9213 = vmatprep.mubr.msk.f32.mxu0 %vm10484_vm4, %v10452_v4  ;;  %vm1735_vm6 = vcmask 31744   ;;  %vm1748_vm7 = vcmask 1043456   ;;  %vm3509_vm8 = vcmask 130048   ;;  %vm4445_vm9 = vcmask 64512  }
  0x14   :  { %121 = vperm.xlu0 %10355, %v10615_v6   ;;  %s10472_s27 = smov 123   ;;  %s10473_s28 = smov 122   ;;  %vm5559_vm12 = vcmask 23552   ;;  %vm5562_vm13 = vcmask 187544   ;;  %vm5573_vm14 = vcmask 154648   ;;  %vm8302_vm1 = vcmask 9216  }
  0x15   :  { %157 = vperm.xlu1 %10357, %v10596_v1   ;;  %s10474_s29 = smov 121   ;;  %s10475_s30 = smov 120   ;;  %5561 = vst.msk [vmem:[#allocation3 + $0x8] sm:$0xff] %vm5559_vm12, %v10452_v4  ;;  %5560 = vst.msk [vmem:[#allocation3] sm:$0xff] %vm5559_vm12, %v10452_v4 }
  0x16   :  { %s10476_s0 = smov 119   ;;  %s10477_s19 = smov 118   ;;  %5564 = vst.msk [vmem:[#allocation3 + $0x8] sm:$0xff] %vm5562_vm13, %v10452_v4  ;;  %5563 = vst.msk [vmem:[#allocation3] sm:$0xff] %vm5562_vm13, %v10452_v4 }
  0x17   :  { %s10478_s1 = smov 117   ;;  %s10479_s20 = smov 116  }
  0x18   :  { %10361 = vset.pattern.permute.xlu0 %v10453_v5  ;;  %s10480_s21 = smov 115   ;;  %s10481_s22 = smov 114  }
  0x19   :  { %165 = vperm.xlu0 %10361, %v10627_v7   ;;  %10358 = vset.pattern.permute.xlu1 %v10450_v2  ;;  %s10482_s2 = smov 113   ;;  %s10487_s23 = smov 10  }
  0x1a   :  { %125 = vperm.xlu1 %10358, %v10627_v7  }
  0x1d   :  { %10362 = vset.pattern.permute.xlu0 %v10454_v8 }
  0x1e   :  { %193 = vperm.xlu0 %10362, %v10604_v3   ;;  %10359 = vset.pattern.permute.xlu1 %v10454_v8 }
  0x1f   :  { %197 = vperm.xlu1 %10359, %v10596_v1  }
  0x22   :  { %201 = vperm.xlu0 %10362, %v10615_v6  }
  0x23   :  { %10360 = vset.pattern.permute.xlu1 %v10453_v5 }
  0x24   :  { %161 = vperm.xlu1 %10360, %v10615_v6  }
  0x26   :  { %10366 = vset.pattern.permute.xlu0 %v11697_v9 }
  0x27   :  { %277 = vperm.xlu0 %10366, %v10596_v1  }
  0x28   :  { %10363 = vset.pattern.permute.xlu1 %v10456_v10 }
  0x29   :  { %233 = vperm.xlu1 %10363, %v10604_v3  }
  0x2b   :  { %285 = vperm.xlu0 %10366, %v10627_v7  }
  0x2d   :  { %237 = vperm.xlu1 %10363, %v10596_v1  }
  0x2f   :  { %10370 = vset.pattern.permute.xlu0 %v11695_v11 }
  0x30   :  { %313 = vperm.xlu0 %10370, %v10604_v3  }
  0x31   :  { %10364 = vset.pattern.permute.xlu1 %v10454_v8 }
  0x32   :  { %205 = vperm.xlu1 %10364, %v10627_v7  }
  0x34   :  { %321 = vperm.xlu0 %10370, %v10615_v6  }
  0x36   :  { %10365 = vset.pattern.permute.xlu1 %v11697_v9 }
  0x37   :  { %273 = vperm.xlu1 %10365, %v10604_v3  }
  0x38   :  { %10374 = vset.pattern.permute.xlu0 %v10458_v12 }
  0x39   :  { %397 = vperm.xlu0 %10374, %v10596_v1  }
  0x3b   :  { %10367 = vset.pattern.permute.xlu1 %v10456_v10 }
  0x3c   :  { %241 = vperm.xlu1 %10367, %v10615_v6  }
  0x3d   :  { %405 = vperm.xlu0 %10374, %v10627_v7  }
  0x40   :  { %245 = vperm.xlu1 %10367, %v10627_v7  }
  0x41   :  { %10378 = vset.pattern.permute.xlu0 %v10459_v13 }
  0x42   :  { %433 = vperm.xlu0 %10378, %v10604_v3  }
  0x44   :  { %10368 = vset.pattern.permute.xlu1 %v11695_v11 }
  0x45   :  { %317 = vperm.xlu1 %10368, %v10596_v1  }
  0x46   :  { %441 = vperm.xlu0 %10378, %v10615_v6  }
  0x49   :  { %10369 = vset.pattern.permute.xlu1 %v11697_v9 }
  0x4a   :  { %10382 = vset.pattern.permute.xlu0 %v10460_v14  ;;  %281 = vperm.xlu1 %10369, %v10615_v6  }
  0x4b   :  { %517 = vperm.xlu0 %10382, %v10596_v1  }
  0x4e   :  { %10371 = vset.pattern.permute.xlu1 %v11693_v15 }
  0x4f   :  { %525 = vperm.xlu0 %10382, %v10627_v7   ;;  %353 = vperm.xlu1 %10371, %v10604_v3  }
  0x53   :  { %10386 = vset.pattern.permute.xlu0 %v10462_v16  ;;  %357 = vperm.xlu1 %10371, %v10596_v1  }
  0x54   :  { %553 = vperm.xlu0 %10386, %v10604_v3  }
  0x57   :  { %10372 = vset.pattern.permute.xlu1 %v11695_v11 }
  0x58   :  { %561 = vperm.xlu0 %10386, %v10615_v6   ;;  %325 = vperm.xlu1 %10372, %v10627_v7  }
  0x5c   :  { %10391 = vset.pattern.permute.xlu0 %v10463_v17  ;;  %10373 = vset.pattern.permute.xlu1 %v10458_v12 }
  0x5d   :  { %673 = vperm.xlu0 %10391, %v10604_v3   ;;  %393 = vperm.xlu1 %10373, %v10604_v3  }
  0x61   :  { %10392 = vset.pattern.permute.xlu0 %v10464_v18  ;;  %10375 = vset.pattern.permute.xlu1 %v11693_v15 }
  0x62   :  { %637 = vperm.xlu0 %10392, %v10596_v1   ;;  %361 = vperm.xlu1 %10375, %v10615_v6  }
  0x66   :  { %645 = vperm.xlu0 %10392, %v10627_v7   ;;  %365 = vperm.xlu1 %10375, %v10627_v7  }
  0x6a   :  { %10396 = vset.pattern.permute.xlu0 %v11691_v19  ;;  %10376 = vset.pattern.permute.xlu1 %v10459_v13 }
  0x6b   :  { %90 = vperm.xlu0 %10396, %v10604_v3   ;;  %437 = vperm.xlu1 %10376, %v10596_v1  }
  0x6f   :  { %105 = vperm.xlu0 %10396, %v10627_v7   ;;  %10377 = vset.pattern.permute.xlu1 %v10458_v12 }
  0x70   :  { %401 = vperm.xlu1 %10377, %v10615_v6  }
  0x74   :  { %10379 = vset.pattern.permute.xlu1 %v10466_v20 }
  0x75   :  { %473 = vperm.xlu1 %10379, %v10604_v3  }
  0x79   :  { %477 = vperm.xlu1 %10379, %v10596_v1  }
  0x7d   :  { %10380 = vset.pattern.permute.xlu1 %v10459_v13 }
  0x7e   :  { %v73_v21 = vpop.permute.xlu0 %72  ;;  %445 = vperm.xlu1 %10380, %v10627_v7  }
  0x7f   :  { %76 = vst.msk [vmem:[#allocation2] sm:$0xff] %vm75_vm2, %v73_v21  ;;  %77 = vst.msk [vmem:[#allocation2 + $0x8] sm:$0xff] %vm75_vm2, %v73_v21 }
  0x80   :  { %78 = vst.msk [vmem:[#allocation2 + $0x10] sm:$0xff] %vm75_vm2, %v73_v21  ;;  %79 = vst.msk [vmem:[#allocation2 + $0x18] sm:$0xff] %vm75_vm2, %v73_v21  ;;  %vm8308_vm2 = vcmask 27666  }
  0x82   :  { %10381 = vset.pattern.permute.xlu1 %v10460_v14 }
  0x83   :  { %513 = vperm.xlu1 %10381, %v10604_v3  }
  0x86   :  { %v10695_v22 = vld [vmem:[#allocation2 + $0x8] sm:$0xff]  ;;  %v10761_v59 = vld [vmem:[#allocation2] sm:$0xff] }
  0x87   :  { %10383 = vset.pattern.permute.xlu1 %v10466_v20  ;;  %v10709_v29 = vld [vmem:[#allocation2 + $0x18] sm:$0xff] }
  0x88   :  { %481 = vperm.xlu1 %10383, %v10615_v6  }
  0x8b   :  { %v118_v23 = vpop.permute.xlu1 %117 }
  0x8c   :  { %v129_v24 = vmul.f32 %v118_v23, %v10695_v22  ;;  %485 = vperm.xlu1 %10383, %v10627_v7  }
  0x8e   :  { %138 = vrot.lane.b32.xlu0 %v129_v24, %s10467_s8 }
  0x8f   :  { %v10704_v27 = vpop.permute.xlu0 %113 }
  0x90   :  { %10384 = vset.pattern.permute.xlu1 %v10462_v16  ;;  %v10701_v25 = vpop.permute.xlu1 %153  ;;  %v128_v60 = vmul.f32 %v10704_v27, %v10761_v59 }
  0x91   :  { %557 = vperm.xlu1 %10384, %v10596_v1  }
  0x93   :  { %v10713_v33 = vpop.permute.xlu0 %121 }
  0x94   :  { %v158_v26 = vpop.permute.xlu1 %157 }
  0x95   :  { %v169_v28 = vmul.f32 %v158_v26, %v10695_v22  ;;  %10385 = vset.pattern.permute.xlu1 %v10460_v14 }
  0x96   :  { %521 = vperm.xlu1 %10385, %v10615_v6  }
  0x97   :  { %178 = vrot.lane.b32.xlu0 %v169_v28, %s10468_s24 }
  0x98   :  { %v166_v36 = vpop.permute.xlu0 %165 }
  0x99   :  { %v126_v30 = vpop.permute.xlu1 %125  ;;  %v171_v37 = vmul.f32 %v166_v36, %v10709_v29 }
  0x9a   :  { %v131_v31 = vmul.f32 %v126_v30, %v10709_v29  ;;  %10387 = vset.pattern.permute.xlu1 %v10469_v32 }
  0x9b   :  { %593 = vperm.xlu1 %10387, %v10604_v3  }
  0x9c   :  { %142 = vrot.lane.b32.xlu0 %v131_v31, %s10467_s8 }
  0x9d   :  { %v194_v39 = vpop.permute.xlu0 %193 }
  0x9e   :  { %v198_v34 = vpop.permute.xlu1 %197  ;;  %v208_v14 = vmul.f32 %v194_v39, %v10761_v59 }
  0x9f   :  { %v209_v35 = vmul.f32 %v198_v34, %v10695_v22  ;;  %597 = vperm.xlu1 %10387, %v10596_v1  }
  0xa1   :  { %218 = vrot.lane.b32.xlu0 %v209_v35, %s10470_s25  ;;  %v10730_v42 = vpop.permute.xlu0 %201 }
  0xa3   :  { %10388 = vset.pattern.permute.xlu1 %v10462_v16  ;;  %v10722_v38 = vpop.permute.xlu1 %161 }
  0xa4   :  { %565 = vperm.xlu1 %10388, %v10627_v7  }
  0xa5   :  { %182 = vrot.lane.b32.xlu0 %v171_v37, %s10468_s24 }
  0xa6   :  { %v278_v46 = vpop.permute.xlu0 %277 }
  0xa7   :  { %v289_v47 = vmul.f32 %v278_v46, %v10695_v22 }
  0xa8   :  { %10389 = vset.pattern.permute.xlu1 %v10464_v18  ;;  %v10727_v40 = vpop.permute.xlu1 %233 }
  0xa9   :  { %633 = vperm.xlu1 %10389, %v10604_v3   ;;  %v168_v3 = vmul.f32 %v10701_v25, %v10761_v59  ;;  %v248_v24 = vmul.f32 %v10727_v40, %v10761_v59 }
  0xaa   :  { %v286_v50 = vpop.permute.xlu0 %285 }
  0xab   :  { %v291_v56 = vmul.f32 %v286_v50, %v10709_v29 }
  0xac   :  { %v238_v41 = vpop.permute.xlu1 %237 }
  0xad   :  { %v249_v43 = vmul.f32 %v238_v41, %v10695_v22  ;;  %10390 = vset.pattern.permute.xlu1 %v10469_v32 }
  0xae   :  { %601 = vperm.xlu1 %10390, %v10615_v6  }
  0xaf   :  { %258 = vrot.lane.b32.xlu0 %v249_v43, %s10471_s26  ;;  %v314_v53 = vpop.permute.xlu0 %313 }
  0xb0   :  { %v328_v37 = vmul.f32 %v314_v53, %v10761_v59 }
  0xb1   :  { %v206_v44 = vpop.permute.xlu1 %205 }
  0xb2   :  { %v211_v45 = vmul.f32 %v206_v44, %v10709_v29  ;;  %605 = vperm.xlu1 %10390, %v10627_v7  }
  0xb3   :  { %v10757_v58 = vpop.permute.xlu0 %321 }
  0xb4   :  { %222 = vrot.lane.b32.xlu0 %v211_v45, %s10470_s25 }
  0xb6   :  { %10393 = vset.pattern.permute.xlu1 %v10463_v17  ;;  %v10740_v48 = vpop.permute.xlu1 %273 }
  0xb7   :  { %677 = vperm.xlu1 %10393, %v10596_v1   ;;  %v288_v32 = vmul.f32 %v10740_v48, %v10761_v59 }
  0xb8   :  { %298 = vrot.lane.b32.xlu0 %v289_v47, %s10472_s27  ;;  %v398_v62 = vpop.permute.xlu0 %397 }
  0xb9   :  { %v409_v16 = vmul.f32 %v398_v62, %v10695_v22 }
  0xbb   :  { %10394 = vset.pattern.permute.xlu1 %v10464_v18  ;;  %v10745_v49 = vpop.permute.xlu1 %241 }
  0xbc   :  { %641 = vperm.xlu1 %10394, %v10615_v6  }
  0xbf   :  { %v246_v51 = vpop.permute.xlu1 %245 }
  0xc0   :  { %v251_v52 = vmul.f32 %v246_v51, %v10709_v29  ;;  %10395 = vset.pattern.permute.xlu1 %v10463_v17 }
  0xc1   :  { %681 = vperm.xlu1 %10395, %v10615_v6  }
  0xc2   :  { %262 = vrot.lane.b32.xlu0 %v251_v52, %s10471_s26 }
  0xc4   :  { %v318_v54 = vpop.permute.xlu1 %317 }
  0xc5   :  { %v329_v55 = vmul.f32 %v318_v54, %v10695_v22  ;;  %685 = vperm.xlu1 %10395, %v10627_v7   ;;  %v10772_v7 = vld [vmem:[#allocation2 + $0x10] sm:$0xff] }
  0xc6   :  { %v170_v20 = vmul.f32 %v10722_v38, %v10772_v7  ;;  %v210_v27 = vmul.f32 %v10730_v42, %v10772_v7  ;;  %v250_v36 = vmul.f32 %v10745_v49, %v10772_v7  ;;  %v330_v47 = vmul.f32 %v10757_v58, %v10772_v7 }
  0xc7   :  { %338 = vrot.lane.b32.xlu0 %v329_v55, %s10473_s28 }
  0xc9   :  { %10397 = vset.pattern.permute.xlu1 %v11691_v19  ;;  %v282_v57 = vpop.permute.xlu1 %281 }
  0xca   :  { %95 = vperm.xlu1 %10397, %v10596_v1   ;;  %v406_v1 = vpop.permute.xlu0 %405  ;;  %v290_v40 = vmul.f32 %v282_v57, %v10772_v7 }
  0xcb   :  { %302 = vrot.lane.b32.xlu0 %v291_v56, %s10472_s27  ;;  %v411_v34 = vmul.f32 %v406_v1, %v10709_v29 }
  0xce   :  { %100 = vperm.xlu1 %10397, %v10615_v6   ;;  %v354_v61 = vpop.permute.xlu1 %353  ;;  %v130_v6 = vmul.f32 %v10713_v33, %v10772_v7  ;;  %v434_v17 = vpop.permute.xlu0 %433 }
  0xcf   :  { %v368_v44 = vmul.f32 %v354_v61, %v10761_v59  ;;  %v448_v56 = vmul.f32 %v434_v17, %v10761_v59 }
  0xd2   :  { %v358_v63 = vpop.permute.xlu1 %357  ;;  %136 = vrot.lane.b32.xlu1 %v128_v60, %s10467_s8  ;;  %v10785_v23 = vpop.permute.xlu0 %441 }
  0xd3   :  { %v369_v0 = vmul.f32 %v358_v63, %v10695_v22 }
  0xd5   :  { %378 = vrot.lane.b32.xlu0 %v369_v0, %s10474_s29 }
  0xd6   :  { %176 = vrot.lane.b32.xlu1 %v168_v3, %s10468_s24  ;;  %v518_v28 = vpop.permute.xlu0 %517 }
  0xd7   :  { %v326_v12 = vpop.permute.xlu1 %325  ;;  %v529_v49 = vmul.f32 %v518_v28, %v10695_v22 }
  0xd8   :  { %v331_v13 = vmul.f32 %v326_v12, %v10709_v29  ;;  %v450_v12 = vmul.f32 %v10785_v23, %v10772_v7 }
  0xda   :  { %140 = vrot.lane.b32.xlu1 %v130_v6, %s10467_s8  ;;  %342 = vrot.lane.b32.xlu0 %v331_v13, %s10473_s28  ;;  %v526_v33 = vpop.permute.xlu0 %525 }
  0xdb   :  { %v531_v3 = vmul.f32 %v526_v33, %v10709_v29 }
  0xdc   :  { %v394_v18 = vpop.permute.xlu1 %393 }
  0xdd   :  { %v408_v51 = vmul.f32 %v394_v18, %v10761_v59 }
  0xde   :  { %216 = vrot.lane.b32.xlu1 %v208_v14, %s10470_s25  ;;  %418 = vrot.lane.b32.xlu0 %v409_v16, %s10475_s30  ;;  %v554_v38 = vpop.permute.xlu0 %553 }
  0xe1   :  { %v362_v21 = vpop.permute.xlu1 %361 }
  0xe2   :  { %180 = vrot.lane.b32.xlu1 %v170_v20, %s10468_s24  ;;  %v10810_v43 = vpop.permute.xlu0 %561  ;;  %v370_v54 = vmul.f32 %v362_v21, %v10772_v7 }
  0xe5   :  { %v366_v25 = vpop.permute.xlu1 %365 }
  0xe6   :  { %v371_v26 = vmul.f32 %v366_v25, %v10709_v29  ;;  %256 = vrot.lane.b32.xlu1 %v248_v24, %s10471_s26  ;;  %v10819_v48 = vpop.permute.xlu0 %673  ;;  %v568_v24 = vmul.f32 %v554_v38, %v10761_v59 }
  0xe8   :  { %382 = vrot.lane.b32.xlu0 %v371_v26, %s10474_s29 }
  0xea   :  { %v438_v30 = vpop.permute.xlu1 %437  ;;  %220 = vrot.lane.b32.xlu1 %v210_v27, %s10470_s25  ;;  %v638_v52 = vpop.permute.xlu0 %637 }
  0xeb   :  { %v449_v31 = vmul.f32 %v438_v30, %v10695_v22  ;;  %v649_v27 = vmul.f32 %v638_v52, %v10695_v22 }
  0xed   :  { %458 = vrot.lane.b32.xlu0 %v449_v31, %s10476_s0 }
  0xee   :  { %296 = vrot.lane.b32.xlu1 %v288_v32, %s10472_s27  ;;  %v646_v57 = vpop.permute.xlu0 %645 }
  0xef   :  { %v402_v35 = vpop.permute.xlu1 %401 }
  0xf0   :  { %v410_v60 = vmul.f32 %v402_v35, %v10772_v7 }
  0xf1   :  { %422 = vrot.lane.b32.xlu0 %v411_v34, %s10475_s30  ;;  %v570_v34 = vmul.f32 %v10810_v43, %v10772_v7  ;;  %v651_v43 = vmul.f32 %v646_v57, %v10709_v29 }
  0xf2   :  { %260 = vrot.lane.b32.xlu1 %v250_v36, %s10471_s26  ;;  %v10835_v63 = vpop.permute.xlu0 %90 }
  0xf4   :  { %v474_v39 = vpop.permute.xlu1 %473 }
  0xf5   :  { %v488_v0 = vmul.f32 %v474_v39, %v10761_v59 }
  0xf6   :  { %336 = vrot.lane.b32.xlu1 %v328_v37, %s10473_s28  ;;  %v10845_v6 = vpop.permute.xlu0 %105 }
  0xf8   :  { %v478_v41 = vpop.permute.xlu1 %477 }
  0xf9   :  { %v489_v42 = vmul.f32 %v478_v41, %v10695_v22 }
  0xfa   :  { %300 = vrot.lane.b32.xlu1 %v290_v40, %s10472_s27 }
  0xfb   :  { %498 = vrot.lane.b32.xlu0 %v489_v42, %s10477_s19 }
  0xfd   :  { %v446_v45 = vpop.permute.xlu1 %445 }
  0xfe   :  { %v451_v46 = vmul.f32 %v446_v45, %v10709_v29  ;;  %376 = vrot.lane.b32.xlu1 %v368_v44, %s10474_s29  ;;  %v688_v45 = vmul.f32 %v10819_v48, %v10761_v59 }
 0x100   :  { %462 = vrot.lane.b32.xlu0 %v451_v46, %s10476_s0  ;;  %v10848_v14 = vpop.permute.xlu0 %138 }
 0x102   :  { %v514_v50 = vpop.permute.xlu1 %513  ;;  %340 = vrot.lane.b32.xlu1 %v330_v47, %s10473_s28 }
 0x103   :  { %v528_v16 = vmul.f32 %v514_v50, %v10761_v59 }
 0x104   :  { %538 = vrot.lane.b32.xlu0 %v529_v49, %s10478_s1 }
 0x106   :  { %416 = vrot.lane.b32.xlu1 %v408_v51, %s10475_s30 }
 0x107   :  { %v482_v53 = vpop.permute.xlu1 %481 }
 0x108   :  { %v490_v20 = vmul.f32 %v482_v53, %v10772_v7 }
 0x109   :  { %v10854_v21 = vpop.permute.xlu0 %178 }
 0x10a   :  { %380 = vrot.lane.b32.xlu1 %v370_v54, %s10474_s29 }
 0x10b   :  { %v486_v55 = vpop.permute.xlu1 %485 }
 0x10c   :  { %v491_v58 = vmul.f32 %v486_v55, %v10709_v29 }
 0x10e   :  { %456 = vrot.lane.b32.xlu1 %v448_v56, %s10476_s0  ;;  %502 = vrot.lane.b32.xlu0 %v491_v58, %s10477_s19  ;;  %v10860_v26 = vpop.permute.xlu0 %142 }
 0x110   :  { %v558_v61 = vpop.permute.xlu1 %557 }
 0x111   :  { %v569_v62 = vmul.f32 %v558_v61, %v10695_v22 }
 0x112   :  { %420 = vrot.lane.b32.xlu1 %v410_v60, %s10475_s30  ;;  %s10488_s30 = smov 8  }
 0x113   :  { %578 = vrot.lane.b32.xlu0 %v569_v62, %s10479_s20  ;;  %v10867_v31 = vpop.permute.xlu0 %218 }
 0x115   :  { %v522_v1 = vpop.permute.xlu1 %521 }
 0x116   :  { %496 = vrot.lane.b32.xlu1 %v488_v0, %s10477_s19  ;;  %v530_v28 = vmul.f32 %v522_v1, %v10772_v7 }
 0x117   :  { %542 = vrot.lane.b32.xlu0 %v531_v3, %s10478_s1  ;;  %v10873_v36 = vpop.permute.xlu0 %182 }
 0x11a   :  { %v594_v13 = vpop.permute.xlu1 %593  ;;  %460 = vrot.lane.b32.xlu1 %v450_v12, %s10476_s0  ;;  %s11704_s0 = sld [smem:[#allocation10_spill]] }
 0x11b   :  { %v608_v32 = vmul.f32 %v594_v13, %v10761_v59 }
 0x11e   :  { %v598_v17 = vpop.permute.xlu1 %597  ;;  %536 = vrot.lane.b32.xlu1 %v528_v16, %s10478_s1 }
 0x11f   :  { %v609_v18 = vmul.f32 %v598_v17, %v10695_v22 }
 0x121   :  { %618 = vrot.lane.b32.xlu0 %v609_v18, %s10480_s21  ;;  %v259_v39 = vpop.permute.xlu0 %258 }
 0x122   :  { %500 = vrot.lane.b32.xlu1 %v490_v20, %s10477_s19 }
 0x123   :  { %v566_v23 = vpop.permute.xlu1 %565 }
 0x124   :  { %v571_v25 = vmul.f32 %v566_v23, %v10709_v29 }
 0x126   :  { %582 = vrot.lane.b32.xlu0 %v571_v25, %s10479_s20  ;;  %576 = vrot.lane.b32.xlu1 %v568_v24, %s10479_s20  ;;  %v10885_v46 = vpop.permute.xlu0 %222 }
 0x128   :  { %v634_v30 = vpop.permute.xlu1 %633 }
 0x129   :  { %v648_v38 = vmul.f32 %v634_v30, %v10761_v59 }
 0x12a   :  { %540 = vrot.lane.b32.xlu1 %v530_v28, %s10478_s1  ;;  %658 = vrot.lane.b32.xlu0 %v649_v27, %s10481_s22  ;;  %v299_v47 = vpop.permute.xlu0 %298 }
 0x12d   :  { %v602_v33 = vpop.permute.xlu1 %601 }
 0x12e   :  { %616 = vrot.lane.b32.xlu1 %v608_v32, %s10480_s21  ;;  %v610_v42 = vmul.f32 %v602_v33, %v10772_v7 }
 0x131   :  { %v606_v35 = vpop.permute.xlu1 %605 }
 0x132   :  { %v611_v37 = vmul.f32 %v606_v35, %v10709_v29  ;;  %580 = vrot.lane.b32.xlu1 %v570_v34, %s10479_s20 }
 0x134   :  { %622 = vrot.lane.b32.xlu0 %v611_v37, %s10480_s21  ;;  %v10890_v54 = vpop.permute.xlu0 %262 }
 0x136   :  { %v678_v40 = vpop.permute.xlu1 %677  ;;  %656 = vrot.lane.b32.xlu1 %v648_v38, %s10481_s22 }
 0x137   :  { %v689_v41 = vmul.f32 %v678_v40, %v10695_v22 }
 0x139   :  { %698 = vrot.lane.b32.xlu0 %v689_v41, %s10482_s2  ;;  %v339_v48 = vpop.permute.xlu0 %338 }
 0x13a   :  { %620 = vrot.lane.b32.xlu1 %v610_v42, %s10480_s21 }
 0x13b   :  { %v642_v44 = vpop.permute.xlu1 %641 }
 0x13c   :  { %v650_v49 = vmul.f32 %v642_v44, %v10772_v7 }
 0x13d   :  { %662 = vrot.lane.b32.xlu0 %v651_v43, %s10481_s22  ;;  %v10892_v58 = vpop.permute.xlu0 %302 }
 0x13e   :  { %696 = vrot.lane.b32.xlu1 %v688_v45, %s10482_s2 }
 0x140   :  { %v682_v50 = vpop.permute.xlu1 %681 }
 0x141   :  { %v690_v51 = vmul.f32 %v682_v50, %v10772_v7 }
 0x142   :  { %660 = vrot.lane.b32.xlu1 %v650_v49, %s10481_s22 }
 0x144   :  { %v686_v52 = vpop.permute.xlu1 %685 }
 0x145   :  { %v691_v53 = vmul.f32 %v686_v52, %v10709_v29 }
 0x146   :  { %700 = vrot.lane.b32.xlu1 %v690_v51, %s10482_s2 }
 0x147   :  { %702 = vrot.lane.b32.xlu0 %v691_v53, %s10482_s2  ;;  %v379_v61 = vpop.permute.xlu0 %378 }
 0x149   :  { %v96_v55 = vpop.permute.xlu1 %95 }
 0x14a   :  { %v109_v33 = vmul.f32 %v96_v55, %v10695_v22 }
 0x14c   :  { %v10894_v0 = vpop.permute.xlu0 %342  ;;  %v149_v35 = vadd.f32 %v10848_v14, %v109_v33 }
 0x14d   :  { %v101_v56 = vpop.permute.xlu1 %100 }
 0x14e   :  { %v189_v40 = vadd.f32 %v10854_v21, %v149_v35  ;;  %v108_v35 = vmul.f32 %v10835_v63, %v10761_v59  ;;  %v110_v63 = vmul.f32 %v101_v56, %v10772_v7 }
 0x150   :  { %v419_v12 = vpop.permute.xlu0 %418  ;;  %v229_v43 = vadd.f32 %v10867_v31, %v189_v40  ;;  %v111_v31 = vmul.f32 %v10845_v6, %v10709_v29 }
 0x151   :  { %v137_v57 = vpop.permute.xlu1 %136 }
 0x152   :  { %v269_v49 = vadd.f32 %v259_v39, %v229_v43  ;;  %v148_v39 = vadd.f32 %v137_v57, %v108_v35  ;;  %v151_v43 = vadd.f32 %v10860_v26, %v111_v31 }
 0x154   :  { %v309_v51 = vadd.f32 %v299_v47, %v269_v49 }
 0x155   :  { %v177_v60 = vpop.permute.xlu1 %176 }
 0x156   :  { %v349_v53 = vadd.f32 %v339_v48, %v309_v51  ;;  %v188_v48 = vadd.f32 %v177_v60, %v148_v39 }
 0x158   :  { %v389_v33 = vadd.f32 %v379_v61, %v349_v53  ;;  %v191_v61 = vadd.f32 %v10873_v36, %v151_v43 }
 0x159   :  { %v141_v62 = vpop.permute.xlu1 %140 }
 0x15a   :  { %v10898_v16 = vpop.permute.xlu0 %382  ;;  %v429_v21 = vadd.f32 %v419_v12, %v389_v33  ;;  %v231_v59 = vadd.f32 %v10885_v46, %v191_v61  ;;  %v150_v6 = vadd.f32 %v141_v62, %v110_v63 }
 0x15d   :  { %v217_v3 = vpop.permute.xlu1 %216 }
 0x15e   :  { %v228_v53 = vadd.f32 %v217_v3, %v188_v48 }
 0x15f   :  { %v459_v18 = vpop.permute.xlu0 %458 }
 0x160   :  { %v469_v11 = vadd.f32 %v459_v18, %v429_v21 }
 0x161   :  { %v10896_v1 = vpop.permute.xlu1 %180 }
 0x162   :  { %v190_v36 = vadd.f32 %v10896_v1, %v150_v6 }
 0x163   :  { %v10904_v24 = vpop.permute.xlu0 %422 }
 0x165   :  { %v257_v13 = vpop.permute.xlu1 %256 }
 0x166   :  { %v268_v18 = vadd.f32 %v257_v13, %v228_v53 }
 0x169   :  { %v10900_v17 = vpop.permute.xlu1 %220 }
 0x16a   :  { %v230_v56 = vadd.f32 %v10900_v17, %v190_v36 }
 0x16d   :  { %v297_v20 = vpop.permute.xlu1 %296  ;;  %v499_v27 = vpop.permute.xlu0 %498 }
 0x16e   :  { %v509_v40 = vadd.f32 %v499_v27, %v469_v11  ;;  %v271_v11 = vadd.f32 %v10890_v54, %v231_v59  ;;  %v308_v57 = vadd.f32 %v297_v20, %v268_v18 }
 0x170   :  { %v311_v27 = vadd.f32 %v10892_v58, %v271_v11 }
 0x171   :  { %v10902_v23 = vpop.permute.xlu1 %260 }
 0x172   :  { %v10908_v30 = vpop.permute.xlu0 %462  ;;  %v351_v7 = vadd.f32 %v10894_v0, %v311_v27  ;;  %v270_v20 = vadd.f32 %v10902_v23, %v230_v56 }
 0x174   :  { %v391_v62 = vadd.f32 %v10898_v16, %v351_v7 }
 0x175   :  { %v337_v25 = vpop.permute.xlu1 %336 }
 0x176   :  { %v539_v37 = vpop.permute.xlu0 %538  ;;  %v348_v3 = vadd.f32 %v337_v25, %v308_v57  ;;  %v431_v1 = vadd.f32 %v10904_v24, %v391_v62 }
 0x177   :  { %v549_v49 = vadd.f32 %v539_v37, %v509_v40 }
 0x178   :  { %v471_v0 = vadd.f32 %v10908_v30, %v431_v1 }
 0x179   :  { %v10906_v28 = vpop.permute.xlu1 %300 }
 0x17a   :  { %v310_v25 = vadd.f32 %v10906_v28, %v270_v20 }
 0x17d   :  { %v377_v32 = vpop.permute.xlu1 %376 }
 0x17e   :  { %v388_v13 = vadd.f32 %v377_v32, %v348_v3 }
 0x180   :  { %v10915_v41 = vpop.permute.xlu0 %502 }
 0x181   :  { %v10911_v34 = vpop.permute.xlu1 %340  ;;  %v511_v31 = vadd.f32 %v10915_v41, %v471_v0 }
 0x182   :  { %v350_v17 = vadd.f32 %v10911_v34, %v310_v25 }
 0x185   :  { %v417_v38 = vpop.permute.xlu1 %416  ;;  %v579_v44 = vpop.permute.xlu0 %578 }
 0x186   :  { %v589_v12 = vadd.f32 %v579_v44, %v549_v49  ;;  %v428_v58 = vadd.f32 %v417_v38, %v388_v13 }
 0x189   :  { %v10917_v42 = vpop.permute.xlu1 %380  ;;  %v543_v22 = vpop.permute.xlu0 %542 }
 0x18a   :  { %v390_v39 = vadd.f32 %v10917_v42, %v350_v17  ;;  %v551_v40 = vadd.f32 %v543_v22, %v511_v31 }
 0x18d   :  { %v457_v45 = vpop.permute.xlu1 %456 }
 0x191   :  { %v421_v50 = vpop.permute.xlu1 %420 }
 0x192   :  { %v430_v23 = vadd.f32 %v421_v50, %v390_v39 }
 0x193   :  { %v619_v55 = vpop.permute.xlu0 %618 }
 0x194   :  { %v629_v21 = vadd.f32 %v619_v55, %v589_v12  ;;  %v468_v55 = vadd.f32 %v457_v45, %v428_v58 }
 0x195   :  { %v497_v52 = vpop.permute.xlu1 %496 }
 0x196   :  { %v508_v32 = vadd.f32 %v497_v52, %v468_v55 }
 0x198   :  { %v583_v19 = vpop.permute.xlu0 %582 }
 0x199   :  { %v461_v14 = vpop.permute.xlu1 %460  ;;  %v591_v24 = vadd.f32 %v583_v19, %v551_v40 }
 0x19a   :  { %v470_v48 = vadd.f32 %v461_v14, %v430_v23 }
 0x19c   :  { %v659_v47 = vpop.permute.xlu0 %658 }
 0x19d   :  { %v537_v15 = vpop.permute.xlu1 %536  ;;  %v669_v26 = vadd.f32 %v659_v47, %v629_v21 }
 0x19e   :  { %v548_v16 = vadd.f32 %v537_v15, %v508_v32 }
 0x1a1   :  { %v501_v9 = vpop.permute.xlu1 %500 }
 0x1a2   :  { %v510_v45 = vadd.f32 %v501_v9, %v470_v48 }
 0x1a5   :  { %v577_v51 = vpop.permute.xlu1 %576 }
 0x1a6   :  { %v623_v33 = vpop.permute.xlu0 %622  ;;  %v588_v38 = vadd.f32 %v577_v51, %v548_v16 }
 0x1a7   :  { %v631_v49 = vadd.f32 %v623_v33, %v591_v24 }
 0x1a9   :  { %v541_v29 = vpop.permute.xlu1 %540 }
 0x1aa   :  { %v550_v52 = vadd.f32 %v541_v29, %v510_v45 }
 0x1ab   :  { %v699_v60 = vpop.permute.xlu0 %698 }
 0x1ac   :  { %v10931_v37 = vadd.f32 %v699_v60, %v669_v26  ;;  %v10483_v26 = vmov 0.0|0.0   ;;  %v712_v60 = vld [vmem:[%s11679_s9] sm:$0xf]  ;;  %s10492_s9 = smov 6  }
 0x1ad   :  { %v617_v46 = vpop.permute.xlu1 %616  ;;  %9886 = vmatprep.subr.bf16.mxu1 %v10483_v26  ;;  %9892 = vmatprep.subr.bf16.mxu0 %v10483_v26  ;;  %v749_v36 = vsel %vm747_vm5, %v712_v60, 0 }
 0x1ae   :  { %v722_v54 = vsel %vm718_vm3, %v10931_v37, 0.0  ;;  %v628_v28 = vadd.f32 %v617_v46, %v588_v38  ;;  %v732_v14 = vmul.f32 %v10931_v37, %v10931_v37  ;;  %v10979_v46 = vand.u32 4294901760, %v749_v36 }
 0x1af   :  { %723 = vadd.xlane.f32.xlu0 %v722_v54  ;;  %v663_v47 = vpop.permute.xlu0 %662 }
 0x1b0   :  { %v671_v53 = vadd.f32 %v663_v47, %v631_v49  ;;  %v738_v63 = vsel %vm718_vm3, %v732_v14, 0.0  ;;  %v10984_v13 = vsub.f32 %v749_v36, %v10979_v46 }
 0x1b1   :  { %v581_v44 = vpop.permute.xlu1 %580 }
 0x1b2   :  { %v590_v41 = vadd.f32 %v581_v44, %v550_v52  ;;  %v10992_v1 = vand.u32 4294901760, %v10984_v13 }
 0x1b4   :  { %v823_v39 = vsub.f32 %v10984_v13, %v10992_v1 }
 0x1b5   :  { %v657_v35 = vpop.permute.xlu1 %656 }
 0x1b6   :  { %v668_v30 = vadd.f32 %v657_v35, %v628_v28 }
 0x1b9   :  { %v621_v43 = vpop.permute.xlu1 %620  ;;  %v703_v61 = vpop.permute.xlu0 %702 }
 0x1ba   :  { %v10947_v42 = vadd.f32 %v703_v61, %v671_v53  ;;  %v630_v19 = vadd.f32 %v621_v43, %v590_v41 }
 0x1bc   :  { %v728_v9 = vsel %vm718_vm3, %v10947_v42, 0.0  ;;  %v734_v21 = vmul.f32 %v10947_v42, %v10947_v42 }
 0x1bd   :  { %v697_v34 = vpop.permute.xlu1 %696 }
 0x1be   :  { %v10945_v12 = vadd.f32 %v697_v34, %v668_v30  ;;  %v744_v11 = vsel %vm718_vm3, %v734_v21, 0.0  ;;  %v824_v30 = vand.u32 4294901760, %v823_v39 }
 0x1c0   :  { %v719_v15 = vsel %vm718_vm3, %v10945_v12, 0.0  ;;  %v731_v18 = vmul.f32 %v10945_v12, %v10945_v12 }
 0x1c1   :  { %v661_v50 = vpop.permute.xlu1 %660  ;;  %720 = vadd.xlane.f32.xlu1 %v719_v15 }
 0x1c2   :  { %v670_v22 = vadd.f32 %v661_v50, %v630_v19  ;;  %v735_v29 = vsel %vm718_vm3, %v731_v18, 0.0 }
 0x1c5   :  { %v701_v51 = vpop.permute.xlu1 %700  ;;  %729 = vadd.xlane.f32.xlu1 %v728_v9 }
 0x1c6   :  { %v10955_v33 = vadd.f32 %v701_v51, %v670_v22 }
 0x1c8   :  { %v725_v59 = vsel %vm718_vm3, %v10955_v33, 0.0  ;;  %v733_v6 = vmul.f32 %v10955_v33, %v10955_v33 }
 0x1c9   :  { %726 = vadd.xlane.f32.xlu0 %v725_v59  ;;  %739 = vadd.xlane.f32.xlu1 %v738_v63 }
 0x1ca   :  { %v741_v57 = vsel %vm718_vm3, %v733_v6, 0.0 }
 0x1cd   :  { %736 = vadd.xlane.f32.xlu0 %v735_v29  ;;  %745 = vadd.xlane.f32.xlu1 %v744_v11 }
 0x1d1   :  { %742 = vadd.xlane.f32.xlu0 %v741_v57 }
 0x23c   :  { %v724_v27 = vpop.xlane.xlu0 %723 }
 0x23d   :  { %v755_v3 = vand.u32 4294901760, %v724_v27 }
 0x23f   :  { %v10981_v7 = vsub.f32 %v724_v27, %v755_v3 }
 0x241   :  { %v840_v62 = vand.u32 4294901760, %v10981_v7 }
 0x243   :  { %v841_v0 = vsub.f32 %v10981_v7, %v840_v62 }
 0x245   :  { %v842_v47 = vand.u32 4294901760, %v841_v0 }
 0x24e   :  { %v721_v56 = vpop.xlane.xlu1 %720 }
 0x24f   :  { %v752_v54 = vand.u32 4294901760, %v721_v56 }
 0x251   :  { %v10987_v20 = vpack.c.bf16 %v755_v3, %v752_v54  ;;  %v10989_v58 = vsub.f32 %v721_v56, %v752_v54 }
 0x252   :  { %v730_v44 = vpop.xlane.xlu1 %729 }
 0x253   :  { %v761_v25 = vand.u32 4294901760, %v730_v44  ;;  %9888 = vmatpush3.bf16.msra.mxu1 %v10987_v20  ;;  %v833_v55 = vand.u32 4294901760, %v10989_v58  ;;  %v9899_v56 = vpack.c.bf16 %v10981_v7, %v10989_v58 }
 0x254   :  { %9889 = vmatprep.subr.bf16.mxu1 %v10483_v26 }
 0x255   :  { %v11000_v17 = vsub.f32 %v730_v44, %v761_v25  ;;  %v834_v32 = vsub.f32 %v10989_v58, %v833_v55 }
 0x256   :  { %v740_v35 = vpop.xlane.xlu1 %739  ;;  %v727_v31 = vpop.xlane.xlu0 %726 }
 0x257   :  { %v854_v16 = vand.u32 4294901760, %v11000_v17  ;;  %v1241_v40 = vand.u32 4294901760, %v740_v35  ;;  %v758_v23 = vand.u32 4294901760, %v727_v31  ;;  %v835_v38 = vand.u32 4294901760, %v834_v32 }
 0x259   :  { %v11008_v43 = vsub.f32 %v740_v35, %v1241_v40  ;;  %v11010_v24 = vpack.c.bf16 %v761_v25, %v758_v23  ;;  %v11012_v48 = vsub.f32 %v727_v31, %v758_v23  ;;  %v9893_v49 = vpack.c.bf16 %v842_v47, %v835_v38 }
 0x25a   :  { %v746_v28 = vpop.xlane.xlu1 %745  ;;  %v737_v45 = vpop.xlane.xlu0 %736  ;;  %v855_v61 = vsub.f32 %v11000_v17, %v854_v16 }
 0x25b   :  { %v847_v34 = vand.u32 4294901760, %v11012_v48  ;;  %v1247_v52 = vand.u32 4294901760, %v746_v28  ;;  %9891 = vmatpush3.bf16.msra.mxu1 %v11010_v24  ;;  %v1326_v53 = vand.u32 4294901760, %v11008_v43  ;;  %v1238_v41 = vand.u32 4294901760, %v737_v45  ;;  %9894 = vmatpush3.bf16.msra.mxu0 %v9893_v49  ;;  %v715_v49 = vld [vmem:[%s11680_s10 + $0x10] sm:$0xff] }
 0x25c   :  { %9922 = vmatprep.subr.bf16.mxu1 %v10483_v26  ;;  %9895 = vmatprep.subr.bf16.mxu0 %v10483_v26  ;;  %v856_v63 = vand.u32 4294901760, %v855_v61  ;;  %v9902_v32 = vpack.c.bf16 %v11000_v17, %v11012_v48 }
 0x25d   :  { %v848_v15 = vsub.f32 %v11012_v48, %v847_v34  ;;  %v11024_v50 = vsub.f32 %v746_v28, %v1247_v52  ;;  %v11027_v19 = vpack.c.bf16 %v1241_v40, %v1238_v41  ;;  %v11029_v22 = vsub.f32 %v737_v45, %v1238_v41  ;;  %v714_v28 = vld [vmem:[%s11680_s10 + $0x8] sm:$0xff] }
 0x25e   :  { %9203 = vmatmul.mubr.f32.vlgmr.msra.gmra.mrb[0].mxu1 %v824_v30  ;;  %v743_v9 = vpop.xlane.xlu0 %742  ;;  %v1327_v18 = vsub.f32 %v11008_v43, %v1326_v53  ;;  %v9911_v40 = vpack.c.bf16 %v840_v62, %v833_v55  ;;  %v9914_v23 = vpack.c.bf16 %v854_v16, %v847_v34  ;;  %v713_v62 = vld [vmem:[%s11680_s10] sm:$0xff]  ;;  %v1743_v41 = vsel %vm1735_vm6, %v715_v49, 0 }
 0x25f   :  { %v1340_v14 = vand.u32 4294901760, %v11024_v50  ;;  %v1244_v51 = vand.u32 4294901760, %v743_v9  ;;  %v849_v59 = vand.u32 4294901760, %v848_v15  ;;  %9268 = vmatprep.mubr.msk.f32.mxu1 %vm10484_vm4, %v10452_v4  ;;  %v1319_v21 = vand.u32 4294901760, %v11029_v22  ;;  %9924 = vmatpush3.bf16.msra.mxu1 %v11027_v19  ;;  %v716_v15 = vld [vmem:[%s11680_s10 + $0x18] sm:$0xff] }
 0x260   :  { %9925 = vmatprep.subr.bf16.mxu1 %v10483_v26  ;;  %v1328_v36 = vand.u32 4294901760, %v1327_v18  ;;  %v9935_v31 = vpack.c.bf16 %v11008_v43, %v11029_v22 }
 0x261   :  { %v11039_v29 = vpack.c.bf16 %v1247_v52, %v1244_v51  ;;  %v11041_v11 = vsub.f32 %v743_v9, %v1244_v51  ;;  %v9896_v6 = vpack.c.bf16 %v856_v63, %v849_v59  ;;  %v1320_v57 = vsub.f32 %v11029_v22, %v1319_v21 }
 0x262   :  { %v1341_v60 = vsub.f32 %v11024_v50, %v1340_v14  ;;  %v9947_v7 = vpack.c.bf16 %v1326_v53, %v1319_v21  ;;  %v1740_v52 = vsel %vm1735_vm6, %v714_v28, 0  ;;  %v11156_v22 = vand.u32 4294901760, %v1743_v41  ;;  %v2955_v28 = vld [vmem:[%s11704_s0] sm:$0xff] }
 0x263   :  { %v1333_v27 = vand.u32 4294901760, %v11041_v11  ;;  %9897 = vmatpush3.bf16.msra.mxu0 %v9896_v6  ;;  %v1321_v3 = vand.u32 4294901760, %v1320_v57  ;;  %9927 = vmatpush3.bf16.msra.mxu1 %v11039_v29  ;;  %v9938_v39 = vpack.c.bf16 %v11024_v50, %v11041_v11  ;;  %v1746_v9 = vsel %vm1735_vm6, %v716_v15, 0 }
 0x264   :  { %9898 = vmatprep.subr.bf16.mxu0 %v10483_v26  ;;  %9928 = vmatprep.subr.bf16.mxu1 %v10483_v26  ;;  %v1342_v25 = vand.u32 4294901760, %v1341_v60  ;;  %v11162_v51 = vand.u32 4294901760, %v1746_v9  ;;  %v11165_v59 = vsub.f32 %v1743_v41, %v11156_v22  ;;  %v2956_v41 = vld [vmem:[%s11704_s0 + $0x8] sm:$0xff]  ;;  %s10493_s0 = smov 14  }
 0x265   :  { %v1334_v54 = vsub.f32 %v11041_v11, %v1333_v27  ;;  %v9929_v44 = vpack.c.bf16 %v1328_v36, %v1321_v3 }
 0x266   :  { %9214 = vmatmul.mubr.f32.vlgmr.msra.gmra.mrb[0].mxu0 %v10979_v46  ;;  %9269 = vmatmul.mubr.f32.vlgmr.msra.gmra.mrb[2].mxu1 %v824_v30  ;;  %v11171_v18 = vsub.f32 %v1746_v9, %v11162_v51  ;;  %v11174_v21 = vand.u32 4294901760, %v11165_v59 }
 0x267   :  { %v1335_v0 = vand.u32 4294901760, %v1334_v54  ;;  %9900 = vmatpush3.bf16.msra.mxu0 %v9899_v56  ;;  %9930 = vmatpush3.bf16.msra.mxu1 %v9929_v44 }
 0x268   :  { %9901 = vmatprep.subr.bf16.mxu0 %v10483_v26  ;;  %9931 = vmatprep.subr.bf16.mxu1 %v10483_v26  ;;  %v11182_v57 = vand.u32 4294901760, %v11171_v18 }
 0x269   :  { %v9932_v35 = vpack.c.bf16 %v1342_v25, %v1335_v0  ;;  %9224 = vmatprep.mubr.msk.f32.mxu0 %vm10484_vm4, %v10452_v4  ;;  %9279 = vmatprep.mubr.msk.f32.mxu1 %vm10484_vm4, %v10452_v4 }
 0x26a   :  { %v1851_v44 = vsub.f32 %v11171_v18, %v11182_v57 }
 0x26b   :  { %9903 = vmatpush3.bf16.msra.mxu0 %v9902_v32  ;;  %9933 = vmatpush3.bf16.msra.mxu1 %v9932_v35 }
 0x26c   :  { %9904 = vmatprep.subr.bf16.mxu0 %v10483_v26  ;;  %9934 = vmatprep.subr.bf16.mxu1 %v10483_v26  ;;  %v1852_v32 = vand.u32 4294901760, %v1851_v44 }
 0x26e   :  { %9225 = vmatmul.mubr.f32.vlgmr.msra.gmra.mrb[0].mxu0 %v10984_v13  ;;  %9280 = vmatmul.mubr.f32.vlgmr.msra.gmra.mrb[2].mxu1 %v10979_v46 }
 0x26f   :  { %9906 = vmatpush3.bf16.msra.mxu0 %v10987_v20  ;;  %9936 = vmatpush3.bf16.msra.mxu1 %v9935_v31 }
 0x270   :  { %9907 = vmatprep.subr.bf16.mxu0 %v10483_v26  ;;  %9937 = vmatprep.subr.bf16.mxu1 %v10483_v26 }
 0x271   :  { %9235 = vmatprep.mubr.msk.f32.mxu0 %vm10484_vm4, %v10452_v4  ;;  %9290 = vmatprep.mubr.msk.f32.mxu1 %vm10484_vm4, %v10452_v4 }
 0x273   :  { %9909 = vmatpush3.bf16.msra.mxu0 %v11010_v24  ;;  %9939 = vmatpush3.bf16.msra.mxu1 %v9938_v39 }
 0x274   :  { %9910 = vmatprep.subr.bf16.mxu0 %v10483_v26  ;;  %9940 = vmatprep.subr.bf16.mxu1 %v10483_v26 }
 0x276   :  { %9236 = vmatmul.mubr.f32.vlgmr.msra.gmra.mrb[0].mxu0 %v10992_v1  ;;  %9291 = vmatmul.mubr.f32.vlgmr.msra.gmra.mrb[2].mxu1 %v10984_v13  ;;  %v9950_v13 = vpack.c.bf16 %v1340_v14, %v1333_v27  ;;  %v1841_v27 = vsub.f32 %v11165_v59, %v11174_v21 }
 0x277   :  { %9912 = vmatpush3.bf16.msra.mxu0 %v9911_v40  ;;  %9942 = vmatpush3.bf16.msra.mxu1 %v11027_v19 }
 0x278   :  { %9913 = vmatprep.subr.bf16.mxu0 %v10483_v26  ;;  %9943 = vmatprep.subr.bf16.mxu1 %v10483_v26  ;;  %v1842_v25 = vand.u32 4294901760, %v1841_v27 }
 0x279   :  { %9246 = vmatprep.mubr.msk.f32.mxu0 %vm10484_vm4, %v10452_v4  ;;  %9301 = vmatprep.mubr.msk.f32.mxu1 %vm10484_vm4, %v10452_v4 }
 0x27b   :  { %9915 = vmatpush3.bf16.msra.mxu0 %v9914_v23  ;;  %9945 = vmatpush3.bf16.msra.mxu1 %v11039_v29 }
 0x27c   :  { %9916 = vmatprep.subr.bf16.mxu0 %v10483_v26  ;;  %9946 = vmatprep.subr.bf16.mxu1 %v10483_v26 }
 0x27e   :  { %9247 = vmatmul.mubr.f32.vlgmr.msra.gmra.mrb[0].mxu0 %v10979_v46  ;;  %9302 = vmatmul.mubr.f32.vlgmr.msra.gmra.mrb[2].mxu1 %v10992_v1 }
 0x27f   :  { %9918 = vmatpush3.bf16.msra.mxu0 %v10987_v20  ;;  %9948 = vmatpush3.bf16.msra.mxu1 %v9947_v7  ;;  %v1737_v20 = vsel %vm1735_vm6, %v713_v62, 0  ;;  %vm8324_vm6 = vcmask 74816  }
 0x280   :  { %9919 = vmatprep.subr.bf16.mxu0 %v10483_v26  ;;  %9949 = vmatprep.subr.bf16.mxu1 %v10483_v26  ;;  %v11133_v58 = vand.u32 4294901760, %v1737_v20 }
 0x281   :  { %9257 = vmatprep.mubr.msk.f32.mxu0 %vm10484_vm4, %v10452_v4  ;;  %9312 = vmatprep.mubr.msk.f32.mxu1 %vm10484_vm4, %v10452_v4 }
 0x282   :  { %v11136_v1 = vsub.f32 %v1737_v20, %v11133_v58 }
 0x283   :  { %9921 = vmatpush3.bf16.msra.mxu0 %v11010_v24  ;;  %9951 = vmatpush3.bf16.msra.mxu1 %v9950_v13 }
 0x284   :  { %9952 = vmatprep.subr.bf16.mxu1 %v10483_v26  ;;  %v11139_v55 = vand.u32 4294901760, %v11136_v1 }
 0x286   :  { %9258 = vmatmul.mubr.f32.vlgmr.msra.gmra.mrb[0].mxu0 %v10979_v46  ;;  %9313 = vmatmul.mubr.f32.vlgmr.msra.gmra.mrb[2].mxu1 %v10979_v46  ;;  %v1821_v17 = vsub.f32 %v11136_v1, %v11139_v55 }
 0x287   :  { %9954 = vmatpush3.bf16.msra.mxu1 %v11027_v19  ;;  %9323 = vmatprep.mubr.msk.f32.mxu1 %vm10484_vm4, %v10452_v4  ;;  %v11154_v19 = vand.u32 4294901760, %v1740_v52 }
 0x288   :  { %9955 = vmatprep.subr.bf16.mxu1 %v10483_v26  ;;  %v1822_v16 = vand.u32 4294901760, %v1821_v17 }
 0x289   :  { %v11160_v14 = vsub.f32 %v1740_v52, %v11154_v19 }
 0x28a   :  { %9328 = vmatprep.mubr.f32.mxu0 %v1822_v16 }
 0x28b   :  { %9957 = vmatpush3.bf16.msra.mxu1 %v11039_v29  ;;  %v11168_v63 = vand.u32 4294901760, %v11160_v14  ;;  %v717_v29 = vld [vmem:[%s11681_s11] sm:$0xf]  ;;  %s10485_s11 = smov 1  }
 0x28d   :  { %v1831_v6 = vsub.f32 %v11160_v14, %v11168_v63 }
 0x28e   :  { %9324 = vmatmul.mubr.f32.vlgmr.msra.gmra.mrb[2].mxu1 %v10979_v46 }
 0x28f   :  { %9376 = vmatprep.mubr.f32.mxu1 %v1822_v16  ;;  %v1832_v54 = vand.u32 4294901760, %v1831_v6 }
 0x331   :  { %v826_v46 = vpop.f32.mrb[0].mxu1 }
 0x332   :  { %v9204_v38 = vpop.f32.mrb[1].mxu1 }
 0x359   :  { %v1232_v47 = vpop.f32.mrb[0].mxu0 }
 0x35a   :  { %v10140_v43 = vadd.f32 %v1232_v47, %v826_v46  ;;  %v9259_v24 = vpop.f32.mrb[1].mxu0 }
 0x35c   :  { %v1236_v48 = vmul.f32 0.001953125, %v10140_v43 }
 0x35e   :  { %v1723_v30 = vmul.f32 %v1236_v48, %v1236_v48 }
 0x361   :  { %v1718_v45 = vpop.f32.mrb[2].mxu1 }
 0x362   :  { %v1722_v61 = vmul.f32 0.001953125, %v1718_v45  ;;  %v9325_v34 = vpop.f32.mrb[3].mxu1  ;;  %v2958_v45 = vsel %vm747_vm5, %v2955_v28, 0 }
 0x363   :  { %v11239_v49 = vand.u32 4294901760, %v2958_v45 }
 0x364   :  { %v1724_v53 = vsub.f32 %v1722_v61, %v1723_v30 }
 0x365   :  { %v11242_v30 = vsub.f32 %v2958_v45, %v11239_v49 }
 0x366   :  { %v1725_v50 = vmax.f32 %v1724_v53, 0.0 }
 0x367   :  { %v3034_v61 = vand.u32 4294901760, %v11242_v30 }
 0x368   :  { %10412 = vrsqrt.f32 %v1725_v50  ;;  %v2961_v50 = vsel %vm747_vm5, %v2956_v41, 0  ;;  %v3491_v41 = vld [vmem:[%s11682_s12] sm:$0xff]  ;;  %vm8318_vm5 = vcmask 64566  }
 0x369   :  { %v3035_v34 = vsub.f32 %v11242_v30, %v3034_v61 }
 0x36b   :  { %v3036_v52 = vand.u32 4294901760, %v3035_v34 }
 0x372   :  { %v10413_v11 = vpop.eup %10412 }
 0x373   :  { %v1728_v60 = vmul.f32 %v10413_v11, %v717_v29 }
 0x375   :  { %v1729_v36 = vmul.f32 %v1728_v60, %v1236_v48  ;;  %v1750_v3 = vsel %vm1748_vm7, %v1728_v60, 0 }
 0x376   :  { %v1753_v56 = vand.u32 4294901760, %v1750_v3 }
 0x377   :  { %1731 = vrot.lane.b32.xlu0 %v1729_v36, %s10485_s11 }
 0x378   :  { %9326 = vmatprep.subr.mxu0 %v1753_v56  ;;  %v1860_v0 = vsub.f32 %v1750_v3, %v1753_v56 }
 0x379   :  { %9327 = vmatpush3.msra.mxu0 %v1753_v56 }
 0x37a   :  { %9329 = vmatmul.mubr.f32.vlgmr.msra.gmra.mrb[2].mxu0 %v1832_v54  ;;  %v1861_v35 = vand.u32 4294901760, %v1860_v0 }
 0x37b   :  { %9331 = vmatprep.mubr.f32.mxu0 %v1842_v25 }
 0x37c   :  { %v1862_v31 = vsub.f32 %v1860_v0, %v1861_v35 }
 0x37e   :  { %9332 = vmatmul.mubr.f32.gmra.mrb[4].mxu0 %v1852_v32  ;;  %v1863_v39 = vand.u32 4294901760, %v1862_v31 }
 0x37f   :  { %9336 = vmatprep.mubr.f32.mxu0 %v11133_v58 }
 0x380   :  { %9334 = vmatprep.subr.mxu0 %v1863_v39 }
 0x381   :  { %9335 = vmatpush3.msra.mxu0 %v1863_v39 }
 0x382   :  { %9337 = vmatmul.mubr.f32.vlgmr.msra.gmra.mrb[2].mxu0 %v11154_v19  ;;  %9342 = vmatprep.subr.mxu0 %v1860_v0 }
 0x383   :  { %9343 = vmatpush3.msra.mxu0 %v1860_v0  ;;  %9339 = vmatprep.mubr.f32.mxu0 %v11156_v22 }
 0x384   :  { %9350 = vmatprep.subr.mxu0 %v1753_v56 }
 0x386   :  { %9340 = vmatmul.mubr.f32.gmra.mrb[4].mxu0 %v11162_v51 }
 0x387   :  { %9344 = vmatprep.mubr.f32.mxu0 %v11136_v1 }
 0x38a   :  { %9345 = vmatmul.mubr.f32.vlgmr.msra.gmra.mrb[2].mxu0 %v11160_v14 }
 0x38b   :  { %9351 = vmatpush3.msra.mxu0 %v1753_v56  ;;  %9347 = vmatprep.mubr.f32.mxu0 %v11165_v59 }
 0x38c   :  { %9358 = vmatprep.subr.mxu0 %v1861_v35 }
 0x38e   :  { %9348 = vmatmul.mubr.f32.gmra.mrb[4].mxu0 %v11171_v18 }
 0x38f   :  { %9352 = vmatprep.mubr.f32.mxu0 %v11139_v55 }
 0x392   :  { %9353 = vmatmul.mubr.f32.vlgmr.msra.gmra.mrb[2].mxu0 %v11168_v63 }
 0x393   :  { %9359 = vmatpush3.msra.mxu0 %v1861_v35  ;;  %9355 = vmatprep.mubr.f32.mxu0 %v11174_v21 }
 0x394   :  { %9366 = vmatprep.subr.mxu0 %v1753_v56 }
 0x396   :  { %9356 = vmatmul.mubr.f32.gmra.mrb[4].mxu0 %v11182_v57 }
 0x397   :  { %9360 = vmatprep.mubr.f32.mxu0 %v11133_v58 }
 0x39a   :  { %9361 = vmatmul.mubr.f32.vlgmr.msra.gmra.mrb[2].mxu0 %v11154_v19 }
 0x39b   :  { %9367 = vmatpush3.msra.mxu0 %v1753_v56  ;;  %9363 = vmatprep.mubr.f32.mxu0 %v11156_v22 }
 0x39e   :  { %9364 = vmatmul.mubr.f32.gmra.mrb[4].mxu0 %v11162_v51 }
 0x39f   :  { %9368 = vmatprep.mubr.f32.mxu0 %v11133_v58 }
 0x3a2   :  { %9369 = vmatmul.mubr.f32.vlgmr.msra.gmra.mrb[2].mxu0 %v11154_v19 }
 0x3a3   :  { %9371 = vmatprep.mubr.f32.mxu0 %v11156_v22 }
 0x3a6   :  { %9372 = vmatmul.mubr.f32.gmra.mrb[4].mxu0 %v11162_v51 }
 0x3a7   :  { %9430 = vmatprep.mubr.f32.mxu0 %v3036_v52 }
 0x3e9   :  { %v1732_v40 = vpop.permute.xlu0 %1731 }
 0x3ea   :  { %v1734_v23 = vsub.f32 %v717_v29, %v1732_v40 }
 0x3ec   :  { %2328 = vrot.lane.b32.xlu1 %v1734_v23, %s10467_s8 }
 0x45e   :  { %v2329_v7 = vpop.permute.xlu1 %2328 }
 0x45f   :  { %v2330_v13 = vsel %vm1748_vm7, %v2329_v7, 0  ;;  %vm8329_vm7 = vcmask 93266  }
 0x460   :  { %v2333_v62 = vand.u32 4294901760, %v2330_v13 }
 0x462   :  { %v2440_v20 = vsub.f32 %v2330_v13, %v2333_v62  ;;  %9374 = vmatprep.subr.mxu1 %v2333_v62 }
 0x463   :  { %9375 = vmatpush3.msra.mxu1 %v2333_v62 }
 0x464   :  { %9377 = vmatmul.mubr.f32.vlgmr.msra.gmra.mrb[4].mxu1 %v1832_v54  ;;  %v2441_v17 = vand.u32 4294901760, %v2440_v20 }
 0x465   :  { %9379 = vmatprep.mubr.f32.mxu1 %v1842_v25 }
 0x466   :  { %v2442_v16 = vsub.f32 %v2440_v20, %v2441_v17 }
 0x468   :  { %9380 = vmatmul.mubr.f32.gmra.mrb[6].mxu1 %v1852_v32  ;;  %v2443_v46 = vand.u32 4294901760, %v2442_v16 }
 0x469   :  { %9384 = vmatprep.mubr.f32.mxu1 %v11133_v58 }
 0x46a   :  { %9382 = vmatprep.subr.mxu1 %v2443_v46 }
 0x46b   :  { %9383 = vmatpush3.msra.mxu1 %v2443_v46 }
 0x46c   :  { %9385 = vmatmul.mubr.f32.vlgmr.msra.gmra.mrb[4].mxu1 %v11154_v19  ;;  %9390 = vmatprep.subr.mxu1 %v2440_v20 }
 0x46d   :  { %9391 = vmatpush3.msra.mxu1 %v2440_v20  ;;  %9387 = vmatprep.mubr.f32.mxu1 %v11156_v22 }
 0x46e   :  { %9398 = vmatprep.subr.mxu1 %v2333_v62 }
 0x470   :  { %9388 = vmatmul.mubr.f32.gmra.mrb[6].mxu1 %v11162_v51 }
 0x471   :  { %9392 = vmatprep.mubr.f32.mxu1 %v11136_v1 }
 0x474   :  { %9393 = vmatmul.mubr.f32.vlgmr.msra.gmra.mrb[4].mxu1 %v11160_v14 }
 0x475   :  { %9399 = vmatpush3.msra.mxu1 %v2333_v62  ;;  %v9370_v38 = vpop.f32.mrb[2].mxu0  ;;  %9395 = vmatprep.mubr.f32.mxu1 %v11165_v59 }
 0x476   :  { %9406 = vmatprep.subr.mxu1 %v2441_v17  ;;  %v2305_v47 = vpop.f32.mrb[3].mxu0  ;;  %2914 = vperm.xlu0 %10396, %v9370_v38  }
 0x477   :  { %2909 = vperm.xlu1 %10397, %v2305_v47  }
 0x478   :  { %9396 = vmatmul.mubr.f32.gmra.mrb[6].mxu1 %v11171_v18 }
 0x479   :  { %v9373_v43 = vpop.f32.mrb[4].mxu0  ;;  %9400 = vmatprep.mubr.f32.mxu1 %v11139_v55 }
 0x47a   :  { %v2317_v24 = vpop.f32.mrb[5].mxu0  ;;  %2924 = vperm.xlu0 %10396, %v9373_v43  }
 0x47b   :  { %2919 = vperm.xlu1 %10397, %v2317_v24  }
 0x47c   :  { %9401 = vmatmul.mubr.f32.vlgmr.msra.gmra.mrb[4].mxu1 %v11168_v63 }
 0x47d   :  { %9407 = vmatpush3.msra.mxu1 %v2441_v17  ;;  %9403 = vmatprep.mubr.f32.mxu1 %v11174_v21 }
 0x47e   :  { %9414 = vmatprep.subr.mxu1 %v2333_v62 }
 0x480   :  { %9404 = vmatmul.mubr.f32.gmra.mrb[6].mxu1 %v11182_v57 }
 0x481   :  { %9408 = vmatprep.mubr.f32.mxu1 %v11133_v58 }
 0x484   :  { %9409 = vmatmul.mubr.f32.vlgmr.msra.gmra.mrb[4].mxu1 %v11154_v19 }
 0x485   :  { %9415 = vmatpush3.msra.mxu1 %v2333_v62  ;;  %9411 = vmatprep.mubr.f32.mxu1 %v11156_v22 }
 0x486   :  { %10006 = vmatprep.subr.bf16.mxu1 %v10483_v26 }
 0x488   :  { %9412 = vmatmul.mubr.f32.gmra.mrb[6].mxu1 %v11162_v51 }
 0x489   :  { %9416 = vmatprep.mubr.f32.mxu1 %v11133_v58 }
 0x48c   :  { %9417 = vmatmul.mubr.f32.vlgmr.msra.gmra.mrb[4].mxu1 %v11154_v19 }
 0x48d   :  { %9419 = vmatprep.mubr.f32.mxu1 %v11156_v22  ;;  %v11252_v22 = vand.u32 4294901760, %v2961_v50 }
 0x48f   :  { %v11257_v63 = vsub.f32 %v2961_v50, %v11252_v22 }
 0x490   :  { %9420 = vmatmul.mubr.f32.gmra.mrb[6].mxu1 %v11162_v51 }
 0x491   :  { %9492 = vmatprep.mubr.msk.f32.mxu1 %vm10484_vm4, %v10452_v4  ;;  %v3044_v36 = vand.u32 4294901760, %v11257_v63 }
 0x4f5   :  { %v2915_v53 = vpop.permute.xlu0 %2914 }
 0x4f6   :  { %v2910_v15 = vpop.permute.xlu1 %2909  ;;  %v2928_v14 = vmul.f32 %v2915_v53, %v10931_v37 }
 0x4f7   :  { %v2927_v51 = vmul.f32 %v2910_v15, %v10945_v12  ;;  %v3511_v15 = vsel %vm3509_vm8, %v3491_v41, 0 }
 0x4f8   :  { %v11291_v50 = vand.u32 4294901760, %v3511_v15 }
 0x4f9   :  { %v2925_v19 = vpop.permute.xlu0 %2924 }
 0x4fa   :  { %v2920_v9 = vpop.permute.xlu1 %2919  ;;  %v2930_v11 = vmul.f32 %v2925_v19, %v10947_v42  ;;  %v3045_v42 = vsub.f32 %v11257_v63, %v3044_v36  ;;  %v11294_v19 = vsub.f32 %v3511_v15, %v11291_v50 }
 0x4fb   :  { %v2929_v57 = vmul.f32 %v2920_v9, %v10955_v33 }
 0x4fc   :  { %v3046_v20 = vand.u32 4294901760, %v3045_v42 }
 0x55f   :  { %v9418_v1 = vpop.f32.mrb[4].mxu1 }
 0x560   :  { %2938 = vperm.xlu0 %10396, %v9418_v1   ;;  %v2885_v55 = vpop.f32.mrb[5].mxu1 }
 0x561   :  { %2933 = vperm.xlu1 %10397, %v2885_v55  }
 0x563   :  { %v9421_v48 = vpop.f32.mrb[6].mxu1 }
 0x564   :  { %2948 = vperm.xlu0 %10396, %v9421_v48   ;;  %v2897_v58 = vpop.f32.mrb[7].mxu1 }
 0x565   :  { %2943 = vperm.xlu1 %10397, %v2897_v58  }
 0x5df   :  { %v2939_v59 = vpop.permute.xlu0 %2938 }
 0x5e0   :  { %v2952_v18 = vadd.f32 %v2939_v59, %v2928_v14  ;;  %v2934_v21 = vpop.permute.xlu1 %2933 }
 0x5e1   :  { %v2951_v29 = vadd.f32 %v2934_v21, %v2927_v51 }
 0x5e2   :  { %v2967_v6 = vand.u32 4294901760, %v2952_v18 }
 0x5e3   :  { %v2964_v60 = vand.u32 4294901760, %v2951_v29  ;;  %v2949_v27 = vpop.permute.xlu0 %2948 }
 0x5e4   :  { %v3061_v3 = vsub.f32 %v2952_v18, %v2967_v6  ;;  %v2954_v37 = vadd.f32 %v2949_v27, %v2930_v11  ;;  %v2944_v56 = vpop.permute.xlu1 %2943 }
 0x5e5   :  { %v9958_v12 = vpack.c.bf16 %v2967_v6, %v2964_v60  ;;  %v3054_v54 = vsub.f32 %v2951_v29, %v2964_v60  ;;  %v2953_v44 = vadd.f32 %v2944_v56, %v2929_v57 }
 0x5e6   :  { %v3062_v25 = vand.u32 4294901760, %v3061_v3  ;;  %v2973_v0 = vand.u32 4294901760, %v2954_v37 }
 0x5e7   :  { %v3055_v32 = vand.u32 4294901760, %v3054_v54  ;;  %v2970_v35 = vand.u32 4294901760, %v2953_v44  ;;  %9959 = vmatprep.subr.bf16.mxu0 %v9958_v12  ;;  %v9974_v1 = vpack.c.bf16 %v3061_v3, %v3054_v54 }
 0x5e8   :  { %v3075_v31 = vsub.f32 %v2954_v37, %v2973_v0  ;;  %9961 = vmatpush3.bf16.msra.mxu0 %v9958_v12  ;;  %v3063_v33 = vsub.f32 %v3061_v3, %v3062_v25 }
 0x5e9   :  { %v9962_v39 = vpack.c.bf16 %v2973_v0, %v2970_v35  ;;  %v3068_v40 = vsub.f32 %v2953_v44, %v2970_v35  ;;  %v3056_v23 = vsub.f32 %v3054_v54, %v3055_v32  ;;  %v9990_v48 = vpack.c.bf16 %v3062_v25, %v3055_v32 }
 0x5ea   :  { %v3076_v7 = vand.u32 4294901760, %v3075_v31  ;;  %v3064_v13 = vand.u32 4294901760, %v3063_v33 }
 0x5eb   :  { %v3069_v62 = vand.u32 4294901760, %v3068_v40  ;;  %9963 = vmatprep.subr.bf16.mxu0 %v9962_v39  ;;  %v3057_v17 = vand.u32 4294901760, %v3056_v23  ;;  %v9978_v55 = vpack.c.bf16 %v3075_v31, %v3068_v40 }
 0x5ec   :  { %9965 = vmatpush3.bf16.msra.mxu0 %v9962_v39  ;;  %v3077_v16 = vsub.f32 %v3075_v31, %v3076_v7 }
 0x5ed   :  { %v9966_v46 = vpack.c.bf16 %v3064_v13, %v3057_v17  ;;  %v3070_v38 = vsub.f32 %v3068_v40, %v3069_v62  ;;  %v9994_v28 = vpack.c.bf16 %v3076_v7, %v3069_v62  ;;  %v3492_v17 = vld [vmem:[%s11683_s13] sm:$0xff] }
 0x5ee   :  { %v3078_v47 = vand.u32 4294901760, %v3077_v16  ;;  %v4447_v16 = vsel %vm4445_vm9, %v3492_v17, 0  ;;  %v11426_v17 = vld [vmem:[%s11673_s3 + $0x8] sm:$0xff] }
 0x5ef   :  { %9431 = vmatmul.mubr.f32.vlgmr.msra.gmra.mrb[6].mxu0 %v3046_v20  ;;  %9967 = vmatprep.subr.bf16.mxu0 %v9966_v46  ;;  %v3071_v43 = vand.u32 4294901760, %v3070_v38 }
 0x5f0   :  { %9969 = vmatpush3.bf16.msra.mxu0 %v9966_v46  ;;  %9441 = vmatprep.mubr.f32.mxu0 %v11239_v49  ;;  %v11348_v46 = vand.u32 4294901760, %v4447_v16 }
 0x5f1   :  { %v9970_v24 = vpack.c.bf16 %v3078_v47, %v3071_v43 }
 0x5f2   :  { %v11351_v38 = vsub.f32 %v4447_v16, %v11348_v46  ;;  %v11705_v16 = vmov 5  }
 0x5f3   :  { %9971 = vmatprep.subr.bf16.mxu0 %v9970_v24 }
 0x5f4   :  { %9973 = vmatpush3.bf16.msra.mxu0 %v9970_v24  ;;  %v11354_v47 = vand.u32 4294901760, %v11351_v38 }
 0x5f5   :  { %9975 = vmatprep.subr.bf16.mxu0 %v9974_v1 }
 0x5f6   :  { %v4521_v43 = vsub.f32 %v11351_v38, %v11354_v47 }
 0x5f7   :  { %9442 = vmatmul.mubr.f32.vlgmr.msra.gmra.mrb[6].mxu0 %v11252_v22 }
 0x5f8   :  { %9977 = vmatpush3.bf16.msra.mxu0 %v9974_v1  ;;  %9452 = vmatprep.mubr.f32.mxu0 %v11242_v30  ;;  %v4522_v24 = vand.u32 4294901760, %v4521_v43 }
 0x5f9   :  { %9979 = vmatprep.subr.bf16.mxu0 %v9978_v55 }
 0x5fc   :  { %9981 = vmatpush3.bf16.msra.mxu0 %v9978_v55 }
 0x5fd   :  { %9983 = vmatprep.subr.bf16.mxu0 %v9958_v12 }
 0x5ff   :  { %9453 = vmatmul.mubr.f32.vlgmr.msra.gmra.mrb[6].mxu0 %v11257_v63 }
 0x600   :  { %9985 = vmatpush3.bf16.msra.mxu0 %v9958_v12  ;;  %9463 = vmatprep.mubr.f32.mxu0 %v3034_v61 }
 0x601   :  { %9987 = vmatprep.subr.bf16.mxu0 %v9962_v39 }
 0x604   :  { %9989 = vmatpush3.bf16.msra.mxu0 %v9962_v39 }
 0x605   :  { %9991 = vmatprep.subr.bf16.mxu0 %v9990_v48 }
 0x607   :  { %9464 = vmatmul.mubr.f32.vlgmr.msra.gmra.mrb[6].mxu0 %v3044_v36 }
 0x608   :  { %9993 = vmatpush3.bf16.msra.mxu0 %v9990_v48  ;;  %9474 = vmatprep.mubr.f32.mxu0 %v11239_v49 }
 0x609   :  { %9995 = vmatprep.subr.bf16.mxu0 %v9994_v28 }
 0x60c   :  { %9997 = vmatpush3.bf16.msra.mxu0 %v9994_v28  ;;  %v3493_v28 = vld [vmem:[%s11683_s13 + $0x8] sm:$0xff]  ;;  %s10489_s13 = smov 4  }
 0x60d   :  { %9999 = vmatprep.subr.bf16.mxu0 %v9958_v12 }
 0x60f   :  { %9475 = vmatmul.mubr.f32.vlgmr.msra.gmra.mrb[6].mxu0 %v11252_v22 }
 0x610   :  { %10001 = vmatpush3.bf16.msra.mxu0 %v9958_v12  ;;  %9485 = vmatprep.mubr.f32.mxu0 %v11239_v49 }
 0x611   :  { %10003 = vmatprep.subr.bf16.mxu0 %v9962_v39 }
 0x614   :  { %10005 = vmatpush3.bf16.msra.mxu0 %v9962_v39 }
 0x617   :  { %9486 = vmatmul.mubr.f32.vlgmr.msra.gmra.mrb[6].mxu0 %v11252_v22  ;;  %v11297_v22 = vand.u32 4294901760, %v11294_v19 }
 0x618   :  { %9574 = vmatprep.mubr.f32.mxu0 %v4522_v24 }
 0x619   :  { %v3583_v59 = vsub.f32 %v11294_v19, %v11297_v22 }
 0x61b   :  { %v3584_v6 = vand.u32 4294901760, %v3583_v59 }
 0x6ea   :  { %v11273_v58 = vpop.f32.mrb[6].mxu0 }
 0x6eb   :  { %v11275_v45 = vpop.f32.mrb[7].mxu0  ;;  %v3498_v30 = vsel %vm718_vm3, %v11273_v58, 0.0  ;;  %v3502_v61 = vmul.f32 %v11273_v58, %v11273_v58 }
 0x6ec   :  { %v3501_v34 = vmul.f32 %v11275_v45, %v11275_v45  ;;  %3499 = vadd.xlane.f32.xlu0 %v3498_v30  ;;  %v3495_v49 = vsel %vm718_vm3, %v11275_v45, 0.0 }
 0x6ed   :  { %3496 = vadd.xlane.f32.xlu1 %v3495_v49  ;;  %v3506_v53 = vsel %vm718_vm3, %v3502_v61, 0.0 }
 0x6ee   :  { %v3503_v52 = vsel %vm718_vm3, %v3501_v34, 0.0 }
 0x6f0   :  { %3504 = vadd.xlane.f32.xlu0 %v3503_v52  ;;  %v4450_v52 = vsel %vm4445_vm9, %v3493_v28, 0 }
 0x6f1   :  { %3507 = vadd.xlane.f32.xlu1 %v3506_v53  ;;  %v11362_v41 = vand.u32 4294901760, %v4450_v52 }
 0x779   :  { %v3500_v9 = vpop.xlane.xlu0 %3499 }
 0x77a   :  { %v3517_v14 = vand.u32 4294901760, %v3500_v9  ;;  %v3497_v51 = vpop.xlane.xlu1 %3496 }
 0x77b   :  { %v3514_v63 = vand.u32 4294901760, %v3497_v51 }
 0x77c   :  { %v3599_v18 = vsub.f32 %v3500_v9, %v3517_v14 }
 0x77d   :  { %v10007_v21 = vpack.c.bf16 %v3517_v14, %v3514_v63  ;;  %v3592_v29 = vsub.f32 %v3497_v51, %v3514_v63  ;;  %v3505_v12 = vpop.xlane.xlu0 %3504 }
 0x77e   :  { %v3600_v11 = vand.u32 4294901760, %v3599_v18  ;;  %v3508_v54 = vpop.xlane.xlu1 %3507  ;;  %v3974_v44 = vand.u32 4294901760, %v3505_v12 }
 0x77f   :  { %v3593_v57 = vand.u32 4294901760, %v3592_v29  ;;  %10008 = vmatpush3.bf16.msra.mxu1 %v10007_v21  ;;  %v10013_v56 = vpack.c.bf16 %v3599_v18, %v3592_v29  ;;  %v3977_v25 = vand.u32 4294901760, %v3508_v54 }
 0x780   :  { %v3601_v60 = vsub.f32 %v3599_v18, %v3600_v11  ;;  %10009 = vmatprep.subr.bf16.mxu1 %v10483_v26  ;;  %v4052_v32 = vsub.f32 %v3505_v12, %v3974_v44 }
 0x781   :  { %v3594_v27 = vsub.f32 %v3592_v29, %v3593_v57  ;;  %v10019_v0 = vpack.c.bf16 %v3600_v11, %v3593_v57  ;;  %v4059_v35 = vsub.f32 %v3508_v54, %v3977_v25  ;;  %v10025_v23 = vpack.c.bf16 %v3977_v25, %v3974_v44 }
 0x782   :  { %v3602_v36 = vand.u32 4294901760, %v3601_v60  ;;  %9493 = vmatmul.mubr.f32.vlgmr.msra.gmra.mrb[8].mxu1 %v3584_v6  ;;  %v4053_v42 = vand.u32 4294901760, %v4052_v32 }
 0x783   :  { %v3595_v3 = vand.u32 4294901760, %v3594_v27  ;;  %9499 = vmatprep.mubr.msk.f32.mxu1 %vm10484_vm4, %v10452_v4  ;;  %v4060_v31 = vand.u32 4294901760, %v4059_v35  ;;  %v10031_v62 = vpack.c.bf16 %v4059_v35, %v4052_v32 }
 0x784   :  { %v4054_v33 = vsub.f32 %v4052_v32, %v4053_v42  ;;  %v5470_v32 = vld [vmem:[%s11675_s5] sm:$0xff] }
 0x785   :  { %v10010_v37 = vpack.c.bf16 %v3602_v36, %v3595_v3  ;;  %v4061_v39 = vsub.f32 %v4059_v35, %v4060_v31  ;;  %v10037_v20 = vpack.c.bf16 %v4060_v31, %v4053_v42  ;;  %v5471_v35 = vld [vmem:[%s11675_s5 + $0x8] sm:$0xff]  ;;  %v5472_v31 = vld [vmem:[%s11675_s5 + $0x10] sm:$0xff] }
 0x786   :  { %v4055_v40 = vand.u32 4294901760, %v4054_v33  ;;  %v10042_v42 = vpack.c.bf16 %v5471_v35, %v5470_v32  ;;  %v5473_v33 = vld [vmem:[%s11675_s5 + $0x18] sm:$0xff] }
 0x787   :  { %10011 = vmatpush3.bf16.msra.mxu1 %v10010_v37  ;;  %v4062_v7 = vand.u32 4294901760, %v4061_v39  ;;  %v10046_v39 = vpack.c.bf16 %v5473_v33, %v5472_v31 }
 0x788   :  { %10012 = vmatprep.subr.bf16.mxu1 %v10483_v26 }
 0x789   :  { %v10028_v13 = vpack.c.bf16 %v4062_v7, %v4055_v40  ;;  %v5474_v40 = vld [vmem:[%s11675_s5 + $0x20] sm:$0xff]  ;;  %v5476_v7 = vld [vmem:[%s11675_s5 + $0x30] sm:$0xff] }
 0x78a   :  { %9500 = vmatmul.mubr.f32.vlgmr.msra.gmra.mrb[8].mxu1 %v11291_v50 }
 0x78b   :  { %10014 = vmatpush3.bf16.msra.mxu1 %v10013_v56  ;;  %9506 = vmatprep.mubr.msk.f32.mxu1 %vm10484_vm4, %v10452_v4 }
 0x78c   :  { %10015 = vmatprep.subr.bf16.mxu1 %v10483_v26 }
 0x792   :  { %9507 = vmatmul.mubr.f32.vlgmr.msra.gmra.mrb[8].mxu1 %v11294_v19 }
 0x793   :  { %10017 = vmatpush3.bf16.msra.mxu1 %v10007_v21  ;;  %9513 = vmatprep.mubr.msk.f32.mxu1 %vm10484_vm4, %v10452_v4 }
 0x794   :  { %10018 = vmatprep.subr.bf16.mxu1 %v10483_v26 }
 0x79a   :  { %9514 = vmatmul.mubr.f32.vlgmr.msra.gmra.mrb[8].mxu1 %v11297_v22 }
 0x79b   :  { %10020 = vmatpush3.bf16.msra.mxu1 %v10019_v0  ;;  %9520 = vmatprep.mubr.msk.f32.mxu1 %vm10484_vm4, %v10452_v4 }
 0x79c   :  { %10021 = vmatprep.subr.bf16.mxu1 %v10483_v26 }
 0x7a2   :  { %9521 = vmatmul.mubr.f32.vlgmr.msra.gmra.mrb[8].mxu1 %v11291_v50 }
 0x7a3   :  { %10023 = vmatpush3.bf16.msra.mxu1 %v10007_v21  ;;  %9527 = vmatprep.mubr.msk.f32.mxu1 %vm10484_vm4, %v10452_v4 }
 0x7a4   :  { %10024 = vmatprep.subr.bf16.mxu1 %v10483_v26 }
 0x7aa   :  { %9528 = vmatmul.mubr.f32.vlgmr.msra.gmra.mrb[8].mxu1 %v11291_v50 }
 0x7ab   :  { %10026 = vmatpush3.bf16.msra.mxu1 %v10025_v23  ;;  %9534 = vmatprep.mubr.msk.f32.mxu1 %vm10484_vm4, %v10452_v4 }
 0x7ac   :  { %10027 = vmatprep.subr.bf16.mxu1 %v10483_v26 }
 0x7ae   :  { %9535 = vmatmul.mubr.f32.vlgmr.msra.gmra.mrb[10].mxu1 %v3584_v6 }
 0x7af   :  { %10029 = vmatpush3.bf16.msra.mxu1 %v10028_v13  ;;  %9541 = vmatprep.mubr.msk.f32.mxu1 %vm10484_vm4, %v10452_v4  ;;  %v5477_v13 = vld [vmem:[%s11675_s5 + $0x38] sm:$0xff] }
 0x7b0   :  { %10030 = vmatprep.subr.bf16.mxu1 %v10483_v26 }
 0x7b6   :  { %9542 = vmatmul.mubr.f32.vlgmr.msra.gmra.mrb[10].mxu1 %v11291_v50 }
 0x7b7   :  { %10032 = vmatpush3.bf16.msra.mxu1 %v10031_v62  ;;  %9548 = vmatprep.mubr.msk.f32.mxu1 %vm10484_vm4, %v10452_v4  ;;  %v10054_v62 = vpack.c.bf16 %v5477_v13, %v5476_v7 }
 0x7b8   :  { %10033 = vmatprep.subr.bf16.mxu1 %v10483_v26 }
 0x7be   :  { %9549 = vmatmul.mubr.f32.vlgmr.msra.gmra.mrb[10].mxu1 %v11294_v19 }
 0x7bf   :  { %10035 = vmatpush3.bf16.msra.mxu1 %v10025_v23  ;;  %9555 = vmatprep.mubr.msk.f32.mxu1 %vm10484_vm4, %v10452_v4 }
 0x7c0   :  { %10036 = vmatprep.subr.bf16.mxu1 %v10483_v26 }
 0x7c6   :  { %9556 = vmatmul.mubr.f32.vlgmr.msra.gmra.mrb[10].mxu1 %v11297_v22  ;;  %v3494_v22 = vld [vmem:[%s11684_s14] sm:$0xff]  ;;  %s10490_s14 = smov 2  }
 0x7c7   :  { %10038 = vmatpush3.bf16.msra.mxu1 %v10037_v20  ;;  %9562 = vmatprep.mubr.msk.f32.mxu1 %vm10484_vm4, %v10452_v4  ;;  %v11421_v20 = vld [vmem:[%s11673_s3] sm:$0xff]  ;;  %s10486_s3 = smov 3  }
 0x7c8   :  { %10039 = vmatprep.subr.bf16.mxu1 %v10483_v26 }
 0x7ce   :  { %9563 = vmatmul.mubr.f32.vlgmr.msra.gmra.mrb[10].mxu1 %v11291_v50 }
 0x7cf   :  { %10041 = vmatpush3.bf16.msra.mxu1 %v10025_v23  ;;  %9569 = vmatprep.mubr.msk.f32.mxu1 %vm10484_vm4, %v10452_v4 }
 0x7d6   :  { %9570 = vmatmul.mubr.f32.vlgmr.msra.gmra.mrb[10].mxu1 %v11291_v50  ;;  %v4529_v50 = vsub.f32 %v4450_v52, %v11362_v41 }
 0x7d7   :  { %9604 = vmatprep.mubr.f32.mxu1 %v4522_v24 }
 0x7d8   :  { %v11365_v19 = vand.u32 4294901760, %v4529_v50 }
 0x7da   :  { %v4531_v9 = vsub.f32 %v4529_v50, %v11365_v19 }
 0x7dc   :  { %v4532_v18 = vand.u32 4294901760, %v4531_v9 }
 0x87d   :  { %v3968_v1 = vpop.f32.mrb[8].mxu1 }
 0x87e   :  { %v9529_v55 = vpop.f32.mrb[9].mxu1  ;;  %v3972_v48 = vmul.f32 0.0078125, %v3968_v1 }
 0x880   :  { %v4433_v61 = vmul.f32 %v3972_v48, %v3972_v48 }
 0x8a9   :  { %v4428_v30 = vpop.f32.mrb[10].mxu1 }
 0x8aa   :  { %v4432_v34 = vmul.f32 0.0078125, %v4428_v30  ;;  %v9571_v49 = vpop.f32.mrb[11].mxu1 }
 0x8ac   :  { %v4434_v53 = vsub.f32 %v4432_v34, %v4433_v61 }
 0x8ae   :  { %v4435_v15 = vmax.f32 %v4434_v53, 0.0 }
 0x8b0   :  { %10414 = vrsqrt.f32 %v4435_v15  ;;  %v11707_v15 = vmov 7  }
 0x8ba   :  { %v10415_v14 = vpop.eup %10414 }
 0x8bb   :  { %v4438_v51 = vmul.f32 %v10415_v14, %v3494_v22 }
 0x8bd   :  { %v4453_v59 = vand.u32 4294901760, %v4438_v51  ;;  %v4439_v63 = vmul.f32 %v4438_v51, %v3972_v48 }
 0x8bf   :  { %9572 = vmatprep.subr.mxu0 %v4453_v59  ;;  %4441 = vrot.lane.b32.xlu0 %v4439_v63, %s10485_s11  ;;  %v4540_v21 = vsub.f32 %v4438_v51, %v4453_v59 }
 0x8c0   :  { %9573 = vmatpush3.msra.mxu0 %v4453_v59 }
 0x8c1   :  { %9575 = vmatmul.mubr.f32.vlgmr.msra.gmra.mrb[8].mxu0 %v4532_v18  ;;  %v4541_v29 = vand.u32 4294901760, %v4540_v21 }
 0x8c2   :  { %9579 = vmatprep.mubr.f32.mxu0 %v11348_v46 }
 0x8c3   :  { %v4542_v11 = vsub.f32 %v4540_v21, %v4541_v29 }
 0x8c5   :  { %v4543_v6 = vand.u32 4294901760, %v4542_v11 }
 0x8c7   :  { %9577 = vmatprep.subr.mxu0 %v4543_v6 }
 0x8c8   :  { %9578 = vmatpush3.msra.mxu0 %v4543_v6 }
 0x8c9   :  { %9580 = vmatmul.mubr.f32.vlgmr.msra.gmra.mrb[8].mxu0 %v11362_v41  ;;  %9582 = vmatprep.subr.mxu0 %v4540_v21 }
 0x8ca   :  { %9583 = vmatpush3.msra.mxu0 %v4540_v21  ;;  %9584 = vmatprep.mubr.f32.mxu0 %v11351_v38 }
 0x8cb   :  { %9587 = vmatprep.subr.mxu0 %v4453_v59 }
 0x8d1   :  { %9585 = vmatmul.mubr.f32.vlgmr.msra.gmra.mrb[8].mxu0 %v4529_v50 }
 0x8d2   :  { %9588 = vmatpush3.msra.mxu0 %v4453_v59  ;;  %9589 = vmatprep.mubr.f32.mxu0 %v11354_v47 }
 0x8d3   :  { %9592 = vmatprep.subr.mxu0 %v4541_v29 }
 0x8d9   :  { %9590 = vmatmul.mubr.f32.vlgmr.msra.gmra.mrb[8].mxu0 %v11365_v19 }
 0x8da   :  { %9593 = vmatpush3.msra.mxu0 %v4541_v29  ;;  %9594 = vmatprep.mubr.f32.mxu0 %v11348_v46 }
 0x8db   :  { %9597 = vmatprep.subr.mxu0 %v4453_v59 }
 0x8e1   :  { %9595 = vmatmul.mubr.f32.vlgmr.msra.gmra.mrb[8].mxu0 %v11362_v41 }
 0x8e2   :  { %9598 = vmatpush3.msra.mxu0 %v4453_v59  ;;  %9599 = vmatprep.mubr.f32.mxu0 %v11348_v46 }
 0x8e3   :  { %10043 = vmatprep.subr.bf16.mxu0 %v10042_v42 }
 0x8e9   :  { %9600 = vmatmul.mubr.f32.vlgmr.msra.gmra.mrb[8].mxu0 %v11362_v41 }
 0x8ea   :  { %10045 = vmatpush3.bf16.msra.mxu0 %v10042_v42 }
 0x8eb   :  { %10047 = vmatprep.subr.bf16.mxu0 %v10046_v39 }
 0x8ee   :  { %10049 = vmatpush3.bf16.msra.mxu0 %v10046_v39 }
 0x931   :  { %v4442_v57 = vpop.permute.xlu0 %4441 }
 0x932   :  { %v4444_v60 = vsub.f32 %v3494_v22, %v4442_v57 }
 0x934   :  { %4942 = vrot.lane.b32.xlu1 %v4444_v60, %s10467_s8 }
 0x9a6   :  { %v4943_v27 = vpop.permute.xlu1 %4942 }
 0x9a7   :  { %v4946_v36 = vand.u32 4294901760, %v4943_v27 }
 0x9a9   :  { %v5033_v3 = vsub.f32 %v4943_v27, %v4946_v36  ;;  %9602 = vmatprep.subr.mxu1 %v4946_v36 }
 0x9aa   :  { %9603 = vmatpush3.msra.mxu1 %v4946_v36 }
 0x9ab   :  { %9605 = vmatmul.mubr.f32.vlgmr.msra.gmra.mrb[12].mxu1 %v4532_v18  ;;  %v5034_v37 = vand.u32 4294901760, %v5033_v3 }
 0x9ac   :  { %9609 = vmatprep.mubr.f32.mxu1 %v11348_v46 }
 0x9ad   :  { %v5035_v56 = vsub.f32 %v5033_v3, %v5034_v37 }
 0x9af   :  { %v5036_v12 = vand.u32 4294901760, %v5035_v56 }
 0x9b1   :  { %9607 = vmatprep.subr.mxu1 %v5036_v12 }
 0x9b2   :  { %9608 = vmatpush3.msra.mxu1 %v5036_v12 }
 0x9b3   :  { %9610 = vmatmul.mubr.f32.vlgmr.msra.gmra.mrb[12].mxu1 %v11362_v41  ;;  %9612 = vmatprep.subr.mxu1 %v5033_v3 }
 0x9b4   :  { %9613 = vmatpush3.msra.mxu1 %v5033_v3  ;;  %9614 = vmatprep.mubr.f32.mxu1 %v11351_v38 }
 0x9b5   :  { %9617 = vmatprep.subr.mxu1 %v4946_v36 }
 0x9bb   :  { %9615 = vmatmul.mubr.f32.vlgmr.msra.gmra.mrb[12].mxu1 %v4529_v50  ;;  %v11708_v50 = vmov 0  }
 0x9bc   :  { %9618 = vmatpush3.msra.mxu1 %v4946_v36  ;;  %v9601_v54 = vpop.f32.mrb[8].mxu0  ;;  %9619 = vmatprep.mubr.f32.mxu1 %v11354_v47 }
 0x9bd   :  { %9622 = vmatprep.subr.mxu1 %v5034_v37  ;;  %v4931_v44 = vpop.f32.mrb[9].mxu0  ;;  %5441 = vperm.xlu0 %10396, %v9601_v54   ;;  %v5732_v54 = vld [vmem:[%s11674_s4] sm:$0xff] }
 0x9be   :  { %5436 = vperm.xlu1 %10397, %v4931_v44  }
 0x9c3   :  { %9620 = vmatmul.mubr.f32.vlgmr.msra.gmra.mrb[12].mxu1 %v11365_v19 }
 0x9c4   :  { %9623 = vmatpush3.msra.mxu1 %v5034_v37  ;;  %9624 = vmatprep.mubr.f32.mxu1 %v11348_v46 }
 0x9c5   :  { %9627 = vmatprep.subr.mxu1 %v4946_v36 }
 0x9cb   :  { %9625 = vmatmul.mubr.f32.vlgmr.msra.gmra.mrb[12].mxu1 %v11362_v41 }
 0x9cc   :  { %9628 = vmatpush3.msra.mxu1 %v4946_v36  ;;  %9629 = vmatprep.mubr.f32.mxu1 %v11348_v46 }
 0x9d3   :  { %9630 = vmatmul.mubr.f32.vlgmr.msra.gmra.mrb[12].mxu1 %v11362_v41  ;;  %v11706_v41 = vmov 6  }
 0xa3d   :  { %v5437_v46 = vpop.permute.xlu1 %5436 }
 0xa3e   :  { %v5444_v47 = vmul.f32 %v5437_v46, %v11275_v45 }
 0xaa6   :  { %v9631_v25 = vpop.f32.mrb[12].mxu1 }
 0xaa7   :  { %5453 = vperm.xlu0 %10396, %v9631_v25   ;;  %v5424_v0 = vpop.f32.mrb[13].mxu1 }
 0xaa8   :  { %5448 = vperm.xlu1 %10397, %v5424_v0   ;;  %v5735_v0 = vsel %vm3509_vm8, %v5732_v54, 0 }
 0xaa9   :  { %v11477_v32 = vand.u32 4294901760, %v5735_v0 }
 0xaab   :  { %10399 = vset.pattern.permute.xlu0 %v10450_v2  ;;  %v11481_v31 = vsub.f32 %v5735_v0, %v11477_v32 }
 0xaac   :  { %10398 = vset.pattern.permute.xlu1 %v10450_v2  ;;  %v5475_v2 = vld [vmem:[%s11675_s5 + $0x28] sm:$0xff]  ;;  %5597 = vperm.xlu0 %10399, %v11426_v17   ;;  %s10494_s5 = smov [#allocation5]  }
 0xaad   :  { %v10050_v23 = vpack.c.bf16 %v5475_v2, %v5474_v40  ;;  %5593 = vperm.xlu1 %10398, %v11421_v20   ;;  %v5809_v40 = vand.u32 4294901760, %v11481_v31  ;;  %s8821_s20 = sshll.u32 %s10494_s5, 4  ;;  %s8822_s20 = int_to_ptr.vmem [resolvable:$true] %s8821_s20 }
 0xaae   :  { %p10431_p1 = scmp.lt.s32.totalorder %s8822_s20, %s8822_s20 }
 0xaaf   :  { %10051 = vmatprep.subr.bf16.mxu0 %v10050_v23 }
 0xab0   :  { %10053 = vmatpush3.bf16.msra.mxu0 %v10050_v23  ;;  %10401 = vset.pattern.permute.xlu0 %v10454_v8  ;;  %v5810_v23 = vsub.f32 %v11481_v31, %v5809_v40 }
 0xab1   :  { %10055 = vmatprep.subr.bf16.mxu0 %v10054_v62  ;;  %10400 = vset.pattern.permute.xlu1 %v10453_v5  ;;  %v5442_v5 = vpop.permute.xlu0 %5441 }
 0xab2   :  { %5613 = vperm.xlu1 %10400, %v11421_v20   ;;  %5633 = vperm.xlu0 %10401, %v11421_v20   ;;  %v5445_v38 = vmul.f32 %v11273_v58, %v5442_v5 }
 0xab4   :  { %10057 = vmatpush3.bf16.msra.mxu0 %v10054_v62  ;;  %v5811_v62 = vand.u32 4294901760, %v5810_v23 }
 0xab5   :  { %10082 = vmatprep.subr.bf16.mxu0 %v10483_v26 }
 0xab6   :  { %5617 = vperm.xlu1 %10400, %v11426_v17   ;;  %10404 = vset.pattern.permute.xlu0 %v10456_v10 }
 0xab7   :  { %9655 = vmatprep.mubr.f32.mxu1 %v5811_v62 }
 0xaba   :  { %10402 = vset.pattern.permute.xlu1 %v10454_v8 }
 0xabb   :  { %5637 = vperm.xlu1 %10402, %v11426_v17  }
 0xabf   :  { %10403 = vset.pattern.permute.xlu1 %v10456_v10 }
 0xac0   :  { %5653 = vperm.xlu1 %10403, %v11421_v20  }
 0xac4   :  { %10405 = vset.pattern.permute.xlu1 %v11705_v16 }
 0xb26   :  { %v5454_v43 = vpop.permute.xlu0 %5453 }
 0xb27   :  { %v5457_v24 = vadd.f32 %v5454_v43, %v5445_v38  ;;  %v5449_v1 = vpop.permute.xlu1 %5448 }
 0xb28   :  { %v5456_v55 = vadd.f32 %v5449_v1, %v5444_v47 }
 0xb29   :  { %v5461_v48 = vmin.f32 %v5457_v24, 0.0  ;;  %vm5459_vm11 = vcmp.gt.f32.partialorder %v5457_v24, 0.0 }
 0xb2a   :  { %v5460_v8 = vmin.f32 %v5456_v55, 0.0  ;;  %vm5458_vm10 = vcmp.gt.f32.partialorder %v5456_v55, 0.0 }
 0xb2b   :  { %v5464_v28 = vmul.f32 1.442695, %v5461_v48  ;;  %v5598_v14 = vpop.permute.xlu0 %5597  ;;  %v5733_v48 = vld [vmem:[%s11674_s4 + $0x8] sm:$0xff] }
 0xb2c   :  { %v5462_v30 = vmul.f32 1.442695, %v5460_v8  ;;  %v5594_v19 = vpop.permute.xlu1 %5593 }
 0xb2d   :  { %10416 = vpow2.f32 %v5464_v28 }
 0xb2e   :  { %10418 = vpow2.f32 %v5462_v30 }
 0xb31   :  { %v5614_v22 = vpop.permute.xlu1 %5613  ;;  %v5634_v59 = vpop.permute.xlu0 %5633 }
 0xb35   :  { %v5618_v9 = vpop.permute.xlu1 %5617 }
 0xb37   :  { %v10417_v10 = vpop.eup %10416 }
 0xb38   :  { %v10419_v61 = vpop.eup %10418  ;;  %v8830_v34 = vadd.f32 -1.0, %v10417_v10 }
 0xb39   :  { %v8829_v49 = vadd.f32 -1.0, %v10419_v61 }
 0xb3a   :  { %v5469_v58 = vsel %vm5459_vm11, %v5457_v24, %v8830_v34  ;;  %v5638_v51 = vpop.permute.xlu1 %5637  ;;  %v5738_v34 = vsel %vm3509_vm8, %v5733_v48, 0 }
 0xb3b   :  { %v5468_v52 = vsel %vm5458_vm10, %v5456_v55, %v8829_v49  ;;  %vm8339_vm10 = vcmask 130166  }
 0xb3c   :  { %9648 = vmatprep.mubr.msk.f32.mxu0 %vm718_vm3, %v5468_v52 }
 0xb3d   :  { %9649 = vmatmul.mubr.msk.f32.vlgmr.msra.gmra.mrb[10].mxu0 %vm718_vm3, %v5469_v58  ;;  %vm8313_vm3 = vcmask 46116  }
 0xb3e   :  { %9697 = vmatprep.mubr.msk.f32.mxu0 %vm10484_vm4, %v10452_v4 }
 0xb3f   :  { %v5654_v63 = vpop.permute.xlu1 %5653 }
 0xc10   :  { %v9650_v45 = vpop.f32.mrb[10].mxu0 }
 0xc11   :  { %5569 = vrot.lane.b32.xlu0 %v9650_v45, %s10486_s3  ;;  %v5550_v53 = vpop.f32.mrb[11].mxu0 }
 0xc12   :  { %5567 = vrot.lane.b32.xlu1 %v5550_v53, %s10486_s3  ;;  %v5817_v53 = vand.u32 4294901760, %v5738_v34  ;;  %s11709_s3 = sld [smem:[#allocation11_spill]] }
 0xc15   :  { %5657 = vperm.xlu0 %10404, %v11426_v17  }
 0xc16   :  { %5673 = vperm.xlu1 %10405, %v11421_v20  }
 0xc19   :  { %10406 = vset.pattern.permute.xlu0 %v11706_v41 }
 0xc1a   :  { %5693 = vperm.xlu0 %10406, %v11421_v20   ;;  %5677 = vperm.xlu1 %10405, %v11426_v17  }
 0xc1e   :  { %10409 = vset.pattern.permute.xlu0 %v11707_v15  ;;  %10407 = vset.pattern.permute.xlu1 %v11706_v41 }
 0xc1f   :  { %5717 = vperm.xlu0 %10409, %v11426_v17   ;;  %5697 = vperm.xlu1 %10407, %v11426_v17  }
 0xc23   :  { %10408 = vset.pattern.permute.xlu1 %v11707_v15  ;;  %10411 = vset.pattern.permute.xlu0 %v11708_v50 }
 0xc24   :  { %5713 = vperm.xlu1 %10408, %v11421_v20  }
 0xc28   :  { %10410 = vset.pattern.permute.xlu1 %v11708_v50 }
 0xc29   :  { %5582 = vperm.xlu1 %10410, %v11421_v20  }
 0xc2d   :  { %5587 = vperm.xlu1 %10410, %v11426_v17  }
 0xc83   :  { %v5570_v18 = vpop.permute.xlu0 %5569 }
 0xc84   :  { %5575 = vst.msk [vmem:[#allocation3 + $0x8] sm:$0xff] %vm5573_vm14, %v5570_v18  ;;  %v5568_v21 = vpop.permute.xlu1 %5567 }
 0xc85   :  { %5574 = vst.msk [vmem:[#allocation3] sm:$0xff] %vm5573_vm14, %v5568_v21 }
 0xc8b   :  { %v5579_v29 = vld [vmem:[#allocation3 + $0x8] sm:$0xff] }
 0xc8c   :  { %v5601_v11 = vmul.f32 %v5598_v14, %v5579_v29  ;;  %v5578_v6 = vld [vmem:[#allocation3] sm:$0xff]  ;;  %v5621_v60 = vmul.f32 %v5618_v9, %v5579_v29  ;;  %v5641_v36 = vmul.f32 %v5638_v51, %v5579_v29  ;;  %v5818_v14 = vsub.f32 %v5738_v34, %v5817_v53 }
 0xc8d   :  { %v5600_v57 = vmul.f32 %v5594_v19, %v5578_v6  ;;  %v5620_v27 = vmul.f32 %v5614_v22, %v5578_v6  ;;  %v5640_v56 = vmul.f32 %v5634_v59, %v5578_v6  ;;  %v5660_v25 = vmul.f32 %v5654_v63, %v5578_v6 }
 0xc8e   :  { %5606 = vrot.lane.b32.xlu1 %v5601_v11, %s10467_s8  ;;  %v5819_v11 = vand.u32 4294901760, %v5818_v14 }
 0xc8f   :  { %5604 = vrot.lane.b32.xlu0 %v5600_v57, %s10467_s8 }
 0xc92   :  { %5626 = vrot.lane.b32.xlu1 %v5621_v60, %s10468_s24 }
 0xc93   :  { %5624 = vrot.lane.b32.xlu0 %v5620_v27, %s10468_s24  ;;  %s10426_s24 = scalar_lea.vmem %s8822_s20, 32 }
 0xc94   :  { %v5658_v3 = vpop.permute.xlu0 %5657  ;;  %p10427_p0 = scmp.ne.s32.totalorder %s8822_s20, %s10426_s24  ;;  %p10432_p2 = scmp.lt.s32.totalorder %s10426_s24, %s10426_s24 }
 0xc95   :  { %v5674_v37 = vpop.permute.xlu1 %5673  ;;  %v5661_v12 = vmul.f32 %v5658_v3, %v5579_v29  ;;  %v5820_v3 = vsub.f32 %v5818_v14, %v5819_v11 }
 0xc96   :  { %5646 = vrot.lane.b32.xlu1 %v5641_v36, %s10470_s25  ;;  %v5680_v33 = vmul.f32 %v5674_v37, %v5578_v6  ;;  %p10433_p3 = por %p10432_p2, %p10431_p1 }
 0xc97   :  { %5644 = vrot.lane.b32.xlu0 %v5640_v56, %s10470_s25 }
 0xc98   :  { %p10434_p4 = pnand %p10433_p3, %p10427_p0 }
 0xc99   :  { %v5678_v44 = vpop.permute.xlu1 %5677  ;;  %v5694_v35 = vpop.permute.xlu0 %5693 }
 0xc9a   :  { %5666 = vrot.lane.b32.xlu1 %v5661_v12, %s10471_s26  ;;  %v5681_v42 = vmul.f32 %v5678_v44, %v5579_v29  ;;  %v5700_v7 = vmul.f32 %v5694_v35, %v5578_v6 }
 0xc9b   :  { %5664 = vrot.lane.b32.xlu0 %v5660_v25, %s10471_s26  ;;  %v5821_v25 = vand.u32 4294901760, %v5820_v3 }
 0xc9e   :  { %5686 = vrot.lane.b32.xlu1 %v5681_v42, %s10472_s27  ;;  %v5698_v39 = vpop.permute.xlu1 %5697  ;;  %v5718_v13 = vpop.permute.xlu0 %5717 }
 0xc9f   :  { %v5701_v2 = vmul.f32 %v5698_v39, %v5579_v29  ;;  %5684 = vrot.lane.b32.xlu0 %v5680_v33, %s10472_s27  ;;  %v5721_v17 = vmul.f32 %v5718_v13, %v5579_v29 }
 0xca2   :  { %5706 = vrot.lane.b32.xlu1 %v5701_v2, %s10473_s28 }
 0xca3   :  { %5704 = vrot.lane.b32.xlu0 %v5700_v7, %s10473_s28  ;;  %v5714_v20 = vpop.permute.xlu1 %5713 }
 0xca4   :  { %v5720_v16 = vmul.f32 %v5714_v20, %v5578_v6 }
 0xca6   :  { %5726 = vrot.lane.b32.xlu1 %v5721_v17, %s10474_s29 }
 0xca7   :  { %5724 = vrot.lane.b32.xlu0 %v5720_v16, %s10474_s29  ;;  %v6242_v16 = vld [vmem:[%s11685_s15] sm:$0xff] }
 0xca8   :  { %v5583_v5 = vpop.permute.xlu1 %5582 }
 0xca9   :  { %v5590_v28 = vmul.f32 %v5583_v5, %v5578_v6  ;;  %v6261_v5 = vsel %vm3509_vm8, %v6242_v16, 0  ;;  %v6245_v16 = vld [vmem:[%s11687_s17] sm:$0xff] }
 0xcac   :  { %v5588_v46 = vpop.permute.xlu1 %5587 }
 0xcad   :  { %v5591_v8 = vmul.f32 %v5588_v46, %v5579_v29  ;;  %v11524_v46 = vand.u32 4294901760, %v6261_v5 }
 0xd00   :  { %v5607_v38 = vpop.permute.xlu1 %5606 }
 0xd01   :  { %v5605_v47 = vpop.permute.xlu0 %5604  ;;  %v5611_v10 = vadd.f32 %v5607_v38, %v5591_v8  ;;  %v6331_v38 = vsub.f32 %v6261_v5, %v11524_v46 }
 0xd02   :  { %v5610_v49 = vadd.f32 %v5605_v47, %v5590_v28 }
 0xd03   :  { %v11527_v47 = vand.u32 4294901760, %v6331_v38 }
 0xd04   :  { %v5627_v43 = vpop.permute.xlu1 %5626 }
 0xd05   :  { %v5625_v24 = vpop.permute.xlu0 %5624  ;;  %v5631_v52 = vadd.f32 %v5627_v43, %v5611_v10 }
 0xd06   :  { %v5630_v58 = vadd.f32 %v5625_v24, %v5610_v49 }
 0xd08   :  { %v5647_v1 = vpop.permute.xlu1 %5646 }
 0xd09   :  { %v5645_v55 = vpop.permute.xlu0 %5644  ;;  %v5651_v41 = vadd.f32 %v5647_v1, %v5631_v52 }
 0xd0a   :  { %v5650_v50 = vadd.f32 %v5645_v55, %v5630_v58  ;;  %v6333_v55 = vsub.f32 %v6331_v38, %v11527_v47 }
 0xd0c   :  { %v5667_v30 = vpop.permute.xlu1 %5666  ;;  %v6334_v34 = vand.u32 4294901760, %v6333_v55 }
 0xd0d   :  { %v5665_v61 = vpop.permute.xlu0 %5664  ;;  %v5671_v19 = vadd.f32 %v5667_v30, %v5651_v41 }
 0xd0e   :  { %v5670_v22 = vadd.f32 %v5665_v61, %v5650_v50 }
 0xd10   :  { %v5687_v45 = vpop.permute.xlu1 %5686 }
 0xd11   :  { %v5685_v15 = vpop.permute.xlu0 %5684  ;;  %v5691_v51 = vadd.f32 %v5687_v45, %v5671_v19 }
 0xd12   :  { %v5690_v63 = vadd.f32 %v5685_v15, %v5670_v22 }
 0xd14   :  { %v5707_v9 = vpop.permute.xlu1 %5706 }
 0xd15   :  { %v5705_v59 = vpop.permute.xlu0 %5704  ;;  %v5711_v18 = vadd.f32 %v5707_v9, %v5691_v51 }
 0xd16   :  { %v5710_v21 = vadd.f32 %v5705_v59, %v5690_v63 }
 0xd18   :  { %v5727_v29 = vpop.permute.xlu1 %5726 }
 0xd19   :  { %v5731_v6 = vadd.f32 %v5727_v29, %v5711_v18  ;;  %v5725_v57 = vpop.permute.xlu0 %5724 }
 0xd1a   :  { %v5730_v60 = vadd.f32 %v5725_v57, %v5710_v21 }
 0xd1b   :  { %v5744_v27 = vand.u32 4294901760, %v5731_v6 }
 0xd1c   :  { %v5741_v36 = vand.u32 4294901760, %v5730_v60 }
 0xd1d   :  { %v5836_v37 = vsub.f32 %v5731_v6, %v5744_v27 }
 0xd1e   :  { %v10058_v56 = vpack.c.bf16 %v5744_v27, %v5741_v36  ;;  %v5829_v12 = vsub.f32 %v5730_v60, %v5741_v36  ;;  %v6243_v36 = vld [vmem:[%s11686_s16] sm:$0xff] }
 0xd1f   :  { %v5837_v54 = vand.u32 4294901760, %v5836_v37  ;;  %v7196_v3 = vsel %vm4445_vm9, %v6243_v36, 0 }
 0xd20   :  { %v5830_v44 = vand.u32 4294901760, %v5829_v12  ;;  %10059 = vmatprep.subr.bf16.mxu1 %v10058_v56  ;;  %v10066_v0 = vpack.c.bf16 %v5836_v37, %v5829_v12 }
 0xd21   :  { %10061 = vmatpush3.bf16.msra.mxu1 %v10058_v56  ;;  %v5838_v35 = vsub.f32 %v5836_v37, %v5837_v54  ;;  %v11572_v37 = vand.u32 4294901760, %v7196_v3 }
 0xd22   :  { %v5831_v42 = vsub.f32 %v5829_v12, %v5830_v44  ;;  %v10074_v33 = vpack.c.bf16 %v5837_v54, %v5830_v44 }
 0xd23   :  { %v5839_v39 = vand.u32 4294901760, %v5838_v35 }
 0xd24   :  { %9656 = vmatmul.mubr.f32.vlgmr.msra.gmra.mrb[14].mxu1 %v5821_v25  ;;  %v5832_v2 = vand.u32 4294901760, %v5831_v42  ;;  %v6244_v42 = vld [vmem:[%s11686_s16 + $0x8] sm:$0xff] }
 0xd25   :  { %9662 = vmatprep.mubr.f32.mxu1 %v11477_v32 }
 0xd26   :  { %v10062_v23 = vpack.c.bf16 %v5839_v39, %v5832_v2 }
 0xd28   :  { %10063 = vmatprep.subr.bf16.mxu1 %v10062_v23 }
 0xd29   :  { %10065 = vmatpush3.bf16.msra.mxu1 %v10062_v23 }
 0xd2a   :  { %10067 = vmatprep.subr.bf16.mxu1 %v10066_v0 }
 0xd2c   :  { %9663 = vmatmul.mubr.f32.vlgmr.msra.gmra.mrb[14].mxu1 %v5817_v53 }
 0xd2d   :  { %10069 = vmatpush3.bf16.msra.mxu1 %v10066_v0  ;;  %9669 = vmatprep.mubr.f32.mxu1 %v11481_v31 }
 0xd2e   :  { %10071 = vmatprep.subr.bf16.mxu1 %v10058_v56 }
 0xd34   :  { %9670 = vmatmul.mubr.f32.vlgmr.msra.gmra.mrb[14].mxu1 %v5818_v14 }
 0xd35   :  { %10073 = vmatpush3.bf16.msra.mxu1 %v10058_v56  ;;  %9676 = vmatprep.mubr.f32.mxu1 %v5809_v40 }
 0xd36   :  { %10075 = vmatprep.subr.bf16.mxu1 %v10074_v33 }
 0xd3c   :  { %9677 = vmatmul.mubr.f32.vlgmr.msra.gmra.mrb[14].mxu1 %v5819_v11 }
 0xd3d   :  { %10077 = vmatpush3.bf16.msra.mxu1 %v10074_v33  ;;  %9683 = vmatprep.mubr.f32.mxu1 %v11477_v32 }
 0xd3e   :  { %10079 = vmatprep.subr.bf16.mxu1 %v10058_v56 }
 0xd44   :  { %9684 = vmatmul.mubr.f32.vlgmr.msra.gmra.mrb[14].mxu1 %v5817_v53 }
 0xd45   :  { %10081 = vmatpush3.bf16.msra.mxu1 %v10058_v56  ;;  %9690 = vmatprep.mubr.f32.mxu1 %v11477_v32  ;;  %v11575_v56 = vsub.f32 %v7196_v3, %v11572_v37 }
 0xd46   :  { %10100 = vmatprep.subr.bf16.mxu1 %v10483_v26 }
 0xd47   :  { %v11578_v12 = vand.u32 4294901760, %v11575_v56 }
 0xd49   :  { %v7270_v54 = vsub.f32 %v11575_v56, %v11578_v12 }
 0xd4b   :  { %v7271_v44 = vand.u32 4294901760, %v7270_v54  ;;  %v8343_v54 = vld [vmem:[%s11677_s7 + $0x8] sm:$0xff] }
 0xd4c   :  { %9691 = vmatmul.mubr.f32.vlgmr.msra.gmra.mrb[14].mxu1 %v5817_v53 }
 0xd4d   :  { %9739 = vmatprep.mubr.msk.f32.mxu1 %vm10484_vm4, %v10452_v4 }
 0xe1f   :  { %v11506_v7 = vpop.f32.mrb[14].mxu1 }
 0xe20   :  { %v11508_v31 = vpop.f32.mrb[15].mxu1  ;;  %v6249_v40 = vsel %vm3509_vm8, %v11506_v7, 0.0  ;;  %v6253_v62 = vmul.f32 %v11506_v7, %v11506_v7 }
 0xe21   :  { %v6252_v13 = vmul.f32 %v11508_v31, %v11508_v31  ;;  %6250 = vadd.xlane.f32.xlu1 %v6249_v40  ;;  %v6246_v32 = vsel %vm3509_vm8, %v11508_v31, 0.0  ;;  %v7199_v40 = vsel %vm4445_vm9, %v6244_v42, 0  ;;  %vm8334_vm9 = vcmask 111716  }
 0xe22   :  { %6247 = vadd.xlane.f32.xlu0 %v6246_v32  ;;  %v6257_v17 = vsel %vm3509_vm8, %v6253_v62, 0.0  ;;  %v11586_v32 = vand.u32 4294901760, %v7199_v40 }
 0xe23   :  { %v6254_v20 = vsel %vm3509_vm8, %v6252_v13, 0.0 }
 0xe26   :  { %6255 = vadd.xlane.f32.xlu0 %v6254_v20  ;;  %v7278_v20 = vsub.f32 %v7199_v40, %v11586_v32 }
 0xe2a   :  { %6258 = vadd.xlane.f32.xlu0 %v6257_v17  ;;  %v11589_v17 = vand.u32 4294901760, %v7278_v20 }
 0xe2c   :  { %v7280_v5 = vsub.f32 %v7278_v20, %v11589_v17 }
 0xeae   :  { %v6251_v43 = vpop.xlane.xlu1 %6250 }
 0xeaf   :  { %v6267_v24 = vand.u32 4294901760, %v6251_v43  ;;  %v6248_v1 = vpop.xlane.xlu0 %6247 }
 0xeb0   :  { %v6264_v48 = vand.u32 4294901760, %v6248_v1 }
 0xeb1   :  { %v6349_v8 = vsub.f32 %v6251_v43, %v6267_v24 }
 0xeb2   :  { %v10083_v28 = vpack.c.bf16 %v6267_v24, %v6264_v48  ;;  %v6342_v30 = vsub.f32 %v6248_v1, %v6264_v48  ;;  %v7281_v24 = vand.u32 4294901760, %v7280_v5 }
 0xeb3   :  { %v6350_v10 = vand.u32 4294901760, %v6349_v8  ;;  %v6256_v61 = vpop.xlane.xlu0 %6255 }
 0xeb4   :  { %v6343_v49 = vand.u32 4294901760, %v6342_v30  ;;  %v6724_v52 = vand.u32 4294901760, %v6256_v61  ;;  %10084 = vmatpush3.bf16.msra.mxu0 %v10083_v28  ;;  %v10089_v18 = vpack.c.bf16 %v6349_v8, %v6342_v30 }
 0xeb5   :  { %v6351_v58 = vsub.f32 %v6349_v8, %v6350_v10  ;;  %10085 = vmatprep.subr.bf16.mxu0 %v10483_v26 }
 0xeb6   :  { %v6344_v45 = vsub.f32 %v6342_v30, %v6343_v49  ;;  %v6802_v53 = vsub.f32 %v6256_v61, %v6724_v52  ;;  %v10095_v60 = vpack.c.bf16 %v6350_v10, %v6343_v49 }
 0xeb7   :  { %v6352_v41 = vand.u32 4294901760, %v6351_v58  ;;  %9698 = vmatmul.mubr.f32.vlgmr.msra.gmra.mrb[12].mxu0 %v6334_v34  ;;  %v6259_v15 = vpop.xlane.xlu0 %6258 }
 0xeb8   :  { %v6345_v50 = vand.u32 4294901760, %v6344_v45  ;;  %v6803_v19 = vand.u32 4294901760, %v6802_v53  ;;  %v6727_v22 = vand.u32 4294901760, %v6259_v15  ;;  %9704 = vmatprep.mubr.msk.f32.mxu0 %vm10484_vm4, %v10452_v4 }
 0xeba   :  { %v10101_v9 = vpack.c.bf16 %v6727_v22, %v6724_v52  ;;  %v6809_v14 = vsub.f32 %v6259_v15, %v6727_v22  ;;  %v10086_v51 = vpack.c.bf16 %v6352_v41, %v6345_v50  ;;  %v6804_v59 = vsub.f32 %v6802_v53, %v6803_v19  ;;  %v8219_v50 = vld [vmem:[%s11676_s6] sm:$0xff] }
 0xebc   :  { %v6810_v63 = vand.u32 4294901760, %v6809_v14  ;;  %10087 = vmatpush3.bf16.msra.mxu0 %v10086_v51  ;;  %10102 = vmatpush3.bf16.msra.mxu1 %v10101_v9  ;;  %v6805_v29 = vand.u32 4294901760, %v6804_v59  ;;  %v10107_v57 = vpack.c.bf16 %v6809_v14, %v6802_v53 }
 0xebd   :  { %10088 = vmatprep.subr.bf16.mxu0 %v10483_v26  ;;  %10103 = vmatprep.subr.bf16.mxu1 %v10483_v26 }
 0xebe   :  { %v6811_v21 = vsub.f32 %v6809_v14, %v6810_v63  ;;  %v10113_v27 = vpack.c.bf16 %v6810_v63, %v6803_v19  ;;  %v8220_v19 = vld [vmem:[%s11676_s6 + $0x8] sm:$0xff] }
 0xebf   :  { %9705 = vmatmul.mubr.f32.vlgmr.msra.gmra.mrb[12].mxu0 %v11524_v46  ;;  %9740 = vmatmul.mubr.f32.vlgmr.msra.gmra.mrb[16].mxu1 %v6334_v34  ;;  %v10118_v22 = vpack.c.bf16 %v8220_v19, %v8219_v50 }
 0xec0   :  { %v6812_v11 = vand.u32 4294901760, %v6811_v21  ;;  %10090 = vmatpush3.bf16.msra.mxu0 %v10089_v18  ;;  %9711 = vmatprep.mubr.msk.f32.mxu0 %vm10484_vm4, %v10452_v4 }
 0xec1   :  { %10091 = vmatprep.subr.bf16.mxu0 %v10483_v26  ;;  %9746 = vmatprep.mubr.msk.f32.mxu1 %vm10484_vm4, %v10452_v4 }
 0xec2   :  { %v10104_v6 = vpack.c.bf16 %v6812_v11, %v6805_v29 }
 0xec4   :  { %10105 = vmatpush3.bf16.msra.mxu1 %v10104_v6 }
 0xec5   :  { %10106 = vmatprep.subr.bf16.mxu1 %v10483_v26 }
 0xec7   :  { %9712 = vmatmul.mubr.f32.vlgmr.msra.gmra.mrb[12].mxu0 %v6331_v38  ;;  %9747 = vmatmul.mubr.f32.vlgmr.msra.gmra.mrb[16].mxu1 %v11524_v46 }
 0xec8   :  { %10093 = vmatpush3.bf16.msra.mxu0 %v10083_v28  ;;  %10108 = vmatpush3.bf16.msra.mxu1 %v10107_v57 }
 0xec9   :  { %9718 = vmatprep.mubr.msk.f32.mxu0 %vm10484_vm4, %v10452_v4  ;;  %10094 = vmatprep.subr.bf16.mxu0 %v10483_v26 }
 0xeca   :  { %9753 = vmatprep.mubr.msk.f32.mxu1 %vm10484_vm4, %v10452_v4  ;;  %10109 = vmatprep.subr.bf16.mxu1 %v10483_v26 }
 0xecf   :  { %9719 = vmatmul.mubr.f32.vlgmr.msra.gmra.mrb[12].mxu0 %v11527_v47  ;;  %9754 = vmatmul.mubr.f32.vlgmr.msra.gmra.mrb[16].mxu1 %v6331_v38 }
 0xed0   :  { %10096 = vmatpush3.bf16.msra.mxu0 %v10095_v60  ;;  %10111 = vmatpush3.bf16.msra.mxu1 %v10101_v9 }
 0xed1   :  { %9725 = vmatprep.mubr.msk.f32.mxu0 %vm10484_vm4, %v10452_v4  ;;  %10097 = vmatprep.subr.bf16.mxu0 %v10483_v26 }
 0xed2   :  { %9760 = vmatprep.mubr.msk.f32.mxu1 %vm10484_vm4, %v10452_v4  ;;  %10112 = vmatprep.subr.bf16.mxu1 %v10483_v26 }
 0xed7   :  { %9726 = vmatmul.mubr.f32.vlgmr.msra.gmra.mrb[12].mxu0 %v11524_v46  ;;  %9761 = vmatmul.mubr.f32.vlgmr.msra.gmra.mrb[16].mxu1 %v11527_v47 }
 0xed8   :  { %10099 = vmatpush3.bf16.msra.mxu0 %v10083_v28  ;;  %10114 = vmatpush3.bf16.msra.mxu1 %v10113_v27 }
 0xed9   :  { %9732 = vmatprep.mubr.msk.f32.mxu0 %vm10484_vm4, %v10452_v4  ;;  %9767 = vmatprep.mubr.msk.f32.mxu1 %vm10484_vm4, %v10452_v4 }
 0xeda   :  { %10115 = vmatprep.subr.bf16.mxu1 %v10483_v26 }
 0xedf   :  { %9733 = vmatmul.mubr.f32.vlgmr.msra.gmra.mrb[12].mxu0 %v11524_v46  ;;  %9768 = vmatmul.mubr.f32.vlgmr.msra.gmra.mrb[16].mxu1 %v11524_v46 }
 0xee0   :  { %10117 = vmatpush3.bf16.msra.mxu1 %v10101_v9  ;;  %9774 = vmatprep.mubr.msk.f32.mxu1 %vm10484_vm4, %v10452_v4 }
 0xee1   :  { %9779 = vmatprep.mubr.f32.mxu0 %v7271_v44 }
 0xee7   :  { %9775 = vmatmul.mubr.f32.vlgmr.msra.gmra.mrb[16].mxu1 %v11524_v46 }
 0xee8   :  { %9809 = vmatprep.mubr.f32.mxu1 %v7271_v44 }
 0xfb2   :  { %v6718_v25 = vpop.f32.mrb[12].mxu0 }
 0xfb3   :  { %v9734_v0 = vpop.f32.mrb[13].mxu0  ;;  %v6722_v35 = vmul.f32 0.03125, %v6718_v25 }
 0xfb4   :  { %v8358_v0 = vand.u32 4294901760, %v8343_v54 }
 0xfb5   :  { %v7183_v39 = vmul.f32 %v6722_v35, %v6722_v35 }
 0xfba   :  { %v7178_v33 = vpop.f32.mrb[16].mxu1 }
 0xfbb   :  { %v7182_v2 = vmul.f32 0.03125, %v7178_v33  ;;  %v9776_v23 = vpop.f32.mrb[17].mxu1  ;;  %v8440_v33 = vsub.f32 %v8343_v54, %v8358_v0 }
 0xfbd   :  { %v7184_v13 = vsub.f32 %v7182_v2, %v7183_v39  ;;  %v8441_v2 = vand.u32 4294901760, %v8440_v33 }
 0xfbf   :  { %v7185_v62 = vmax.f32 %v7184_v13, 0.0  ;;  %v8442_v40 = vsub.f32 %v8440_v33, %v8441_v2 }
 0xfc1   :  { %10420 = vrsqrt.f32 %v7185_v62 }
 0xfcb   :  { %v10421_v46 = vpop.eup %10420 }
 0xfcc   :  { %v7188_v38 = vmul.f32 %v10421_v46, %v6245_v16 }
 0xfce   :  { %v7202_v47 = vand.u32 4294901760, %v7188_v38  ;;  %v7189_v43 = vmul.f32 %v7188_v38, %v6722_v35 }
 0xfd0   :  { %9777 = vmatprep.subr.mxu0 %v7202_v47  ;;  %7191 = vrot.lane.b32.xlu1 %v7189_v43, %s10485_s11  ;;  %v7289_v1 = vsub.f32 %v7188_v38, %v7202_v47 }
 0xfd1   :  { %9778 = vmatpush3.msra.mxu0 %v7202_v47 }
 0xfd2   :  { %9780 = vmatmul.mubr.f32.vlgmr.msra.gmra.mrb[14].mxu0 %v7281_v24  ;;  %v7290_v55 = vand.u32 4294901760, %v7289_v1 }
 0xfd3   :  { %9784 = vmatprep.mubr.f32.mxu0 %v11572_v37 }
 0xfd4   :  { %v7291_v48 = vsub.f32 %v7289_v1, %v7290_v55 }
 0xfd6   :  { %v7292_v8 = vand.u32 4294901760, %v7291_v48 }
 0xfd8   :  { %9782 = vmatprep.subr.mxu0 %v7292_v8 }
 0xfd9   :  { %9783 = vmatpush3.msra.mxu0 %v7292_v8 }
 0xfda   :  { %9785 = vmatmul.mubr.f32.vlgmr.msra.gmra.mrb[14].mxu0 %v11586_v32  ;;  %9787 = vmatprep.subr.mxu0 %v7289_v1 }
 0xfdb   :  { %9788 = vmatpush3.msra.mxu0 %v7289_v1  ;;  %9789 = vmatprep.mubr.f32.mxu0 %v11575_v56 }
 0xfdc   :  { %9792 = vmatprep.subr.mxu0 %v7202_v47 }
 0xfe2   :  { %9790 = vmatmul.mubr.f32.vlgmr.msra.gmra.mrb[14].mxu0 %v7278_v20 }
 0xfe3   :  { %9793 = vmatpush3.msra.mxu0 %v7202_v47  ;;  %9794 = vmatprep.mubr.f32.mxu0 %v11578_v12 }
 0xfe4   :  { %9797 = vmatprep.subr.mxu0 %v7290_v55 }
 0xfea   :  { %9795 = vmatmul.mubr.f32.vlgmr.msra.gmra.mrb[14].mxu0 %v11589_v17 }
 0xfeb   :  { %9798 = vmatpush3.msra.mxu0 %v7290_v55  ;;  %9799 = vmatprep.mubr.f32.mxu0 %v11572_v37 }
 0xfec   :  { %9802 = vmatprep.subr.mxu0 %v7202_v47 }
 0xff2   :  { %9800 = vmatmul.mubr.f32.vlgmr.msra.gmra.mrb[14].mxu0 %v11586_v32 }
 0xff3   :  { %9803 = vmatpush3.msra.mxu0 %v7202_v47  ;;  %9804 = vmatprep.mubr.f32.mxu0 %v11572_v37 }
 0xff4   :  { %10119 = vmatprep.subr.bf16.mxu0 %v10118_v22 }
 0xffa   :  { %9805 = vmatmul.mubr.f32.vlgmr.msra.gmra.mrb[14].mxu0 %v11586_v32 }
 0xffb   :  { %10121 = vmatpush3.bf16.msra.mxu0 %v10118_v22 }
 0xffc   :  { %10122 = vmatprep.subr.bf16.mxu0 %v10483_v26 }
0x1042   :  { %v7192_v28 = vpop.permute.xlu1 %7191 }
0x1043   :  { %v7194_v30 = vsub.f32 %v6245_v16, %v7192_v28 }
0x1045   :  { %7691 = vrot.lane.b32.xlu0 %v7194_v30, %s10467_s8 }
0x10b7   :  { %v7692_v10 = vpop.permute.xlu0 %7691 }
0x10b8   :  { %v7695_v61 = vand.u32 4294901760, %v7692_v10 }
0x10ba   :  { %v7782_v34 = vsub.f32 %v7692_v10, %v7695_v61  ;;  %9807 = vmatprep.subr.mxu1 %v7695_v61 }
0x10bb   :  { %9808 = vmatpush3.msra.mxu1 %v7695_v61 }
0x10bc   :  { %9810 = vmatmul.mubr.f32.vlgmr.msra.gmra.mrb[18].mxu1 %v7281_v24  ;;  %v7783_v49 = vand.u32 4294901760, %v7782_v34 }
0x10bd   :  { %9814 = vmatprep.mubr.f32.mxu1 %v11572_v37 }
0x10be   :  { %v7784_v52 = vsub.f32 %v7782_v34, %v7783_v49 }
0x10c0   :  { %v7785_v58 = vand.u32 4294901760, %v7784_v52 }
0x10c2   :  { %9812 = vmatprep.subr.mxu1 %v7785_v58 }
0x10c3   :  { %9813 = vmatpush3.msra.mxu1 %v7785_v58 }
0x10c4   :  { %9815 = vmatmul.mubr.f32.vlgmr.msra.gmra.mrb[18].mxu1 %v11586_v32  ;;  %9817 = vmatprep.subr.mxu1 %v7782_v34 }
0x10c5   :  { %9818 = vmatpush3.msra.mxu1 %v7782_v34  ;;  %9819 = vmatprep.mubr.f32.mxu1 %v11575_v56 }
0x10c6   :  { %9822 = vmatprep.subr.mxu1 %v7695_v61 }
0x10cc   :  { %9820 = vmatmul.mubr.f32.vlgmr.msra.gmra.mrb[18].mxu1 %v7278_v20 }
0x10cd   :  { %9823 = vmatpush3.msra.mxu1 %v7695_v61  ;;  %v9806_v45 = vpop.f32.mrb[14].mxu0  ;;  %9824 = vmatprep.mubr.f32.mxu1 %v11578_v12  ;;  %v8342_v12 = vld [vmem:[%s11677_s7] sm:$0xff]  ;;  %s10491_s7 = smov 12  }
0x10ce   :  { %9827 = vmatprep.subr.mxu1 %v7783_v49  ;;  %8190 = vperm.xlu1 %10410, %v9806_v45   ;;  %v7680_v53 = vpop.f32.mrb[15].mxu0  ;;  %v8355_v25 = vand.u32 4294901760, %v8342_v12 }
0x10d0   :  { %v11634_v35 = vpack.c.bf16 %v8358_v0, %v8355_v25  ;;  %v8433_v42 = vsub.f32 %v8342_v12, %v8355_v25 }
0x10d2   :  { %8185 = vperm.xlu1 %10410, %v7680_v53   ;;  %v8434_v39 = vand.u32 4294901760, %v8433_v42  ;;  %v10129_v20 = vpack.c.bf16 %v8440_v33, %v8433_v42 }
0x10d4   :  { %9825 = vmatmul.mubr.f32.vlgmr.msra.gmra.mrb[18].mxu1 %v11589_v17  ;;  %v8435_v23 = vsub.f32 %v8433_v42, %v8434_v39  ;;  %v10135_v17 = vpack.c.bf16 %v8441_v2, %v8434_v39 }
0x10d5   :  { %9828 = vmatpush3.msra.mxu1 %v7783_v49  ;;  %9829 = vmatprep.mubr.f32.mxu1 %v11572_v37 }
0x10d6   :  { %9832 = vmatprep.subr.mxu1 %v7695_v61  ;;  %v8436_v13 = vand.u32 4294901760, %v8435_v23 }
0x10dc   :  { %9830 = vmatmul.mubr.f32.vlgmr.msra.gmra.mrb[18].mxu1 %v11586_v32 }
0x10dd   :  { %9833 = vmatpush3.msra.mxu1 %v7695_v61  ;;  %9834 = vmatprep.mubr.f32.mxu1 %v11572_v37  ;;  %v8837_v61 = vld [vmem:[%s11709_s3] ss:$0 sm:$0xff] }
0x10e4   :  { %9835 = vmatmul.mubr.f32.vlgmr.msra.gmra.mrb[18].mxu1 %v11586_v32  ;;  %v8443_v32 = vand.u32 4294901760, %v8442_v40 }
0x10e6   :  { %v10126_v62 = vpack.c.bf16 %v8443_v32, %v8436_v13 }
0x114d   :  { %v8191_v9 = vpop.permute.xlu1 %8190 }
0x114e   :  { %v8194_v51 = vmul.f32 %v11506_v7, %v8191_v9 }
0x1151   :  { %v8186_v14 = vpop.permute.xlu1 %8185 }
0x1152   :  { %v8193_v59 = vmul.f32 %v8186_v14, %v11508_v31 }
0x11b7   :  { %v9836_v41 = vpop.f32.mrb[18].mxu1 }
0x11b8   :  { %8202 = vperm.xlu1 %10410, %v9836_v41   ;;  %v8173_v15 = vpop.f32.mrb[19].mxu1 }
0x11b9   :  { %8197 = vperm.xlu0 %10411, %v8173_v15  }
0x1237   :  { %v8203_v63 = vpop.permute.xlu1 %8202 }
0x1238   :  { %v8206_v18 = vadd.f32 %v8203_v63, %v8194_v51  ;;  %v8198_v21 = vpop.permute.xlu0 %8197 }
0x1239   :  { %v8205_v29 = vadd.f32 %v8198_v21, %v8193_v59 }
0x123a   :  { %v8210_v11 = vmin.f32 %v8206_v18, 0.0  ;;  %vm8208_vm0 = vcmp.gt.f32.partialorder %v8206_v18, 0.0 }
0x123b   :  { %v8209_v6 = vmin.f32 %v8205_v29, 0.0  ;;  %vm8207_vm15 = vcmp.gt.f32.partialorder %v8205_v29, 0.0 }
0x123c   :  { %v8213_v57 = vmul.f32 1.442695, %v8210_v11 }
0x123d   :  { %v8211_v60 = vmul.f32 1.442695, %v8209_v6 }
0x123e   :  { %10422 = vpow2.f32 %v8213_v57 }
0x123f   :  { %10424 = vpow2.f32 %v8211_v60 }
0x1248   :  { %v10423_v27 = vpop.eup %10422 }
0x1249   :  { %v10425_v36 = vpop.eup %10424  ;;  %v8834_v3 = vadd.f32 -1.0, %v10423_v27 }
0x124a   :  { %v8833_v37 = vadd.f32 -1.0, %v10425_v36 }
0x124b   :  { %v8218_v7 = vsel %vm8208_vm0, %v8206_v18, %v8834_v3 }
0x124c   :  { %v8217_v56 = vsel %vm8207_vm15, %v8205_v29, %v8833_v37 }
0x124d   :  { %9841 = vmatprep.mubr.msk.f32.mxu0 %vm3509_vm8, %v8217_v56 }
0x124e   :  { %9842 = vmatmul.mubr.msk.f32.vlgmr.msra.gmra.mrb[16].mxu0 %vm3509_vm8, %v8218_v7 }
0x124f   :  { %9848 = vmatprep.mubr.msk.f32.mxu0 %vm10484_vm4, %v10452_v4  ;;  %10124 = vmatpush3.bf16.msra.mxu0 %v11634_v35 }
0x1250   :  { %10125 = vmatprep.subr.bf16.mxu0 %v10483_v26 }
0x1321   :  { %v9843_v31 = vpop.f32.mrb[16].mxu0 }
0x1322   :  { %8326 = vrot.lane.b32.xlu1 %v9843_v31, %s10487_s23  ;;  %8321 = vrot.lane.b32.xlu0 %v9843_v31, %s10488_s30  ;;  %v8293_v44 = vpop.f32.mrb[17].mxu0 }
0x1323   :  { %8303 = vst.msk [vmem:[#allocation4] sm:$0x3] %vm8302_vm1, %v8293_v44 }
0x1326   :  { %8310 = vrot.lane.b32.xlu0 %v8293_v44, %s10489_s13  ;;  %8305 = vrot.lane.b32.xlu1 %v8293_v44, %s10490_s14 }
0x132a   :  { %8331 = vrot.lane.b32.xlu0 %v9843_v31, %s10491_s7  ;;  %8315 = vrot.lane.b32.xlu1 %v8293_v44, %s10492_s9 }
0x132e   :  { %8336 = vrot.lane.b32.xlu1 %v9843_v31, %s10493_s0 }
0x1394   :  { %v8327_v16 = vpop.permute.xlu1 %8326  ;;  %v8322_v5 = vpop.permute.xlu0 %8321 }
0x1398   :  { %v8311_v46 = vpop.permute.xlu0 %8310  ;;  %v8306_v38 = vpop.permute.xlu1 %8305 }
0x1399   :  { %8309 = vst.msk [vmem:[#allocation4 - $0x2] sm:$0xc] %vm8308_vm2, %v8306_v38 }
0x139a   :  { %8314 = vst.msk [vmem:[#allocation4 - $0x4] sm:$0x30] %vm8313_vm3, %v8311_v46 }
0x139c   :  { %v8316_v47 = vpop.permute.xlu1 %8315  ;;  %v8332_v43 = vpop.permute.xlu0 %8331 }
0x139d   :  { %8319 = vst.msk [vmem:[#allocation4 - $0x6] sm:$0xc0] %vm8318_vm5, %v8316_v47 }
0x139e   :  { %8325 = vst.msk [vmem:[#allocation4] sm:$0x3] %vm8324_vm6, %v8322_v5 }
0x139f   :  { %8330 = vst.msk [vmem:[#allocation4 - $0x2] sm:$0xc] %vm8329_vm7, %v8327_v16 }
0x13a0   :  { %v8337_v24 = vpop.permute.xlu1 %8336  ;;  %8335 = vst.msk [vmem:[#allocation4 - $0x4] sm:$0x30] %vm8334_vm9, %v8332_v43 }
0x13a1   :  { %8340 = vst.msk [vmem:[#allocation4 - $0x6] sm:$0xc0] %vm8339_vm10, %v8337_v24 }
0x13a8   :  { %v8341_v1 = vld [vmem:[#allocation4] sm:$0x3] }
0x13a9   :  { %v8352_v55 = vsel %vm3509_vm8, %v8341_v1, 0  ;;  %vm8813_vm8 = vcmask 25600  }
0x13aa   :  { %v8421_v48 = vand.u32 4294901760, %v8352_v55 }
0x13ac   :  { %v8422_v8 = vsub.f32 %v8352_v55, %v8421_v48 }
0x13ae   :  { %v8423_v28 = vand.u32 4294901760, %v8422_v8 }
0x13b0   :  { %v8424_v30 = vsub.f32 %v8422_v8, %v8423_v28 }
0x13b2   :  { %v8425_v10 = vand.u32 4294901760, %v8424_v30 }
0x13b4   :  { %9849 = vmatmul.mubr.f32.vlgmr.msra.gmra.mrb[18].mxu0 %v8425_v10 }
0x13b5   :  { %10127 = vmatpush3.bf16.msra.mxu0 %v10126_v62  ;;  %9855 = vmatprep.mubr.msk.f32.mxu0 %vm10484_vm4, %v10452_v4 }
0x13b6   :  { %10128 = vmatprep.subr.bf16.mxu0 %v10483_v26 }
0x13bc   :  { %9856 = vmatmul.mubr.f32.vlgmr.msra.gmra.mrb[18].mxu0 %v8421_v48 }
0x13bd   :  { %10130 = vmatpush3.bf16.msra.mxu0 %v10129_v20  ;;  %9862 = vmatprep.mubr.msk.f32.mxu0 %vm10484_vm4, %v10452_v4 }
0x13be   :  { %10131 = vmatprep.subr.bf16.mxu0 %v10483_v26 }
0x13c4   :  { %9863 = vmatmul.mubr.f32.vlgmr.msra.gmra.mrb[18].mxu0 %v8422_v8 }
0x13c5   :  { %10133 = vmatpush3.bf16.msra.mxu0 %v11634_v35  ;;  %9869 = vmatprep.mubr.msk.f32.mxu0 %vm10484_vm4, %v10452_v4 }
0x13c6   :  { %10134 = vmatprep.subr.bf16.mxu0 %v10483_v26 }
0x13cc   :  { %9870 = vmatmul.mubr.f32.vlgmr.msra.gmra.mrb[18].mxu0 %v8423_v28 }
0x13cd   :  { %10136 = vmatpush3.bf16.msra.mxu0 %v10135_v17  ;;  %9876 = vmatprep.mubr.msk.f32.mxu0 %vm10484_vm4, %v10452_v4 }
0x13ce   :  { %10137 = vmatprep.subr.bf16.mxu0 %v10483_v26 }
0x13d4   :  { %9877 = vmatmul.mubr.f32.vlgmr.msra.gmra.mrb[18].mxu0 %v8421_v48 }
0x13d5   :  { %10139 = vmatpush3.bf16.msra.mxu0 %v11634_v35  ;;  %9883 = vmatprep.mubr.msk.f32.mxu0 %vm10484_vm4, %v10452_v4 }
0x13dc   :  { %9884 = vmatmul.mubr.f32.vlgmr.msra.gmra.mrb[18].mxu0 %v8421_v48 }
0x14af   :  { %v8809_v34 = vpop.f32.mrb[18].mxu0 }
0x14b0   :  { %v10141_v49 = vadd.f32 %v8837_v61, %v8809_v34  ;;  %v9885_v52 = vpop.f32.mrb[19].mxu0 }
0x14b2   :  { %8814 = vst.msk [vmem:[#allocation5] sm:$0x3] %vm8813_vm8, %v10141_v49 }
0x14b3   :  { %10437 = shalt.err (!%p10434_p4)
}
0x14b4   :  { %s10438_s26 = scalar_lea.hbm %s11688_s18, 32 }
0x14b5   :  { %p10439_p5 = scmp.ne.s32.totalorder %s11688_s18, %s10438_s26  ;;  %p10442_p6 = scmp.lt.u32.totalorder %s10438_s26, %s11688_s18 }
0x14b7   :  { %p10444_p7 = pnand %p10442_p6, %p10439_p5 }
0x14b9   :  { %10447 = shalt.err (!%p10444_p7)
}
0x14ba   :  { %8824 = dma.vmem_to_hbm [thread:$0]  %s8822_s20, 32, %s11688_s18, [#allocation6]  }
0x14bb   :  { %10448 = dma.done.wait [#allocation6], 32  }
0x14bc   :  { %10449 = vsyncadd [#allocation6], 4294967264 }
0x14bd   :  { %8828 = vsyncpa [#allocation6], 1 }

</bundles_post_ra>
